<compile_context>
chip_gen: v6e
topology: v6e:2x2x1
jax: 0.10.0
libtpu: 0.0.40
codegen_flags: <defaults>
</compile_context>

<pallas_src>
import jax
import jax.numpy as jnp
from jax import lax
from jax.experimental import pallas as pl
from jax.experimental.pallas import tpu as pltpu

NEG_SLOPE = 0.01   # nn.LeakyReLU default
BN_EPS = 1e-5      # nn.BatchNorm3d default


def _ceil_to(x, m):
    return ((x + m - 1) // m) * m


def _derive_vmem_limit(resident_bytes):
    """Per-generation VMEM limit derived from actual residency (review item)."""
    try:
        phys = int(pltpu.get_tpu_info().vmem_capacity_bytes)
    except Exception:
        phys = 64 * 1024 * 1024          # v7x per-TensorCore (smallest gen)
    want = 2 * int(resident_bytes) + (4 << 20)   # 2x headroom + compiler slack
    return int(max(16 << 20, min(want, phys // 2)))


def _build_down_block_kernel(N, Cin, Cmid, Cout, D, H, W, K1_pad, K2_pad):
    """Fused 2x(conv3x3x3 + BN + LeakyReLU) kernel (closure over static info).

    Activations are laid out (C, N*R) with R = D*H*W: the 128-lane axis
    carries the batch*spatial index, so every matmul / BN / LeakyReLU / store
    is lane-dense.  A 3x3x3 tap is a constant flat shift of the lane axis;
    out-of-volume (and cross-batch) positions are zeroed by a per-tap mask.
    """
    R = D * H * W
    NR = N * R
    K1 = 27 * Cin
    taps = [(kd, kh, kw) for kd in range(3) for kh in range(3) for kw in range(3)]
    deltas = [(kd - 1) * H * W + (kh - 1) * W + (kw - 1) for kd, kh, kw in taps]
    shifts = [(-d) % NR for d in deltas]

    def kernel(x_ref, masks_ref, w1_ref, b1_ref, g1_ref, be1_ref,
               w2_ref, b2_ref, g2_ref, be2_ref, o_ref, bmat_ref, h_ref):

        # Zero ONLY the never-written pad rows of the im2col scratch (their
        # weight columns are zero, but uninitialized VMEM may hold NaN/Inf and
        # the MXU would propagate 0 * NaN = NaN).  Everything else is written
        # on every call, so no full-scratch memset.
        if K1_pad > K1:
            bmat_ref[K1:K1_pad, :] = jnp.zeros((K1_pad - K1, NR), jnp.bfloat16)

        def scatter_taps(src, c_in):
            # src: (c_in, NR) f32.  Dense K packing: row = tap*c_in + ci.
            # f32 roll/mask math, bf16 only at the store (v5e-friendly); row
            # offsets are even so packed-bf16 stores stay pair-aligned.
            for t in range(27):
                shift = shifts[t]
                if shift == 0:                       # centre tap: fully valid
                    patch = src
                else:
                    m = masks_ref[t:t + 1, :]        # (1, NR) {0,1} f32
                    patch = pltpu.roll(src, shift, 1) * m
                bmat_ref[t * c_in:(t + 1) * c_in, :] = patch.astype(jnp.bfloat16)

        def conv_bn_lrelu(src, c_in, k_pad, w_ref_, b_ref_, g_ref_, be_ref_):
            # ---- im2col scatter (27 rolled+masked taps, densely packed K) ----
            scatter_taps(src, c_in)

            # ---- ONE MXU matmul for the whole batch (bf16 ops, f32 acc) ----
            a = jnp.dot(w_ref_[...], bmat_ref[0:k_pad, :],
                        preferred_element_type=jnp.float32)      # (c_out, NR)
            a = a + b_ref_[...]                                  # conv bias

            # ---- BatchNorm3d: one-pass batch stats over (N, D, H, W) ----
            inv_cnt = 1.0 / float(NR)
            mean = jnp.sum(a, axis=-1, keepdims=True) * inv_cnt
            var = jnp.maximum(
                jnp.sum(a * a, axis=-1, keepdims=True) * inv_cnt - mean * mean,
                0.0)                                             # biased var
            scale = lax.rsqrt(var + BN_EPS) * g_ref_[...]
            offset = be_ref_[...] - mean * scale

            # ---- affine BN + LeakyReLU (lane-dense f32 VPU work) ----
            y = a * scale + offset
            return jnp.where(y > 0, y, NEG_SLOPE * y)

        # Stage 1: result parked in VMEM scratch (bounds stage-1 live ranges).
        h_ref[...] = conv_bn_lrelu(x_ref[...], Cin, K1_pad,
                                   w1_ref, b1_ref, g1_ref, be1_ref)
        # Stage 2: written straight into the (lane-dense) output.
        o_ref[...] = conv_bn_lrelu(h_ref[...], Cmid, K2_pad,
                                   w2_ref, b2_ref, g2_ref, be2_ref)

    return kernel


def down_block(params, x_ncdhw):
    """Forward pass matching downBlock.forward; input/output are NCDHW."""
    N, Cin, D, H, W = x_ncdhw.shape
    R = D * H * W
    NR = N * R
    w1, w2 = params["w1"], params["w2"]
    Cmid, Cout = w1.shape[0], w2.shape[0]
    K1, K2 = 27 * Cin, 27 * Cmid
    K1_pad, K2_pad = _ceil_to(K1, 16), _ceil_to(K2, 16)
    assert K2_pad <= K1_pad, "stage-2 K must fit in the shared scratch"

    # Conv weights (PyTorch OIDHW) -> densely packed (c_out, K_pad) bf16
    # matrices; column index = tap*c_in + ci; pad columns are exact zeros.
    def to_mat(w, k_pad):
        co, ci = w.shape[0], w.shape[1]
        wt = jnp.transpose(w, (0, 2, 3, 4, 1)).reshape(co, 27 * ci)
        wt = jnp.pad(wt, ((0, 0), (0, k_pad - 27 * ci)))
        return wt.astype(jnp.bfloat16)

    w1m, w2m = to_mat(w1, K1_pad), to_mat(w2, K2_pad)

    # Per-tap validity masks over the flattened (d, h, w) index, tiled over N
    # (also kills cross-batch bleed of the lane rolls).
    r = jnp.arange(R, dtype=jnp.int32)
    d_i, h_i, w_i = r // (H * W), (r // W) % H, r % W
    rows = []
    for kd in range(3):
        for kh in range(3):
            for kw in range(3):
                ok = ((d_i + kd - 1 >= 0) & (d_i + kd - 1 < D) &
                      (h_i + kh - 1 >= 0) & (h_i + kh - 1 < H) &
                      (w_i + kw - 1 >= 0) & (w_i + kw - 1 < W))
                rows.append(ok)
    masks = jnp.tile(jnp.stack(rows, axis=0).astype(jnp.float32), (1, N))  # (27, NR)

    resident = (Cin * NR * 4 + 27 * NR * 4 + Cout * NR * 4     # x, masks, out
                + K1_pad * NR * 2 + Cmid * NR * 4              # bf16 scratch, h
                + (Cmid * K1_pad + Cout * K2_pad) * 2          # weights
                + 8 * (Cmid + Cout) * 4)                       # bias/BN params

    kernel = _build_down_block_kernel(N, Cin, Cmid, Cout, D, H, W, K1_pad, K2_pad)
    vmem = pl.BlockSpec(memory_space=pltpu.MemorySpace.VMEM)

    fn = pl.pallas_call(
        kernel,
        out_shape=jax.ShapeDtypeStruct((Cout, NR), jnp.float32),
        in_specs=[vmem] * 10,
        out_specs=vmem,
        scratch_shapes=[pltpu.VMEM((K1_pad, NR), jnp.bfloat16),   # im2col K matrix
                        pltpu.VMEM((Cmid, NR), jnp.float32)],     # stage-1 activation
        compiler_params=pltpu.CompilerParams(
            vmem_limit_bytes=_derive_vmem_limit(resident)),
    )

    def cvt(v, c):
        return v.reshape(c, 1).astype(jnp.float32)

    # Fold batch into the lane axis: (N, C, R) -> (C, N*R).  These are tiny
    # (~16-32 KB) wrapper-side transposes; all kernel work is lane-dense.
    x_cnr = jnp.transpose(x_ncdhw.reshape(N, Cin, R).astype(jnp.float32),
                          (1, 0, 2)).reshape(Cin, NR)
    y = fn(x_cnr, masks,
           w1m, cvt(params["b1"], Cmid), cvt(params["g1"], Cmid), cvt(params["be1"], Cmid),
           w2m, cvt(params["b2"], Cout), cvt(params["g2"], Cout), cvt(params["be2"], Cout))
    return jnp.transpose(y.reshape(Cout, N, R), (1, 0, 2)).reshape(N, Cout, D, H, W)


def init_down_block(key, n_input, n_out):
    """Deterministic synthetic parameters in PyTorch layouts."""
    n_mid = n_input // 2
    k1, k2, k3, k4 = jax.random.split(key, 4)
    return dict(
        w1=jax.random.normal(k1, (n_mid, n_input, 3, 3, 3), jnp.float32) * 0.1,
        b1=jax.random.normal(k2, (n_mid,), jnp.float32) * 0.1,
        g1=jnp.ones((n_mid,), jnp.float32),     # BN gamma (PyTorch default)
        be1=jnp.zeros((n_mid,), jnp.float32),   # BN beta
        w2=jax.random.normal(k3, (n_out, n_mid, 3, 3, 3), jnp.float32) * 0.1,
        b2=jax.random.normal(k4, (n_out,), jnp.float32) * 0.1,
        g2=jnp.ones((n_out,), jnp.float32),
        be2=jnp.zeros((n_out,), jnp.float32),
    )


def _down_block_reference(params, x, *, matmul_dtype=jnp.float32):
    """Pure-JAX reference.  matmul_dtype=bfloat16 mimics the kernel's MXU
    operand precision (f32 accumulation) for a tight structural check."""
    def stage(x, w, b, g, be):
        y = lax.conv_general_dilated(
            x.astype(matmul_dtype), w.astype(matmul_dtype),
            window_strides=(1, 1, 1), padding="SAME",
            dimension_numbers=("NCDHW", "OIDHW", "NCDHW"),
            preferred_element_type=jnp.float32)
        y = y + b.reshape(1, -1, 1, 1, 1)
        mean = jnp.mean(y, axis=(0, 2, 3, 4), keepdims=True)
        var = jnp.mean((y - mean) ** 2, axis=(0, 2, 3, 4), keepdims=True)
        y = (y - mean) * lax.rsqrt(var + BN_EPS)
        y = y * g.reshape(1, -1, 1, 1, 1) + be.reshape(1, -1, 1, 1, 1)
        return jnp.where(y > 0, y, NEG_SLOPE * y)

    h = stage(x, params["w1"], params["b1"], params["g1"], params["be1"])
    return stage(h, params["w2"], params["b2"], params["g2"], params["be2"])


if __name__ == "__main__":
    key = jax.random.PRNGKey(0)
    k_param, k_x = jax.random.split(key)

    n_input, n_out = 4, 8
    N, D, H, W = 2, 8, 8, 8
    x = jax.random.normal(k_x, (N, n_input, D, H, W), jnp.float32)  # NCDHW

    params = init_down_block(k_param, n_input, n_out)

    fwd = jax.jit(down_block)
    out = jax.block_until_ready(fwd(params, x))
    assert out.shape == (N, n_out, D, H, W), out.shape

    # Tight check vs. a reference using the same bf16 MXU-operand precision
    # (isolates structural correctness of the conv/BN/LeakyReLU pipeline).
    ref_bf16 = jax.block_until_ready(
        _down_block_reference(params, x, matmul_dtype=jnp.bfloat16))
    assert jnp.allclose(out, ref_bf16, atol=2e-2, rtol=2e-2), (
        float(jnp.max(jnp.abs(out - ref_bf16))))

    # Loose check vs. full-f32 module semantics (difference is bf16 operand
    # rounding only).
    ref_f32 = jax.block_until_ready(_down_block_reference(params, x))
    assert jnp.allclose(out, ref_f32, atol=1e-1, rtol=1e-1), (
        float(jnp.max(jnp.abs(out - ref_f32))))

    print("KERNEL_OK")
</pallas_src>

<mosaic_0001>
module attributes {stable_mosaic.version = 11 : i64} {
  func.func @kernel(%arg0: memref<4x1024xf32, #tpu.memory_space<vmem>>, %arg1: memref<27x1024xf32, #tpu.memory_space<vmem>>, %arg2: memref<2x112xbf16, #tpu.memory_space<vmem>>, %arg3: memref<2x1xf32, #tpu.memory_space<vmem>>, %arg4: memref<2x1xf32, #tpu.memory_space<vmem>>, %arg5: memref<2x1xf32, #tpu.memory_space<vmem>>, %arg6: memref<8x64xbf16, #tpu.memory_space<vmem>>, %arg7: memref<8x1xf32, #tpu.memory_space<vmem>>, %arg8: memref<8x1xf32, #tpu.memory_space<vmem>>, %arg9: memref<8x1xf32, #tpu.memory_space<vmem>>, %arg10: memref<8x1024xf32, #tpu.memory_space<vmem>>, %arg11: memref<112x1024xbf16, #tpu.memory_space<vmem>>, %arg12: memref<2x1024xf32, #tpu.memory_space<vmem>>) attributes {dimension_semantics = [], scalar_prefetch = 0 : i64, scratch_operands = 2 : i64, tpu.core_type = #tpu.core_type<tc>} {
    %cst = arith.constant 0.000000e+00 : bf16
    %0 = vector.broadcast %cst : bf16 to vector<4x1024xbf16>
    %c108 = arith.constant 108 : index
    %c0 = arith.constant 0 : index
    %1 = vector.load %arg11[%c108, %c0] : memref<112x1024xbf16, #tpu.memory_space<vmem>>, vector<4x1024xbf16>
    tpu.vector_store %arg11[%c108, %c0], %0 {strides = array<i32>} : memref<112x1024xbf16, #tpu.memory_space<vmem>>, vector<4x1024xbf16>,
    %c0_0 = arith.constant 0 : index
    %c0_1 = arith.constant 0 : index
    %2 = vector.load %arg0[%c0_0, %c0_1] : memref<4x1024xf32, #tpu.memory_space<vmem>>, vector<4x1024xf32>
    %c0_2 = arith.constant 0 : index
    %c0_3 = arith.constant 0 : index
    %3 = vector.load %arg1[%c0_2, %c0_3] : memref<27x1024xf32, #tpu.memory_space<vmem>>, vector<1x1024xf32>
    %c73_i32 = arith.constant 73 : i32
    %4 = tpu.dynamic_rotate %2 by %c73_i32 dim 1 : vector<4x1024xf32>, i32 -> vector<4x1024xf32>
    %5 = vector.broadcast %3 : vector<1x1024xf32> to vector<4x1024xf32>
    %6 = arith.mulf %4, %5 : vector<4x1024xf32>
    %7 = arith.truncf %6 : vector<4x1024xf32> to vector<4x1024xbf16>
    %c0_4 = arith.constant 0 : index
    %c0_5 = arith.constant 0 : index
    %8 = vector.load %arg11[%c0_4, %c0_5] : memref<112x1024xbf16, #tpu.memory_space<vmem>>, vector<4x1024xbf16>
    tpu.vector_store %arg11[%c0_4, %c0_5], %7 {strides = array<i32>} : memref<112x1024xbf16, #tpu.memory_space<vmem>>, vector<4x1024xbf16>,
    %c1 = arith.constant 1 : index
    %c0_6 = arith.constant 0 : index
    %9 = vector.load %arg1[%c1, %c0_6] : memref<27x1024xf32, #tpu.memory_space<vmem>>, vector<1x1024xf32>
    %c72_i32 = arith.constant 72 : i32
    %10 = tpu.dynamic_rotate %2 by %c72_i32 dim 1 : vector<4x1024xf32>, i32 -> vector<4x1024xf32>
    %11 = vector.broadcast %9 : vector<1x1024xf32> to vector<4x1024xf32>
    %12 = arith.mulf %10, %11 : vector<4x1024xf32>
    %13 = arith.truncf %12 : vector<4x1024xf32> to vector<4x1024xbf16>
    %c4 = arith.constant 4 : index
    %c0_7 = arith.constant 0 : index
    %14 = vector.load %arg11[%c4, %c0_7] : memref<112x1024xbf16, #tpu.memory_space<vmem>>, vector<4x1024xbf16>
    tpu.vector_store %arg11[%c4, %c0_7], %13 {strides = array<i32>} : memref<112x1024xbf16, #tpu.memory_space<vmem>>, vector<4x1024xbf16>,
    %c2 = arith.constant 2 : index
    %c0_8 = arith.constant 0 : index
    %15 = vector.load %arg1[%c2, %c0_8] : memref<27x1024xf32, #tpu.memory_space<vmem>>, vector<1x1024xf32>
    %c71_i32 = arith.constant 71 : i32
    %16 = tpu.dynamic_rotate %2 by %c71_i32 dim 1 : vector<4x1024xf32>, i32 -> vector<4x1024xf32>
    %17 = vector.broadcast %15 : vector<1x1024xf32> to vector<4x1024xf32>
    %18 = arith.mulf %16, %17 : vector<4x1024xf32>
    %19 = arith.truncf %18 : vector<4x1024xf32> to vector<4x1024xbf16>
    %c8 = arith.constant 8 : index
    %c0_9 = arith.constant 0 : index
    %20 = vector.load %arg11[%c8, %c0_9] : memref<112x1024xbf16, #tpu.memory_space<vmem>>, vector<4x1024xbf16>
    tpu.vector_store %arg11[%c8, %c0_9], %19 {strides = array<i32>} : memref<112x1024xbf16, #tpu.memory_space<vmem>>, vector<4x1024xbf16>,
    %c3 = arith.constant 3 : index
    %c0_10 = arith.constant 0 : index
    %21 = vector.load %arg1[%c3, %c0_10] : memref<27x1024xf32, #tpu.memory_space<vmem>>, vector<1x1024xf32>
    %c65_i32 = arith.constant 65 : i32
    %22 = tpu.dynamic_rotate %2 by %c65_i32 dim 1 : vector<4x1024xf32>, i32 -> vector<4x1024xf32>
    %23 = vector.broadcast %21 : vector<1x1024xf32> to vector<4x1024xf32>
    %24 = arith.mulf %22, %23 : vector<4x1024xf32>
    %25 = arith.truncf %24 : vector<4x1024xf32> to vector<4x1024xbf16>
    %c12 = arith.constant 12 : index
    %c0_11 = arith.constant 0 : index
    %26 = vector.load %arg11[%c12, %c0_11] : memref<112x1024xbf16, #tpu.memory_space<vmem>>, vector<4x1024xbf16>
    tpu.vector_store %arg11[%c12, %c0_11], %25 {strides = array<i32>} : memref<112x1024xbf16, #tpu.memory_space<vmem>>, vector<4x1024xbf16>,
    %c4_12 = arith.constant 4 : index
    %c0_13 = arith.constant 0 : index
    %27 = vector.load %arg1[%c4_12, %c0_13] : memref<27x1024xf32, #tpu.memory_space<vmem>>, vector<1x1024xf32>
    %c64_i32 = arith.constant 64 : i32
    %28 = tpu.dynamic_rotate %2 by %c64_i32 dim 1 : vector<4x1024xf32>, i32 -> vector<4x1024xf32>
    %29 = vector.broadcast %27 : vector<1x1024xf32> to vector<4x1024xf32>
    %30 = arith.mulf %28, %29 : vector<4x1024xf32>
    %31 = arith.truncf %30 : vector<4x1024xf32> to vector<4x1024xbf16>
    %c16 = arith.constant 16 : index
    %c0_14 = arith.constant 0 : index
    %32 = vector.load %arg11[%c16, %c0_14] : memref<112x1024xbf16, #tpu.memory_space<vmem>>, vector<4x1024xbf16>
    tpu.vector_store %arg11[%c16, %c0_14], %31 {strides = array<i32>} : memref<112x1024xbf16, #tpu.memory_space<vmem>>, vector<4x1024xbf16>,
    %c5 = arith.constant 5 : index
    %c0_15 = arith.constant 0 : index
    %33 = vector.load %arg1[%c5, %c0_15] : memref<27x1024xf32, #tpu.memory_space<vmem>>, vector<1x1024xf32>
    %c63_i32 = arith.constant 63 : i32
    %34 = tpu.dynamic_rotate %2 by %c63_i32 dim 1 : vector<4x1024xf32>, i32 -> vector<4x1024xf32>
    %35 = vector.broadcast %33 : vector<1x1024xf32> to vector<4x1024xf32>
    %36 = arith.mulf %34, %35 : vector<4x1024xf32>
    %37 = arith.truncf %36 : vector<4x1024xf32> to vector<4x1024xbf16>
    %c20 = arith.constant 20 : index
    %c0_16 = arith.constant 0 : index
    %38 = vector.load %arg11[%c20, %c0_16] : memref<112x1024xbf16, #tpu.memory_space<vmem>>, vector<4x1024xbf16>
    tpu.vector_store %arg11[%c20, %c0_16], %37 {strides = array<i32>} : memref<112x1024xbf16, #tpu.memory_space<vmem>>, vector<4x1024xbf16>,
    %c6 = arith.constant 6 : index
    %c0_17 = arith.constant 0 : index
    %39 = vector.load %arg1[%c6, %c0_17] : memref<27x1024xf32, #tpu.memory_space<vmem>>, vector<1x1024xf32>
    %c57_i32 = arith.constant 57 : i32
    %40 = tpu.dynamic_rotate %2 by %c57_i32 dim 1 : vector<4x1024xf32>, i32 -> vector<4x1024xf32>
    %41 = vector.broadcast %39 : vector<1x1024xf32> to vector<4x1024xf32>
    %42 = arith.mulf %40, %41 : vector<4x1024xf32>
    %43 = arith.truncf %42 : vector<4x1024xf32> to vector<4x1024xbf16>
    %c24 = arith.constant 24 : index
    %c0_18 = arith.constant 0 : index
    %44 = vector.load %arg11[%c24, %c0_18] : memref<112x1024xbf16, #tpu.memory_space<vmem>>, vector<4x1024xbf16>
    tpu.vector_store %arg11[%c24, %c0_18], %43 {strides = array<i32>} : memref<112x1024xbf16, #tpu.memory_space<vmem>>, vector<4x1024xbf16>,
    %c7 = arith.constant 7 : index
    %c0_19 = arith.constant 0 : index
    %45 = vector.load %arg1[%c7, %c0_19] : memref<27x1024xf32, #tpu.memory_space<vmem>>, vector<1x1024xf32>
    %c56_i32 = arith.constant 56 : i32
    %46 = tpu.dynamic_rotate %2 by %c56_i32 dim 1 : vector<4x1024xf32>, i32 -> vector<4x1024xf32>
    %47 = vector.broadcast %45 : vector<1x1024xf32> to vector<4x1024xf32>
    %48 = arith.mulf %46, %47 : vector<4x1024xf32>
    %49 = arith.truncf %48 : vector<4x1024xf32> to vector<4x1024xbf16>
    %c28 = arith.constant 28 : index
    %c0_20 = arith.constant 0 : index
    %50 = vector.load %arg11[%c28, %c0_20] : memref<112x1024xbf16, #tpu.memory_space<vmem>>, vector<4x1024xbf16>
    tpu.vector_store %arg11[%c28, %c0_20], %49 {strides = array<i32>} : memref<112x1024xbf16, #tpu.memory_space<vmem>>, vector<4x1024xbf16>,
    %c8_21 = arith.constant 8 : index
    %c0_22 = arith.constant 0 : index
    %51 = vector.load %arg1[%c8_21, %c0_22] : memref<27x1024xf32, #tpu.memory_space<vmem>>, vector<1x1024xf32>
    %c55_i32 = arith.constant 55 : i32
    %52 = tpu.dynamic_rotate %2 by %c55_i32 dim 1 : vector<4x1024xf32>, i32 -> vector<4x1024xf32>
    %53 = vector.broadcast %51 : vector<1x1024xf32> to vector<4x1024xf32>
    %54 = arith.mulf %52, %53 : vector<4x1024xf32>
    %55 = arith.truncf %54 : vector<4x1024xf32> to vector<4x1024xbf16>
    %c32 = arith.constant 32 : index
    %c0_23 = arith.constant 0 : index
    %56 = vector.load %arg11[%c32, %c0_23] : memref<112x1024xbf16, #tpu.memory_space<vmem>>, vector<4x1024xbf16>
    tpu.vector_store %arg11[%c32, %c0_23], %55 {strides = array<i32>} : memref<112x1024xbf16, #tpu.memory_space<vmem>>, vector<4x1024xbf16>,
    %c9 = arith.constant 9 : index
    %c0_24 = arith.constant 0 : index
    %57 = vector.load %arg1[%c9, %c0_24] : memref<27x1024xf32, #tpu.memory_space<vmem>>, vector<1x1024xf32>
    %c9_i32 = arith.constant 9 : i32
    %58 = tpu.dynamic_rotate %2 by %c9_i32 dim 1 : vector<4x1024xf32>, i32 -> vector<4x1024xf32>
    %59 = vector.broadcast %57 : vector<1x1024xf32> to vector<4x1024xf32>
    %60 = arith.mulf %58, %59 : vector<4x1024xf32>
    %61 = arith.truncf %60 : vector<4x1024xf32> to vector<4x1024xbf16>
    %c36 = arith.constant 36 : index
    %c0_25 = arith.constant 0 : index
    %62 = vector.load %arg11[%c36, %c0_25] : memref<112x1024xbf16, #tpu.memory_space<vmem>>, vector<4x1024xbf16>
    tpu.vector_store %arg11[%c36, %c0_25], %61 {strides = array<i32>} : memref<112x1024xbf16, #tpu.memory_space<vmem>>, vector<4x1024xbf16>,
    %c10 = arith.constant 10 : index
    %c0_26 = arith.constant 0 : index
    %63 = vector.load %arg1[%c10, %c0_26] : memref<27x1024xf32, #tpu.memory_space<vmem>>, vector<1x1024xf32>
    %c8_i32 = arith.constant 8 : i32
    %64 = tpu.dynamic_rotate %2 by %c8_i32 dim 1 : vector<4x1024xf32>, i32 -> vector<4x1024xf32>
    %65 = vector.broadcast %63 : vector<1x1024xf32> to vector<4x1024xf32>
    %66 = arith.mulf %64, %65 : vector<4x1024xf32>
    %67 = arith.truncf %66 : vector<4x1024xf32> to vector<4x1024xbf16>
    %c40 = arith.constant 40 : index
    %c0_27 = arith.constant 0 : index
    %68 = vector.load %arg11[%c40, %c0_27] : memref<112x1024xbf16, #tpu.memory_space<vmem>>, vector<4x1024xbf16>
    tpu.vector_store %arg11[%c40, %c0_27], %67 {strides = array<i32>} : memref<112x1024xbf16, #tpu.memory_space<vmem>>, vector<4x1024xbf16>,
    %c11 = arith.constant 11 : index
    %c0_28 = arith.constant 0 : index
    %69 = vector.load %arg1[%c11, %c0_28] : memref<27x1024xf32, #tpu.memory_space<vmem>>, vector<1x1024xf32>
    %c7_i32 = arith.constant 7 : i32
    %70 = tpu.dynamic_rotate %2 by %c7_i32 dim 1 : vector<4x1024xf32>, i32 -> vector<4x1024xf32>
    %71 = vector.broadcast %69 : vector<1x1024xf32> to vector<4x1024xf32>
    %72 = arith.mulf %70, %71 : vector<4x1024xf32>
    %73 = arith.truncf %72 : vector<4x1024xf32> to vector<4x1024xbf16>
    %c44 = arith.constant 44 : index
    %c0_29 = arith.constant 0 : index
    %74 = vector.load %arg11[%c44, %c0_29] : memref<112x1024xbf16, #tpu.memory_space<vmem>>, vector<4x1024xbf16>
    tpu.vector_store %arg11[%c44, %c0_29], %73 {strides = array<i32>} : memref<112x1024xbf16, #tpu.memory_space<vmem>>, vector<4x1024xbf16>,
    %c12_30 = arith.constant 12 : index
    %c0_31 = arith.constant 0 : index
    %75 = vector.load %arg1[%c12_30, %c0_31] : memref<27x1024xf32, #tpu.memory_space<vmem>>, vector<1x1024xf32>
    %c1_i32 = arith.constant 1 : i32
    %76 = tpu.dynamic_rotate %2 by %c1_i32 dim 1 : vector<4x1024xf32>, i32 -> vector<4x1024xf32>
    %77 = vector.broadcast %75 : vector<1x1024xf32> to vector<4x1024xf32>
    %78 = arith.mulf %76, %77 : vector<4x1024xf32>
    %79 = arith.truncf %78 : vector<4x1024xf32> to vector<4x1024xbf16>
    %c48 = arith.constant 48 : index
    %c0_32 = arith.constant 0 : index
    %80 = vector.load %arg11[%c48, %c0_32] : memref<112x1024xbf16, #tpu.memory_space<vmem>>, vector<4x1024xbf16>
    tpu.vector_store %arg11[%c48, %c0_32], %79 {strides = array<i32>} : memref<112x1024xbf16, #tpu.memory_space<vmem>>, vector<4x1024xbf16>,
    %81 = arith.truncf %2 : vector<4x1024xf32> to vector<4x1024xbf16>
    %c52 = arith.constant 52 : index
    %c0_33 = arith.constant 0 : index
    %82 = vector.load %arg11[%c52, %c0_33] : memref<112x1024xbf16, #tpu.memory_space<vmem>>, vector<4x1024xbf16>
    tpu.vector_store %arg11[%c52, %c0_33], %81 {strides = array<i32>} : memref<112x1024xbf16, #tpu.memory_space<vmem>>, vector<4x1024xbf16>,
    %c14 = arith.constant 14 : index
    %c0_34 = arith.constant 0 : index
    %83 = vector.load %arg1[%c14, %c0_34] : memref<27x1024xf32, #tpu.memory_space<vmem>>, vector<1x1024xf32>
    %c1023_i32 = arith.constant 1023 : i32
    %84 = tpu.dynamic_rotate %2 by %c1023_i32 dim 1 : vector<4x1024xf32>, i32 -> vector<4x1024xf32>
    %85 = vector.broadcast %83 : vector<1x1024xf32> to vector<4x1024xf32>
    %86 = arith.mulf %84, %85 : vector<4x1024xf32>
    %87 = arith.truncf %86 : vector<4x1024xf32> to vector<4x1024xbf16>
    %c56 = arith.constant 56 : index
    %c0_35 = arith.constant 0 : index
    %88 = vector.load %arg11[%c56, %c0_35] : memref<112x1024xbf16, #tpu.memory_space<vmem>>, vector<4x1024xbf16>
    tpu.vector_store %arg11[%c56, %c0_35], %87 {strides = array<i32>} : memref<112x1024xbf16, #tpu.memory_space<vmem>>, vector<4x1024xbf16>,
    %c15 = arith.constant 15 : index
    %c0_36 = arith.constant 0 : index
    %89 = vector.load %arg1[%c15, %c0_36] : memref<27x1024xf32, #tpu.memory_space<vmem>>, vector<1x1024xf32>
    %c1017_i32 = arith.constant 1017 : i32
    %90 = tpu.dynamic_rotate %2 by %c1017_i32 dim 1 : vector<4x1024xf32>, i32 -> vector<4x1024xf32>
    %91 = vector.broadcast %89 : vector<1x1024xf32> to vector<4x1024xf32>
    %92 = arith.mulf %90, %91 : vector<4x1024xf32>
    %93 = arith.truncf %92 : vector<4x1024xf32> to vector<4x1024xbf16>
    %c60 = arith.constant 60 : index
    %c0_37 = arith.constant 0 : index
    %94 = vector.load %arg11[%c60, %c0_37] : memref<112x1024xbf16, #tpu.memory_space<vmem>>, vector<4x1024xbf16>
    tpu.vector_store %arg11[%c60, %c0_37], %93 {strides = array<i32>} : memref<112x1024xbf16, #tpu.memory_space<vmem>>, vector<4x1024xbf16>,
    %c16_38 = arith.constant 16 : index
    %c0_39 = arith.constant 0 : index
    %95 = vector.load %arg1[%c16_38, %c0_39] : memref<27x1024xf32, #tpu.memory_space<vmem>>, vector<1x1024xf32>
    %c1016_i32 = arith.constant 1016 : i32
    %96 = tpu.dynamic_rotate %2 by %c1016_i32 dim 1 : vector<4x1024xf32>, i32 -> vector<4x1024xf32>
    %97 = vector.broadcast %95 : vector<1x1024xf32> to vector<4x1024xf32>
    %98 = arith.mulf %96, %97 : vector<4x1024xf32>
    %99 = arith.truncf %98 : vector<4x1024xf32> to vector<4x1024xbf16>
    %c64 = arith.constant 64 : index
    %c0_40 = arith.constant 0 : index
    %100 = vector.load %arg11[%c64, %c0_40] : memref<112x1024xbf16, #tpu.memory_space<vmem>>, vector<4x1024xbf16>
    tpu.vector_store %arg11[%c64, %c0_40], %99 {strides = array<i32>} : memref<112x1024xbf16, #tpu.memory_space<vmem>>, vector<4x1024xbf16>,
    %c17 = arith.constant 17 : index
    %c0_41 = arith.constant 0 : index
    %101 = vector.load %arg1[%c17, %c0_41] : memref<27x1024xf32, #tpu.memory_space<vmem>>, vector<1x1024xf32>
    %c1015_i32 = arith.constant 1015 : i32
    %102 = tpu.dynamic_rotate %2 by %c1015_i32 dim 1 : vector<4x1024xf32>, i32 -> vector<4x1024xf32>
    %103 = vector.broadcast %101 : vector<1x1024xf32> to vector<4x1024xf32>
    %104 = arith.mulf %102, %103 : vector<4x1024xf32>
    %105 = arith.truncf %104 : vector<4x1024xf32> to vector<4x1024xbf16>
    %c68 = arith.constant 68 : index
    %c0_42 = arith.constant 0 : index
    %106 = vector.load %arg11[%c68, %c0_42] : memref<112x1024xbf16, #tpu.memory_space<vmem>>, vector<4x1024xbf16>
    tpu.vector_store %arg11[%c68, %c0_42], %105 {strides = array<i32>} : memref<112x1024xbf16, #tpu.memory_space<vmem>>, vector<4x1024xbf16>,
    %c18 = arith.constant 18 : index
    %c0_43 = arith.constant 0 : index
    %107 = vector.load %arg1[%c18, %c0_43] : memref<27x1024xf32, #tpu.memory_space<vmem>>, vector<1x1024xf32>
    %c969_i32 = arith.constant 969 : i32
    %108 = tpu.dynamic_rotate %2 by %c969_i32 dim 1 : vector<4x1024xf32>, i32 -> vector<4x1024xf32>
    %109 = vector.broadcast %107 : vector<1x1024xf32> to vector<4x1024xf32>
    %110 = arith.mulf %108, %109 : vector<4x1024xf32>
    %111 = arith.truncf %110 : vector<4x1024xf32> to vector<4x1024xbf16>
    %c72 = arith.constant 72 : index
    %c0_44 = arith.constant 0 : index
    %112 = vector.load %arg11[%c72, %c0_44] : memref<112x1024xbf16, #tpu.memory_space<vmem>>, vector<4x1024xbf16>
    tpu.vector_store %arg11[%c72, %c0_44], %111 {strides = array<i32>} : memref<112x1024xbf16, #tpu.memory_space<vmem>>, vector<4x1024xbf16>,
    %c19 = arith.constant 19 : index
    %c0_45 = arith.constant 0 : index
    %113 = vector.load %arg1[%c19, %c0_45] : memref<27x1024xf32, #tpu.memory_space<vmem>>, vector<1x1024xf32>
    %c968_i32 = arith.constant 968 : i32
    %114 = tpu.dynamic_rotate %2 by %c968_i32 dim 1 : vector<4x1024xf32>, i32 -> vector<4x1024xf32>
    %115 = vector.broadcast %113 : vector<1x1024xf32> to vector<4x1024xf32>
    %116 = arith.mulf %114, %115 : vector<4x1024xf32>
    %117 = arith.truncf %116 : vector<4x1024xf32> to vector<4x1024xbf16>
    %c76 = arith.constant 76 : index
    %c0_46 = arith.constant 0 : index
    %118 = vector.load %arg11[%c76, %c0_46] : memref<112x1024xbf16, #tpu.memory_space<vmem>>, vector<4x1024xbf16>
    tpu.vector_store %arg11[%c76, %c0_46], %117 {strides = array<i32>} : memref<112x1024xbf16, #tpu.memory_space<vmem>>, vector<4x1024xbf16>,
    %c20_47 = arith.constant 20 : index
    %c0_48 = arith.constant 0 : index
    %119 = vector.load %arg1[%c20_47, %c0_48] : memref<27x1024xf32, #tpu.memory_space<vmem>>, vector<1x1024xf32>
    %c967_i32 = arith.constant 967 : i32
    %120 = tpu.dynamic_rotate %2 by %c967_i32 dim 1 : vector<4x1024xf32>, i32 -> vector<4x1024xf32>
    %121 = vector.broadcast %119 : vector<1x1024xf32> to vector<4x1024xf32>
    %122 = arith.mulf %120, %121 : vector<4x1024xf32>
    %123 = arith.truncf %122 : vector<4x1024xf32> to vector<4x1024xbf16>
    %c80 = arith.constant 80 : index
    %c0_49 = arith.constant 0 : index
    %124 = vector.load %arg11[%c80, %c0_49] : memref<112x1024xbf16, #tpu.memory_space<vmem>>, vector<4x1024xbf16>
    tpu.vector_store %arg11[%c80, %c0_49], %123 {strides = array<i32>} : memref<112x1024xbf16, #tpu.memory_space<vmem>>, vector<4x1024xbf16>,
    %c21 = arith.constant 21 : index
    %c0_50 = arith.constant 0 : index
    %125 = vector.load %arg1[%c21, %c0_50] : memref<27x1024xf32, #tpu.memory_space<vmem>>, vector<1x1024xf32>
    %c961_i32 = arith.constant 961 : i32
    %126 = tpu.dynamic_rotate %2 by %c961_i32 dim 1 : vector<4x1024xf32>, i32 -> vector<4x1024xf32>
    %127 = vector.broadcast %125 : vector<1x1024xf32> to vector<4x1024xf32>
    %128 = arith.mulf %126, %127 : vector<4x1024xf32>
    %129 = arith.truncf %128 : vector<4x1024xf32> to vector<4x1024xbf16>
    %c84 = arith.constant 84 : index
    %c0_51 = arith.constant 0 : index
    %130 = vector.load %arg11[%c84, %c0_51] : memref<112x1024xbf16, #tpu.memory_space<vmem>>, vector<4x1024xbf16>
    tpu.vector_store %arg11[%c84, %c0_51], %129 {strides = array<i32>} : memref<112x1024xbf16, #tpu.memory_space<vmem>>, vector<4x1024xbf16>,
    %c22 = arith.constant 22 : index
    %c0_52 = arith.constant 0 : index
    %131 = vector.load %arg1[%c22, %c0_52] : memref<27x1024xf32, #tpu.memory_space<vmem>>, vector<1x1024xf32>
    %c960_i32 = arith.constant 960 : i32
    %132 = tpu.dynamic_rotate %2 by %c960_i32 dim 1 : vector<4x1024xf32>, i32 -> vector<4x1024xf32>
    %133 = vector.broadcast %131 : vector<1x1024xf32> to vector<4x1024xf32>
    %134 = arith.mulf %132, %133 : vector<4x1024xf32>
    %135 = arith.truncf %134 : vector<4x1024xf32> to vector<4x1024xbf16>
    %c88 = arith.constant 88 : index
    %c0_53 = arith.constant 0 : index
    %136 = vector.load %arg11[%c88, %c0_53] : memref<112x1024xbf16, #tpu.memory_space<vmem>>, vector<4x1024xbf16>
    tpu.vector_store %arg11[%c88, %c0_53], %135 {strides = array<i32>} : memref<112x1024xbf16, #tpu.memory_space<vmem>>, vector<4x1024xbf16>,
    %c23 = arith.constant 23 : index
    %c0_54 = arith.constant 0 : index
    %137 = vector.load %arg1[%c23, %c0_54] : memref<27x1024xf32, #tpu.memory_space<vmem>>, vector<1x1024xf32>
    %c959_i32 = arith.constant 959 : i32
    %138 = tpu.dynamic_rotate %2 by %c959_i32 dim 1 : vector<4x1024xf32>, i32 -> vector<4x1024xf32>
    %139 = vector.broadcast %137 : vector<1x1024xf32> to vector<4x1024xf32>
    %140 = arith.mulf %138, %139 : vector<4x1024xf32>
    %141 = arith.truncf %140 : vector<4x1024xf32> to vector<4x1024xbf16>
    %c92 = arith.constant 92 : index
    %c0_55 = arith.constant 0 : index
    %142 = vector.load %arg11[%c92, %c0_55] : memref<112x1024xbf16, #tpu.memory_space<vmem>>, vector<4x1024xbf16>
    tpu.vector_store %arg11[%c92, %c0_55], %141 {strides = array<i32>} : memref<112x1024xbf16, #tpu.memory_space<vmem>>, vector<4x1024xbf16>,
    %c24_56 = arith.constant 24 : index
    %c0_57 = arith.constant 0 : index
    %143 = vector.load %arg1[%c24_56, %c0_57] : memref<27x1024xf32, #tpu.memory_space<vmem>>, vector<1x1024xf32>
    %c953_i32 = arith.constant 953 : i32
    %144 = tpu.dynamic_rotate %2 by %c953_i32 dim 1 : vector<4x1024xf32>, i32 -> vector<4x1024xf32>
    %145 = vector.broadcast %143 : vector<1x1024xf32> to vector<4x1024xf32>
    %146 = arith.mulf %144, %145 : vector<4x1024xf32>
    %147 = arith.truncf %146 : vector<4x1024xf32> to vector<4x1024xbf16>
    %c96 = arith.constant 96 : index
    %c0_58 = arith.constant 0 : index
    %148 = vector.load %arg11[%c96, %c0_58] : memref<112x1024xbf16, #tpu.memory_space<vmem>>, vector<4x1024xbf16>
    tpu.vector_store %arg11[%c96, %c0_58], %147 {strides = array<i32>} : memref<112x1024xbf16, #tpu.memory_space<vmem>>, vector<4x1024xbf16>,
    %c25 = arith.constant 25 : index
    %c0_59 = arith.constant 0 : index
    %149 = vector.load %arg1[%c25, %c0_59] : memref<27x1024xf32, #tpu.memory_space<vmem>>, vector<1x1024xf32>
    %c952_i32 = arith.constant 952 : i32
    %150 = tpu.dynamic_rotate %2 by %c952_i32 dim 1 : vector<4x1024xf32>, i32 -> vector<4x1024xf32>
    %151 = vector.broadcast %149 : vector<1x1024xf32> to vector<4x1024xf32>
    %152 = arith.mulf %150, %151 : vector<4x1024xf32>
    %153 = arith.truncf %152 : vector<4x1024xf32> to vector<4x1024xbf16>
    %c100 = arith.constant 100 : index
    %c0_60 = arith.constant 0 : index
    %154 = vector.load %arg11[%c100, %c0_60] : memref<112x1024xbf16, #tpu.memory_space<vmem>>, vector<4x1024xbf16>
    tpu.vector_store %arg11[%c100, %c0_60], %153 {strides = array<i32>} : memref<112x1024xbf16, #tpu.memory_space<vmem>>, vector<4x1024xbf16>,
    %c26 = arith.constant 26 : index
    %c0_61 = arith.constant 0 : index
    %155 = vector.load %arg1[%c26, %c0_61] : memref<27x1024xf32, #tpu.memory_space<vmem>>, vector<1x1024xf32>
    %c951_i32 = arith.constant 951 : i32
    %156 = tpu.dynamic_rotate %2 by %c951_i32 dim 1 : vector<4x1024xf32>, i32 -> vector<4x1024xf32>
    %157 = vector.broadcast %155 : vector<1x1024xf32> to vector<4x1024xf32>
    %158 = arith.mulf %156, %157 : vector<4x1024xf32>
    %159 = arith.truncf %158 : vector<4x1024xf32> to vector<4x1024xbf16>
    %c104 = arith.constant 104 : index
    %c0_62 = arith.constant 0 : index
    %160 = vector.load %arg11[%c104, %c0_62] : memref<112x1024xbf16, #tpu.memory_space<vmem>>, vector<4x1024xbf16>
    tpu.vector_store %arg11[%c104, %c0_62], %159 {strides = array<i32>} : memref<112x1024xbf16, #tpu.memory_space<vmem>>, vector<4x1024xbf16>,
    %c0_63 = arith.constant 0 : index
    %c0_64 = arith.constant 0 : index
    %161 = vector.load %arg2[%c0_63, %c0_64] : memref<2x112xbf16, #tpu.memory_space<vmem>>, vector<2x112xbf16>
    %c0_65 = arith.constant 0 : index
    %c0_66 = arith.constant 0 : index
    %162 = vector.load %arg11[%c0_65, %c0_66] : memref<112x1024xbf16, #tpu.memory_space<vmem>>, vector<112x1024xbf16>
    %cst_67 = arith.constant dense<0.000000e+00> : vector<2x1024xf32>
    %163 = tpu.matmul %161, %162, %cst_67 {dimension_numbers = #tpu.dot_dimension_numbers<[1], [0], [0], [1], [0, 0, 1, 1], [], []>} : vector<2x112xbf16>, vector<112x1024xbf16>, vector<2x1024xf32> -> vector<2x1024xf32>
    %c0_68 = arith.constant 0 : index
    %c0_69 = arith.constant 0 : index
    %164 = vector.load %arg3[%c0_68, %c0_69] : memref<2x1xf32, #tpu.memory_space<vmem>>, vector<2x1xf32>
    %165 = vector.broadcast %164 : vector<2x1xf32> to vector<2x1024xf32>
    %166 = arith.addf %163, %165 : vector<2x1024xf32>
    %cst_70 = arith.constant dense<0.000000e+00> : vector<2xf32>
    %167 = vector.multi_reduction <add>, %166, %cst_70 [1] : vector<2x1024xf32> to vector<2xf32>
    %168 = vector.shape_cast %167 : vector<2xf32> to vector<2x1xf32>
    %cst_71 = arith.constant 9.765625E-4 : f32
    %169 = vector.broadcast %cst_71 : f32 to vector<2x1xf32>
    %170 = arith.mulf %168, %169 : vector<2x1xf32>
    %171 = arith.mulf %166, %166 : vector<2x1024xf32>
    %cst_72 = arith.constant dense<0.000000e+00> : vector<2xf32>
    %172 = vector.multi_reduction <add>, %171, %cst_72 [1] : vector<2x1024xf32> to vector<2xf32>
    %173 = vector.shape_cast %172 : vector<2xf32> to vector<2x1xf32>
    %cst_73 = arith.constant 9.765625E-4 : f32
    %174 = vector.broadcast %cst_73 : f32 to vector<2x1xf32>
    %175 = arith.mulf %173, %174 : vector<2x1xf32>
    %176 = arith.mulf %170, %170 : vector<2x1xf32>
    %177 = arith.subf %175, %176 : vector<2x1xf32>
    %cst_74 = arith.constant 0.000000e+00 : f32
    %178 = vector.broadcast %cst_74 : f32 to vector<2x1xf32>
    %179 = arith.maximumf %177, %178 : vector<2x1xf32>
    %cst_75 = arith.constant 9.99999974E-6 : f32
    %180 = vector.broadcast %cst_75 : f32 to vector<2x1xf32>
    %181 = arith.addf %179, %180 : vector<2x1xf32>
    %182 = math.rsqrt %181 : vector<2x1xf32>
    %c0_76 = arith.constant 0 : index
    %c0_77 = arith.constant 0 : index
    %183 = vector.load %arg4[%c0_76, %c0_77] : memref<2x1xf32, #tpu.memory_space<vmem>>, vector<2x1xf32>
    %184 = arith.mulf %182, %183 : vector<2x1xf32>
    %c0_78 = arith.constant 0 : index
    %c0_79 = arith.constant 0 : index
    %185 = vector.load %arg5[%c0_78, %c0_79] : memref<2x1xf32, #tpu.memory_space<vmem>>, vector<2x1xf32>
    %186 = arith.mulf %170, %184 : vector<2x1xf32>
    %187 = arith.subf %185, %186 : vector<2x1xf32>
    %188 = vector.broadcast %184 : vector<2x1xf32> to vector<2x1024xf32>
    %189 = arith.mulf %166, %188 : vector<2x1024xf32>
    %190 = vector.broadcast %187 : vector<2x1xf32> to vector<2x1024xf32>
    %191 = arith.addf %189, %190 : vector<2x1024xf32>
    %cst_80 = arith.constant 0.000000e+00 : f32
    %192 = vector.broadcast %cst_80 : f32 to vector<2x1024xf32>
    %193 = arith.cmpf ogt, %191, %192 : vector<2x1024xf32>
    %cst_81 = arith.constant 0.00999999977 : f32
    %194 = vector.broadcast %cst_81 : f32 to vector<2x1024xf32>
    %195 = arith.mulf %194, %191 : vector<2x1024xf32>
    %196 = arith.select %193, %191, %195 : vector<2x1024xi1>, vector<2x1024xf32>
    %c0_82 = arith.constant 0 : index
    %c0_83 = arith.constant 0 : index
    %197 = vector.load %arg12[%c0_82, %c0_83] : memref<2x1024xf32, #tpu.memory_space<vmem>>, vector<2x1024xf32>
    tpu.vector_store %arg12[%c0_82, %c0_83], %196 {strides = array<i32>} : memref<2x1024xf32, #tpu.memory_space<vmem>>, vector<2x1024xf32>,
    %c0_84 = arith.constant 0 : index
    %c0_85 = arith.constant 0 : index
    %198 = vector.load %arg12[%c0_84, %c0_85] : memref<2x1024xf32, #tpu.memory_space<vmem>>, vector<2x1024xf32>
    %c0_86 = arith.constant 0 : index
    %c0_87 = arith.constant 0 : index
    %199 = vector.load %arg1[%c0_86, %c0_87] : memref<27x1024xf32, #tpu.memory_space<vmem>>, vector<1x1024xf32>
    %c73_i32_88 = arith.constant 73 : i32
    %200 = tpu.dynamic_rotate %198 by %c73_i32_88 dim 1 : vector<2x1024xf32>, i32 -> vector<2x1024xf32>
    %201 = vector.broadcast %199 : vector<1x1024xf32> to vector<2x1024xf32>
    %202 = arith.mulf %200, %201 : vector<2x1024xf32>
    %203 = arith.truncf %202 : vector<2x1024xf32> to vector<2x1024xbf16>
    %c0_89 = arith.constant 0 : index
    %c0_90 = arith.constant 0 : index
    %204 = vector.load %arg11[%c0_89, %c0_90] : memref<112x1024xbf16, #tpu.memory_space<vmem>>, vector<2x1024xbf16>
    tpu.vector_store %arg11[%c0_89, %c0_90], %203 {strides = array<i32>} : memref<112x1024xbf16, #tpu.memory_space<vmem>>, vector<2x1024xbf16>,
    %c1_91 = arith.constant 1 : index
    %c0_92 = arith.constant 0 : index
    %205 = vector.load %arg1[%c1_91, %c0_92] : memref<27x1024xf32, #tpu.memory_space<vmem>>, vector<1x1024xf32>
    %c72_i32_93 = arith.constant 72 : i32
    %206 = tpu.dynamic_rotate %198 by %c72_i32_93 dim 1 : vector<2x1024xf32>, i32 -> vector<2x1024xf32>
    %207 = vector.broadcast %205 : vector<1x1024xf32> to vector<2x1024xf32>
    %208 = arith.mulf %206, %207 : vector<2x1024xf32>
    %209 = arith.truncf %208 : vector<2x1024xf32> to vector<2x1024xbf16>
    %c2_94 = arith.constant 2 : index
    %c0_95 = arith.constant 0 : index
    %210 = vector.load %arg11[%c2_94, %c0_95] : memref<112x1024xbf16, #tpu.memory_space<vmem>>, vector<2x1024xbf16>
    tpu.vector_store %arg11[%c2_94, %c0_95], %209 {strides = array<i32>} : memref<112x1024xbf16, #tpu.memory_space<vmem>>, vector<2x1024xbf16>,
    %c2_96 = arith.constant 2 : index
    %c0_97 = arith.constant 0 : index
    %211 = vector.load %arg1[%c2_96, %c0_97] : memref<27x1024xf32, #tpu.memory_space<vmem>>, vector<1x1024xf32>
    %c71_i32_98 = arith.constant 71 : i32
    %212 = tpu.dynamic_rotate %198 by %c71_i32_98 dim 1 : vector<2x1024xf32>, i32 -> vector<2x1024xf32>
    %213 = vector.broadcast %211 : vector<1x1024xf32> to vector<2x1024xf32>
    %214 = arith.mulf %212, %213 : vector<2x1024xf32>
    %215 = arith.truncf %214 : vector<2x1024xf32> to vector<2x1024xbf16>
    %c4_99 = arith.constant 4 : index
    %c0_100 = arith.constant 0 : index
    %216 = vector.load %arg11[%c4_99, %c0_100] : memref<112x1024xbf16, #tpu.memory_space<vmem>>, vector<2x1024xbf16>
    tpu.vector_store %arg11[%c4_99, %c0_100], %215 {strides = array<i32>} : memref<112x1024xbf16, #tpu.memory_space<vmem>>, vector<2x1024xbf16>,
    %c3_101 = arith.constant 3 : index
    %c0_102 = arith.constant 0 : index
    %217 = vector.load %arg1[%c3_101, %c0_102] : memref<27x1024xf32, #tpu.memory_space<vmem>>, vector<1x1024xf32>
    %c65_i32_103 = arith.constant 65 : i32
    %218 = tpu.dynamic_rotate %198 by %c65_i32_103 dim 1 : vector<2x1024xf32>, i32 -> vector<2x1024xf32>
    %219 = vector.broadcast %217 : vector<1x1024xf32> to vector<2x1024xf32>
    %220 = arith.mulf %218, %219 : vector<2x1024xf32>
    %221 = arith.truncf %220 : vector<2x1024xf32> to vector<2x1024xbf16>
    %c6_104 = arith.constant 6 : index
    %c0_105 = arith.constant 0 : index
    %222 = vector.load %arg11[%c6_104, %c0_105] : memref<112x1024xbf16, #tpu.memory_space<vmem>>, vector<2x1024xbf16>
    tpu.vector_store %arg11[%c6_104, %c0_105], %221 {strides = array<i32>} : memref<112x1024xbf16, #tpu.memory_space<vmem>>, vector<2x1024xbf16>,
    %c4_106 = arith.constant 4 : index
    %c0_107 = arith.constant 0 : index
    %223 = vector.load %arg1[%c4_106, %c0_107] : memref<27x1024xf32, #tpu.memory_space<vmem>>, vector<1x1024xf32>
    %c64_i32_108 = arith.constant 64 : i32
    %224 = tpu.dynamic_rotate %198 by %c64_i32_108 dim 1 : vector<2x1024xf32>, i32 -> vector<2x1024xf32>
    %225 = vector.broadcast %223 : vector<1x1024xf32> to vector<2x1024xf32>
    %226 = arith.mulf %224, %225 : vector<2x1024xf32>
    %227 = arith.truncf %226 : vector<2x1024xf32> to vector<2x1024xbf16>
    %c8_109 = arith.constant 8 : index
    %c0_110 = arith.constant 0 : index
    %228 = vector.load %arg11[%c8_109, %c0_110] : memref<112x1024xbf16, #tpu.memory_space<vmem>>, vector<2x1024xbf16>
    tpu.vector_store %arg11[%c8_109, %c0_110], %227 {strides = array<i32>} : memref<112x1024xbf16, #tpu.memory_space<vmem>>, vector<2x1024xbf16>,
    %c5_111 = arith.constant 5 : index
    %c0_112 = arith.constant 0 : index
    %229 = vector.load %arg1[%c5_111, %c0_112] : memref<27x1024xf32, #tpu.memory_space<vmem>>, vector<1x1024xf32>
    %c63_i32_113 = arith.constant 63 : i32
    %230 = tpu.dynamic_rotate %198 by %c63_i32_113 dim 1 : vector<2x1024xf32>, i32 -> vector<2x1024xf32>
    %231 = vector.broadcast %229 : vector<1x1024xf32> to vector<2x1024xf32>
    %232 = arith.mulf %230, %231 : vector<2x1024xf32>
    %233 = arith.truncf %232 : vector<2x1024xf32> to vector<2x1024xbf16>
    %c10_114 = arith.constant 10 : index
    %c0_115 = arith.constant 0 : index
    %234 = vector.load %arg11[%c10_114, %c0_115] : memref<112x1024xbf16, #tpu.memory_space<vmem>>, vector<2x1024xbf16>
    tpu.vector_store %arg11[%c10_114, %c0_115], %233 {strides = array<i32>} : memref<112x1024xbf16, #tpu.memory_space<vmem>>, vector<2x1024xbf16>,
    %c6_116 = arith.constant 6 : index
    %c0_117 = arith.constant 0 : index
    %235 = vector.load %arg1[%c6_116, %c0_117] : memref<27x1024xf32, #tpu.memory_space<vmem>>, vector<1x1024xf32>
    %c57_i32_118 = arith.constant 57 : i32
    %236 = tpu.dynamic_rotate %198 by %c57_i32_118 dim 1 : vector<2x1024xf32>, i32 -> vector<2x1024xf32>
    %237 = vector.broadcast %235 : vector<1x1024xf32> to vector<2x1024xf32>
    %238 = arith.mulf %236, %237 : vector<2x1024xf32>
    %239 = arith.truncf %238 : vector<2x1024xf32> to vector<2x1024xbf16>
    %c12_119 = arith.constant 12 : index
    %c0_120 = arith.constant 0 : index
    %240 = vector.load %arg11[%c12_119, %c0_120] : memref<112x1024xbf16, #tpu.memory_space<vmem>>, vector<2x1024xbf16>
    tpu.vector_store %arg11[%c12_119, %c0_120], %239 {strides = array<i32>} : memref<112x1024xbf16, #tpu.memory_space<vmem>>, vector<2x1024xbf16>,
    %c7_121 = arith.constant 7 : index
    %c0_122 = arith.constant 0 : index
    %241 = vector.load %arg1[%c7_121, %c0_122] : memref<27x1024xf32, #tpu.memory_space<vmem>>, vector<1x1024xf32>
    %c56_i32_123 = arith.constant 56 : i32
    %242 = tpu.dynamic_rotate %198 by %c56_i32_123 dim 1 : vector<2x1024xf32>, i32 -> vector<2x1024xf32>
    %243 = vector.broadcast %241 : vector<1x1024xf32> to vector<2x1024xf32>
    %244 = arith.mulf %242, %243 : vector<2x1024xf32>
    %245 = arith.truncf %244 : vector<2x1024xf32> to vector<2x1024xbf16>
    %c14_124 = arith.constant 14 : index
    %c0_125 = arith.constant 0 : index
    %246 = vector.load %arg11[%c14_124, %c0_125] : memref<112x1024xbf16, #tpu.memory_space<vmem>>, vector<2x1024xbf16>
    tpu.vector_store %arg11[%c14_124, %c0_125], %245 {strides = array<i32>} : memref<112x1024xbf16, #tpu.memory_space<vmem>>, vector<2x1024xbf16>,
    %c8_126 = arith.constant 8 : index
    %c0_127 = arith.constant 0 : index
    %247 = vector.load %arg1[%c8_126, %c0_127] : memref<27x1024xf32, #tpu.memory_space<vmem>>, vector<1x1024xf32>
    %c55_i32_128 = arith.constant 55 : i32
    %248 = tpu.dynamic_rotate %198 by %c55_i32_128 dim 1 : vector<2x1024xf32>, i32 -> vector<2x1024xf32>
    %249 = vector.broadcast %247 : vector<1x1024xf32> to vector<2x1024xf32>
    %250 = arith.mulf %248, %249 : vector<2x1024xf32>
    %251 = arith.truncf %250 : vector<2x1024xf32> to vector<2x1024xbf16>
    %c16_129 = arith.constant 16 : index
    %c0_130 = arith.constant 0 : index
    %252 = vector.load %arg11[%c16_129, %c0_130] : memref<112x1024xbf16, #tpu.memory_space<vmem>>, vector<2x1024xbf16>
    tpu.vector_store %arg11[%c16_129, %c0_130], %251 {strides = array<i32>} : memref<112x1024xbf16, #tpu.memory_space<vmem>>, vector<2x1024xbf16>,
    %c9_131 = arith.constant 9 : index
    %c0_132 = arith.constant 0 : index
    %253 = vector.load %arg1[%c9_131, %c0_132] : memref<27x1024xf32, #tpu.memory_space<vmem>>, vector<1x1024xf32>
    %c9_i32_133 = arith.constant 9 : i32
    %254 = tpu.dynamic_rotate %198 by %c9_i32_133 dim 1 : vector<2x1024xf32>, i32 -> vector<2x1024xf32>
    %255 = vector.broadcast %253 : vector<1x1024xf32> to vector<2x1024xf32>
    %256 = arith.mulf %254, %255 : vector<2x1024xf32>
    %257 = arith.truncf %256 : vector<2x1024xf32> to vector<2x1024xbf16>
    %c18_134 = arith.constant 18 : index
    %c0_135 = arith.constant 0 : index
    %258 = vector.load %arg11[%c18_134, %c0_135] : memref<112x1024xbf16, #tpu.memory_space<vmem>>, vector<2x1024xbf16>
    tpu.vector_store %arg11[%c18_134, %c0_135], %257 {strides = array<i32>} : memref<112x1024xbf16, #tpu.memory_space<vmem>>, vector<2x1024xbf16>,
    %c10_136 = arith.constant 10 : index
    %c0_137 = arith.constant 0 : index
    %259 = vector.load %arg1[%c10_136, %c0_137] : memref<27x1024xf32, #tpu.memory_space<vmem>>, vector<1x1024xf32>
    %c8_i32_138 = arith.constant 8 : i32
    %260 = tpu.dynamic_rotate %198 by %c8_i32_138 dim 1 : vector<2x1024xf32>, i32 -> vector<2x1024xf32>
    %261 = vector.broadcast %259 : vector<1x1024xf32> to vector<2x1024xf32>
    %262 = arith.mulf %260, %261 : vector<2x1024xf32>
    %263 = arith.truncf %262 : vector<2x1024xf32> to vector<2x1024xbf16>
    %c20_139 = arith.constant 20 : index
    %c0_140 = arith.constant 0 : index
    %264 = vector.load %arg11[%c20_139, %c0_140] : memref<112x1024xbf16, #tpu.memory_space<vmem>>, vector<2x1024xbf16>
    tpu.vector_store %arg11[%c20_139, %c0_140], %263 {strides = array<i32>} : memref<112x1024xbf16, #tpu.memory_space<vmem>>, vector<2x1024xbf16>,
    %c11_141 = arith.constant 11 : index
    %c0_142 = arith.constant 0 : index
    %265 = vector.load %arg1[%c11_141, %c0_142] : memref<27x1024xf32, #tpu.memory_space<vmem>>, vector<1x1024xf32>
    %c7_i32_143 = arith.constant 7 : i32
    %266 = tpu.dynamic_rotate %198 by %c7_i32_143 dim 1 : vector<2x1024xf32>, i32 -> vector<2x1024xf32>
    %267 = vector.broadcast %265 : vector<1x1024xf32> to vector<2x1024xf32>
    %268 = arith.mulf %266, %267 : vector<2x1024xf32>
    %269 = arith.truncf %268 : vector<2x1024xf32> to vector<2x1024xbf16>
    %c22_144 = arith.constant 22 : index
    %c0_145 = arith.constant 0 : index
    %270 = vector.load %arg11[%c22_144, %c0_145] : memref<112x1024xbf16, #tpu.memory_space<vmem>>, vector<2x1024xbf16>
    tpu.vector_store %arg11[%c22_144, %c0_145], %269 {strides = array<i32>} : memref<112x1024xbf16, #tpu.memory_space<vmem>>, vector<2x1024xbf16>,
    %c12_146 = arith.constant 12 : index
    %c0_147 = arith.constant 0 : index
    %271 = vector.load %arg1[%c12_146, %c0_147] : memref<27x1024xf32, #tpu.memory_space<vmem>>, vector<1x1024xf32>
    %c1_i32_148 = arith.constant 1 : i32
    %272 = tpu.dynamic_rotate %198 by %c1_i32_148 dim 1 : vector<2x1024xf32>, i32 -> vector<2x1024xf32>
    %273 = vector.broadcast %271 : vector<1x1024xf32> to vector<2x1024xf32>
    %274 = arith.mulf %272, %273 : vector<2x1024xf32>
    %275 = arith.truncf %274 : vector<2x1024xf32> to vector<2x1024xbf16>
    %c24_149 = arith.constant 24 : index
    %c0_150 = arith.constant 0 : index
    %276 = vector.load %arg11[%c24_149, %c0_150] : memref<112x1024xbf16, #tpu.memory_space<vmem>>, vector<2x1024xbf16>
    tpu.vector_store %arg11[%c24_149, %c0_150], %275 {strides = array<i32>} : memref<112x1024xbf16, #tpu.memory_space<vmem>>, vector<2x1024xbf16>,
    %277 = arith.truncf %198 : vector<2x1024xf32> to vector<2x1024xbf16>
    %c26_151 = arith.constant 26 : index
    %c0_152 = arith.constant 0 : index
    %278 = vector.load %arg11[%c26_151, %c0_152] : memref<112x1024xbf16, #tpu.memory_space<vmem>>, vector<2x1024xbf16>
    tpu.vector_store %arg11[%c26_151, %c0_152], %277 {strides = array<i32>} : memref<112x1024xbf16, #tpu.memory_space<vmem>>, vector<2x1024xbf16>,
    %c14_153 = arith.constant 14 : index
    %c0_154 = arith.constant 0 : index
    %279 = vector.load %arg1[%c14_153, %c0_154] : memref<27x1024xf32, #tpu.memory_space<vmem>>, vector<1x1024xf32>
    %c1023_i32_155 = arith.constant 1023 : i32
    %280 = tpu.dynamic_rotate %198 by %c1023_i32_155 dim 1 : vector<2x1024xf32>, i32 -> vector<2x1024xf32>
    %281 = vector.broadcast %279 : vector<1x1024xf32> to vector<2x1024xf32>
    %282 = arith.mulf %280, %281 : vector<2x1024xf32>
    %283 = arith.truncf %282 : vector<2x1024xf32> to vector<2x1024xbf16>
    %c28_156 = arith.constant 28 : index
    %c0_157 = arith.constant 0 : index
    %284 = vector.load %arg11[%c28_156, %c0_157] : memref<112x1024xbf16, #tpu.memory_space<vmem>>, vector<2x1024xbf16>
    tpu.vector_store %arg11[%c28_156, %c0_157], %283 {strides = array<i32>} : memref<112x1024xbf16, #tpu.memory_space<vmem>>, vector<2x1024xbf16>,
    %c15_158 = arith.constant 15 : index
    %c0_159 = arith.constant 0 : index
    %285 = vector.load %arg1[%c15_158, %c0_159] : memref<27x1024xf32, #tpu.memory_space<vmem>>, vector<1x1024xf32>
    %c1017_i32_160 = arith.constant 1017 : i32
    %286 = tpu.dynamic_rotate %198 by %c1017_i32_160 dim 1 : vector<2x1024xf32>, i32 -> vector<2x1024xf32>
    %287 = vector.broadcast %285 : vector<1x1024xf32> to vector<2x1024xf32>
    %288 = arith.mulf %286, %287 : vector<2x1024xf32>
    %289 = arith.truncf %288 : vector<2x1024xf32> to vector<2x1024xbf16>
    %c30 = arith.constant 30 : index
    %c0_161 = arith.constant 0 : index
    %290 = vector.load %arg11[%c30, %c0_161] : memref<112x1024xbf16, #tpu.memory_space<vmem>>, vector<2x1024xbf16>
    tpu.vector_store %arg11[%c30, %c0_161], %289 {strides = array<i32>} : memref<112x1024xbf16, #tpu.memory_space<vmem>>, vector<2x1024xbf16>,
    %c16_162 = arith.constant 16 : index
    %c0_163 = arith.constant 0 : index
    %291 = vector.load %arg1[%c16_162, %c0_163] : memref<27x1024xf32, #tpu.memory_space<vmem>>, vector<1x1024xf32>
    %c1016_i32_164 = arith.constant 1016 : i32
    %292 = tpu.dynamic_rotate %198 by %c1016_i32_164 dim 1 : vector<2x1024xf32>, i32 -> vector<2x1024xf32>
    %293 = vector.broadcast %291 : vector<1x1024xf32> to vector<2x1024xf32>
    %294 = arith.mulf %292, %293 : vector<2x1024xf32>
    %295 = arith.truncf %294 : vector<2x1024xf32> to vector<2x1024xbf16>
    %c32_165 = arith.constant 32 : index
    %c0_166 = arith.constant 0 : index
    %296 = vector.load %arg11[%c32_165, %c0_166] : memref<112x1024xbf16, #tpu.memory_space<vmem>>, vector<2x1024xbf16>
    tpu.vector_store %arg11[%c32_165, %c0_166], %295 {strides = array<i32>} : memref<112x1024xbf16, #tpu.memory_space<vmem>>, vector<2x1024xbf16>,
    %c17_167 = arith.constant 17 : index
    %c0_168 = arith.constant 0 : index
    %297 = vector.load %arg1[%c17_167, %c0_168] : memref<27x1024xf32, #tpu.memory_space<vmem>>, vector<1x1024xf32>
    %c1015_i32_169 = arith.constant 1015 : i32
    %298 = tpu.dynamic_rotate %198 by %c1015_i32_169 dim 1 : vector<2x1024xf32>, i32 -> vector<2x1024xf32>
    %299 = vector.broadcast %297 : vector<1x1024xf32> to vector<2x1024xf32>
    %300 = arith.mulf %298, %299 : vector<2x1024xf32>
    %301 = arith.truncf %300 : vector<2x1024xf32> to vector<2x1024xbf16>
    %c34 = arith.constant 34 : index
    %c0_170 = arith.constant 0 : index
    %302 = vector.load %arg11[%c34, %c0_170] : memref<112x1024xbf16, #tpu.memory_space<vmem>>, vector<2x1024xbf16>
    tpu.vector_store %arg11[%c34, %c0_170], %301 {strides = array<i32>} : memref<112x1024xbf16, #tpu.memory_space<vmem>>, vector<2x1024xbf16>,
    %c18_171 = arith.constant 18 : index
    %c0_172 = arith.constant 0 : index
    %303 = vector.load %arg1[%c18_171, %c0_172] : memref<27x1024xf32, #tpu.memory_space<vmem>>, vector<1x1024xf32>
    %c969_i32_173 = arith.constant 969 : i32
    %304 = tpu.dynamic_rotate %198 by %c969_i32_173 dim 1 : vector<2x1024xf32>, i32 -> vector<2x1024xf32>
    %305 = vector.broadcast %303 : vector<1x1024xf32> to vector<2x1024xf32>
    %306 = arith.mulf %304, %305 : vector<2x1024xf32>
    %307 = arith.truncf %306 : vector<2x1024xf32> to vector<2x1024xbf16>
    %c36_174 = arith.constant 36 : index
    %c0_175 = arith.constant 0 : index
    %308 = vector.load %arg11[%c36_174, %c0_175] : memref<112x1024xbf16, #tpu.memory_space<vmem>>, vector<2x1024xbf16>
    tpu.vector_store %arg11[%c36_174, %c0_175], %307 {strides = array<i32>} : memref<112x1024xbf16, #tpu.memory_space<vmem>>, vector<2x1024xbf16>,
    %c19_176 = arith.constant 19 : index
    %c0_177 = arith.constant 0 : index
    %309 = vector.load %arg1[%c19_176, %c0_177] : memref<27x1024xf32, #tpu.memory_space<vmem>>, vector<1x1024xf32>
    %c968_i32_178 = arith.constant 968 : i32
    %310 = tpu.dynamic_rotate %198 by %c968_i32_178 dim 1 : vector<2x1024xf32>, i32 -> vector<2x1024xf32>
    %311 = vector.broadcast %309 : vector<1x1024xf32> to vector<2x1024xf32>
    %312 = arith.mulf %310, %311 : vector<2x1024xf32>
    %313 = arith.truncf %312 : vector<2x1024xf32> to vector<2x1024xbf16>
    %c38 = arith.constant 38 : index
    %c0_179 = arith.constant 0 : index
    %314 = vector.load %arg11[%c38, %c0_179] : memref<112x1024xbf16, #tpu.memory_space<vmem>>, vector<2x1024xbf16>
    tpu.vector_store %arg11[%c38, %c0_179], %313 {strides = array<i32>} : memref<112x1024xbf16, #tpu.memory_space<vmem>>, vector<2x1024xbf16>,
    %c20_180 = arith.constant 20 : index
    %c0_181 = arith.constant 0 : index
    %315 = vector.load %arg1[%c20_180, %c0_181] : memref<27x1024xf32, #tpu.memory_space<vmem>>, vector<1x1024xf32>
    %c967_i32_182 = arith.constant 967 : i32
    %316 = tpu.dynamic_rotate %198 by %c967_i32_182 dim 1 : vector<2x1024xf32>, i32 -> vector<2x1024xf32>
    %317 = vector.broadcast %315 : vector<1x1024xf32> to vector<2x1024xf32>
    %318 = arith.mulf %316, %317 : vector<2x1024xf32>
    %319 = arith.truncf %318 : vector<2x1024xf32> to vector<2x1024xbf16>
    %c40_183 = arith.constant 40 : index
    %c0_184 = arith.constant 0 : index
    %320 = vector.load %arg11[%c40_183, %c0_184] : memref<112x1024xbf16, #tpu.memory_space<vmem>>, vector<2x1024xbf16>
    tpu.vector_store %arg11[%c40_183, %c0_184], %319 {strides = array<i32>} : memref<112x1024xbf16, #tpu.memory_space<vmem>>, vector<2x1024xbf16>,
    %c21_185 = arith.constant 21 : index
    %c0_186 = arith.constant 0 : index
    %321 = vector.load %arg1[%c21_185, %c0_186] : memref<27x1024xf32, #tpu.memory_space<vmem>>, vector<1x1024xf32>
    %c961_i32_187 = arith.constant 961 : i32
    %322 = tpu.dynamic_rotate %198 by %c961_i32_187 dim 1 : vector<2x1024xf32>, i32 -> vector<2x1024xf32>
    %323 = vector.broadcast %321 : vector<1x1024xf32> to vector<2x1024xf32>
    %324 = arith.mulf %322, %323 : vector<2x1024xf32>
    %325 = arith.truncf %324 : vector<2x1024xf32> to vector<2x1024xbf16>
    %c42 = arith.constant 42 : index
    %c0_188 = arith.constant 0 : index
    %326 = vector.load %arg11[%c42, %c0_188] : memref<112x1024xbf16, #tpu.memory_space<vmem>>, vector<2x1024xbf16>
    tpu.vector_store %arg11[%c42, %c0_188], %325 {strides = array<i32>} : memref<112x1024xbf16, #tpu.memory_space<vmem>>, vector<2x1024xbf16>,
    %c22_189 = arith.constant 22 : index
    %c0_190 = arith.constant 0 : index
    %327 = vector.load %arg1[%c22_189, %c0_190] : memref<27x1024xf32, #tpu.memory_space<vmem>>, vector<1x1024xf32>
    %c960_i32_191 = arith.constant 960 : i32
    %328 = tpu.dynamic_rotate %198 by %c960_i32_191 dim 1 : vector<2x1024xf32>, i32 -> vector<2x1024xf32>
    %329 = vector.broadcast %327 : vector<1x1024xf32> to vector<2x1024xf32>
    %330 = arith.mulf %328, %329 : vector<2x1024xf32>
    %331 = arith.truncf %330 : vector<2x1024xf32> to vector<2x1024xbf16>
    %c44_192 = arith.constant 44 : index
    %c0_193 = arith.constant 0 : index
    %332 = vector.load %arg11[%c44_192, %c0_193] : memref<112x1024xbf16, #tpu.memory_space<vmem>>, vector<2x1024xbf16>
    tpu.vector_store %arg11[%c44_192, %c0_193], %331 {strides = array<i32>} : memref<112x1024xbf16, #tpu.memory_space<vmem>>, vector<2x1024xbf16>,
    %c23_194 = arith.constant 23 : index
    %c0_195 = arith.constant 0 : index
    %333 = vector.load %arg1[%c23_194, %c0_195] : memref<27x1024xf32, #tpu.memory_space<vmem>>, vector<1x1024xf32>
    %c959_i32_196 = arith.constant 959 : i32
    %334 = tpu.dynamic_rotate %198 by %c959_i32_196 dim 1 : vector<2x1024xf32>, i32 -> vector<2x1024xf32>
    %335 = vector.broadcast %333 : vector<1x1024xf32> to vector<2x1024xf32>
    %336 = arith.mulf %334, %335 : vector<2x1024xf32>
    %337 = arith.truncf %336 : vector<2x1024xf32> to vector<2x1024xbf16>
    %c46 = arith.constant 46 : index
    %c0_197 = arith.constant 0 : index
    %338 = vector.load %arg11[%c46, %c0_197] : memref<112x1024xbf16, #tpu.memory_space<vmem>>, vector<2x1024xbf16>
    tpu.vector_store %arg11[%c46, %c0_197], %337 {strides = array<i32>} : memref<112x1024xbf16, #tpu.memory_space<vmem>>, vector<2x1024xbf16>,
    %c24_198 = arith.constant 24 : index
    %c0_199 = arith.constant 0 : index
    %339 = vector.load %arg1[%c24_198, %c0_199] : memref<27x1024xf32, #tpu.memory_space<vmem>>, vector<1x1024xf32>
    %c953_i32_200 = arith.constant 953 : i32
    %340 = tpu.dynamic_rotate %198 by %c953_i32_200 dim 1 : vector<2x1024xf32>, i32 -> vector<2x1024xf32>
    %341 = vector.broadcast %339 : vector<1x1024xf32> to vector<2x1024xf32>
    %342 = arith.mulf %340, %341 : vector<2x1024xf32>
    %343 = arith.truncf %342 : vector<2x1024xf32> to vector<2x1024xbf16>
    %c48_201 = arith.constant 48 : index
    %c0_202 = arith.constant 0 : index
    %344 = vector.load %arg11[%c48_201, %c0_202] : memref<112x1024xbf16, #tpu.memory_space<vmem>>, vector<2x1024xbf16>
    tpu.vector_store %arg11[%c48_201, %c0_202], %343 {strides = array<i32>} : memref<112x1024xbf16, #tpu.memory_space<vmem>>, vector<2x1024xbf16>,
    %c25_203 = arith.constant 25 : index
    %c0_204 = arith.constant 0 : index
    %345 = vector.load %arg1[%c25_203, %c0_204] : memref<27x1024xf32, #tpu.memory_space<vmem>>, vector<1x1024xf32>
    %c952_i32_205 = arith.constant 952 : i32
    %346 = tpu.dynamic_rotate %198 by %c952_i32_205 dim 1 : vector<2x1024xf32>, i32 -> vector<2x1024xf32>
    %347 = vector.broadcast %345 : vector<1x1024xf32> to vector<2x1024xf32>
    %348 = arith.mulf %346, %347 : vector<2x1024xf32>
    %349 = arith.truncf %348 : vector<2x1024xf32> to vector<2x1024xbf16>
    %c50 = arith.constant 50 : index
    %c0_206 = arith.constant 0 : index
    %350 = vector.load %arg11[%c50, %c0_206] : memref<112x1024xbf16, #tpu.memory_space<vmem>>, vector<2x1024xbf16>
    tpu.vector_store %arg11[%c50, %c0_206], %349 {strides = array<i32>} : memref<112x1024xbf16, #tpu.memory_space<vmem>>, vector<2x1024xbf16>,
    %c26_207 = arith.constant 26 : index
    %c0_208 = arith.constant 0 : index
    %351 = vector.load %arg1[%c26_207, %c0_208] : memref<27x1024xf32, #tpu.memory_space<vmem>>, vector<1x1024xf32>
    %c951_i32_209 = arith.constant 951 : i32
    %352 = tpu.dynamic_rotate %198 by %c951_i32_209 dim 1 : vector<2x1024xf32>, i32 -> vector<2x1024xf32>
    %353 = vector.broadcast %351 : vector<1x1024xf32> to vector<2x1024xf32>
    %354 = arith.mulf %352, %353 : vector<2x1024xf32>
    %355 = arith.truncf %354 : vector<2x1024xf32> to vector<2x1024xbf16>
    %c52_210 = arith.constant 52 : index
    %c0_211 = arith.constant 0 : index
    %356 = vector.load %arg11[%c52_210, %c0_211] : memref<112x1024xbf16, #tpu.memory_space<vmem>>, vector<2x1024xbf16>
    tpu.vector_store %arg11[%c52_210, %c0_211], %355 {strides = array<i32>} : memref<112x1024xbf16, #tpu.memory_space<vmem>>, vector<2x1024xbf16>,
    %c0_212 = arith.constant 0 : index
    %c0_213 = arith.constant 0 : index
    %357 = vector.load %arg6[%c0_212, %c0_213] : memref<8x64xbf16, #tpu.memory_space<vmem>>, vector<8x64xbf16>
    %c0_214 = arith.constant 0 : index
    %c0_215 = arith.constant 0 : index
    %358 = vector.load %arg11[%c0_214, %c0_215] : memref<112x1024xbf16, #tpu.memory_space<vmem>>, vector<64x1024xbf16>
    %cst_216 = arith.constant dense<0.000000e+00> : vector<8x1024xf32>
    %359 = tpu.matmul %357, %358, %cst_216 {dimension_numbers = #tpu.dot_dimension_numbers<[1], [0], [0], [1], [0, 0, 1, 1], [], []>} : vector<8x64xbf16>, vector<64x1024xbf16>, vector<8x1024xf32> -> vector<8x1024xf32>
    %c0_217 = arith.constant 0 : index
    %c0_218 = arith.constant 0 : index
    %360 = vector.load %arg7[%c0_217, %c0_218] : memref<8x1xf32, #tpu.memory_space<vmem>>, vector<8x1xf32>
    %361 = vector.broadcast %360 : vector<8x1xf32> to vector<8x1024xf32>
    %362 = arith.addf %359, %361 : vector<8x1024xf32>
    %cst_219 = arith.constant dense<0.000000e+00> : vector<8xf32>
    %363 = vector.multi_reduction <add>, %362, %cst_219 [1] : vector<8x1024xf32> to vector<8xf32>
    %364 = vector.shape_cast %363 : vector<8xf32> to vector<8x1xf32>
    %cst_220 = arith.constant 9.765625E-4 : f32
    %365 = vector.broadcast %cst_220 : f32 to vector<8x1xf32>
    %366 = arith.mulf %364, %365 : vector<8x1xf32>
    %367 = arith.mulf %362, %362 : vector<8x1024xf32>
    %cst_221 = arith.constant dense<0.000000e+00> : vector<8xf32>
    %368 = vector.multi_reduction <add>, %367, %cst_221 [1] : vector<8x1024xf32> to vector<8xf32>
    %369 = vector.shape_cast %368 : vector<8xf32> to vector<8x1xf32>
    %cst_222 = arith.constant 9.765625E-4 : f32
    %370 = vector.broadcast %cst_222 : f32 to vector<8x1xf32>
    %371 = arith.mulf %369, %370 : vector<8x1xf32>
    %372 = arith.mulf %366, %366 : vector<8x1xf32>
    %373 = arith.subf %371, %372 : vector<8x1xf32>
    %cst_223 = arith.constant 0.000000e+00 : f32
    %374 = vector.broadcast %cst_223 : f32 to vector<8x1xf32>
    %375 = arith.maximumf %373, %374 : vector<8x1xf32>
    %cst_224 = arith.constant 9.99999974E-6 : f32
    %376 = vector.broadcast %cst_224 : f32 to vector<8x1xf32>
    %377 = arith.addf %375, %376 : vector<8x1xf32>
    %378 = math.rsqrt %377 : vector<8x1xf32>
    %c0_225 = arith.constant 0 : index
    %c0_226 = arith.constant 0 : index
    %379 = vector.load %arg8[%c0_225, %c0_226] : memref<8x1xf32, #tpu.memory_space<vmem>>, vector<8x1xf32>
    %380 = arith.mulf %378, %379 : vector<8x1xf32>
    %c0_227 = arith.constant 0 : index
    %c0_228 = arith.constant 0 : index
    %381 = vector.load %arg9[%c0_227, %c0_228] : memref<8x1xf32, #tpu.memory_space<vmem>>, vector<8x1xf32>
    %382 = arith.mulf %366, %380 : vector<8x1xf32>
    %383 = arith.subf %381, %382 : vector<8x1xf32>
    %384 = vector.broadcast %380 : vector<8x1xf32> to vector<8x1024xf32>
    %385 = arith.mulf %362, %384 : vector<8x1024xf32>
    %386 = vector.broadcast %383 : vector<8x1xf32> to vector<8x1024xf32>
    %387 = arith.addf %385, %386 : vector<8x1024xf32>
    %cst_229 = arith.constant 0.000000e+00 : f32
    %388 = vector.broadcast %cst_229 : f32 to vector<8x1024xf32>
    %389 = arith.cmpf ogt, %387, %388 : vector<8x1024xf32>
    %cst_230 = arith.constant 0.00999999977 : f32
    %390 = vector.broadcast %cst_230 : f32 to vector<8x1024xf32>
    %391 = arith.mulf %390, %387 : vector<8x1024xf32>
    %392 = arith.select %389, %387, %391 : vector<8x1024xi1>, vector<8x1024xf32>
    %c0_231 = arith.constant 0 : index
    %c0_232 = arith.constant 0 : index
    %393 = vector.load %arg10[%c0_231, %c0_232] : memref<8x1024xf32, #tpu.memory_space<vmem>>, vector<8x1024xf32>
    tpu.vector_store %arg10[%c0_231, %c0_232], %392 {strides = array<i32>} : memref<8x1024xf32, #tpu.memory_space<vmem>>, vector<8x1024xf32>,
    return
  }
}

</mosaic_0001>

<bundles_post_ra>
// kernel: down_block.1
= control target key start
LH: loop header
LB: loop body
LE: loop exit
PB: predicated region body
PF: predicated region fallthrough
CT: control target
= control target key end

     0   :  { %s7634_s17 = smov 56   ;;  %s7635_s18 = smov 57   ;;  %v12126_v3 = vmov 0   ;;  %v75_v6 = vlaneseq  ;;  %s12113_s0 = inlined_call_operand.vmem [shape: f32[4,1024], index: 0, kind: input, shape index: {}]   ;;  %s12114_s1 = inlined_call_operand.vmem [shape: f32[27,1024], index: 1, kind: input, shape index: {}]   ;;  %s12115_s3 = inlined_call_operand.vmem [shape: f32[2,1], index: 3, kind: input, shape index: {}]   ;;  %s12116_s2 = inlined_call_operand.vmem [shape: bf16[2,112], index: 2, kind: input, shape index: {}]   ;;  %s12117_s4 = inlined_call_operand.vmem [shape: f32[2,1], index: 4, kind: input, shape index: {}]   ;;  %s12118_s5 = inlined_call_operand.vmem [shape: f32[2,1], index: 5, kind: input, shape index: {}]   ;;  %s12119_s7 = inlined_call_operand.vmem [shape: f32[8,1], index: 7, kind: input, shape index: {}]   ;;  %s12120_s6 = inlined_call_operand.vmem [shape: bf16[8,64], index: 6, kind: input, shape index: {}]   ;;  %s12121_s8 = inlined_call_operand.vmem [shape: f32[8,1], index: 8, kind: input, shape index: {}]   ;;  %s12122_s9 = inlined_call_operand.vmem [shape: f32[8,1], index: 9, kind: input, shape index: {}]   ;;  %s12123_s10 = inlined_call_operand.vmem [shape: f32[8,1024], index: 10, kind: output, shape index: {}]  }
   0x1   :  { %v7711_v0 = vld [vmem:[%s12113_s0 + $0x8] sm:$0xff]  ;;  %v7716_v1 = vld [vmem:[%s12113_s0] sm:$0xff]  ;;  %s7636_s19 = smov 55   ;;  %s12228_s20 = smov 65   ;;  %36 = vst [vmem:[#allocation2 + $0x90] sm:$0xcc] %v12126_v3  ;;  %3263 = vmatprep.mubr.bf16.mxu0 %v12126_v3  ;;  %3304 = vmatprep.mubr.bf16.mxu1 %v12126_v3 }
   0x2   :  { %875 = vrot.lane.b32.xlu1 %v7711_v0, %s7634_s17  ;;  %871 = vrot.lane.b32.xlu0 %v7716_v1, %s7634_s17  ;;  %v7724_v2 = vcombine.high %v7716_v1, %v7716_v1  ;;  %37 = vst [vmem:[#allocation2 + $0x190] sm:$0xcc] %v12126_v3  ;;  %38 = vst [vmem:[#allocation2 + $0xb8] sm:$0xcc] %v12126_v3  ;;  %s7639_s21 = smov 63   ;;  %v7760_v4 = vcombine.high %v7711_v0, %v7711_v0  ;;  %v7769_v5 = vld [vmem:[%s12113_s0 + $0x10] sm:$0xff] }
   0x3   :  { %39 = vst [vmem:[#allocation2 + $0x1b8] sm:$0xcc] %v12126_v3  ;;  %7520 = vset.pattern.permute.xlu0 %v12126_v3  ;;  %7521 = vset.pattern.permute.xlu1 %v12126_v3  ;;  %s12160_s24 = smov 71   ;;  %s7641_s25 = smov 64   ;;  %v7852_v9 = vld [vmem:[%s12113_s0 + $0x18] sm:$0xff]  ;;  %v7858_v10 = vshrl.u32 %v75_v6, 7 }
   0x4   :  { %s12229_s26 = smov 72   ;;  %s12226_s27 = smov 119   ;;  %v7335_v7 = vpack.c.bf16 %v7724_v2, %v7716_v1  ;;  %v7017_v11 = vld [vmem:[%s12114_s1 + $0xc1] ss:$8 sm:$0xf]  ;;  %v7868_v13 = vcombine.high %v7852_v9, %v7852_v9  ;;  %v7874_v14 = vand.u32 127, %v75_v6 }
   0x5   :  { %s7644_s28 = smov 73   ;;  %s12224_s29 = smov 120   ;;  %12325 = vst [vmem:[#allocation4_spill] sm:$0xff] %v7858_v10  ;;  %v7018_v12 = vld [vmem:[%s12114_s1 + $0xc1] ss:$8 sm:$0xf0] }
   0x6   :  { %757 = vrot.lane.b32.xlu1 %v7716_v1, %s7635_s18  ;;  %873 = vrot.lane.b32.xlu0 %v7724_v2, %s7634_s17  ;;  %s12124_s30 = smov 121   ;;  %v1591_v8 = vrot.slane %v7335_v7, 6  ;;  %s12130_s22 = smov 1   ;;  %v7877_v15 = vsub.s32 0, %v7858_v10  ;;  %v7880_v16 = vsub.s32 1, %v7858_v10  ;;  %v7882_v17 = vor.u32 %v7018_v12, %v7017_v11 }
   0x7   :  { %v7011_v18 = vld [vmem:[%s12114_s1 + $0xc0] ss:$8 sm:$0xf]  ;;  %s12128_s14 = smov 127   ;;  %vm887_vm0 = vcmp.lt.s32.totalorder %v7874_v14, 56  ;;  %vm12216_vm1 = vcmp.lt.s32.totalorder %v7874_v14, 57 }
   0x8   :  { %1599 = vst [vmem:[#allocation2 + $0x70] sm:$0xcc] %v1591_v8  ;;  %12326 = vst [vmem:[#allocation5_spill] sm:$0xff] %v7877_v15  ;;  %v7012_v19 = vld [vmem:[%s12114_s1 + $0xc0] ss:$8 sm:$0xf0]  ;;  %v2710_v22 = vrot.slane %v7882_v17, %v7877_v15  ;;  %v2714_v23 = vrot.slane %v7882_v17, %v7880_v16 }
   0x9   :  { %12327 = vst [vmem:[#allocation6_spill] sm:$0xff] %v7880_v16  ;;  %v7903_v24 = vor.u32 %v7012_v19, %v7011_v18  ;;  %v7023_v33 = vld [vmem:[%s12114_s1 + $0xc2] ss:$8 sm:$0xf]  ;;  %vm1005_vm2 = vcmp.lt.s32.totalorder %v7874_v14, 55  ;;  %s7649_s23 = smov 9  }
   0xa   :  { %761 = vrot.lane.b32.xlu1 %v7711_v0, %s7635_s18  ;;  %759 = vrot.lane.b32.xlu0 %v7724_v2, %s7635_s18  ;;  %v7024_v34 = vld [vmem:[%s12114_s1 + $0xc2] ss:$8 sm:$0xf0]  ;;  %v6993_v44 = vld [vmem:[%s12114_s1 + $0x85] ss:$8 sm:$0xf] }
   0xb   :  { %v2621_v31 = vrot.slane %v7903_v24, %v7877_v15  ;;  %v2625_v32 = vrot.slane %v7903_v24, %v7880_v16  ;;  %v7949_v42 = vor.u32 %v7024_v34, %v7023_v33  ;;  %v6994_v45 = vld [vmem:[%s12114_s1 + $0x85] ss:$8 sm:$0xf0]  ;;  %vm423_vm3 = vcmp.lt.s32.totalorder %v7874_v14, 65  ;;  %s7650_s16 = smov 7   ;;  %s7651_s11 = smov 8  }
   0xc   :  { %v7969_v51 = vor.u32 %v6994_v45, %v6993_v44  ;;  %v6911_v56 = vld [vmem:[%s12114_s1 + $0x7] ss:$8 sm:$0xf]  ;;  %v8013_v11 = vsub.s32 2, %v7858_v10  ;;  %vm655_vm4 = vcmp.lt.s32.totalorder %v7874_v14, 63  ;;  %v7336_v45 = vpack.c.bf16 %v7760_v4, %v7711_v0  ;;  %s12372_s13 = smov 1  }
   0xd   :  { %v2803_v49 = vrot.slane %v7949_v42, %v7877_v15  ;;  %v2807_v50 = vrot.slane %v7949_v42, %v7880_v16  ;;  %v6912_v57 = vld [vmem:[%s12114_s1 + $0x7] ss:$8 sm:$0xf0]  ;;  %v6987_v34 = vld [vmem:[%s12114_s1 + $0x84] ss:$8 sm:$0xf] }
   0xe   :  { %991 = vrot.lane.b32.xlu1 %v7724_v2, %s7636_s19  ;;  %989 = vrot.lane.b32.xlu0 %v7716_v1, %s7636_s19  ;;  %12330 = vst [vmem:[#allocation9_spill] sm:$0xff] %v7969_v51  ;;  %v2346_v60 = vrot.slane %v7969_v51, %v7877_v15  ;;  %v2350_v61 = vrot.slane %v7969_v51, %v7880_v16  ;;  %v7005_v62 = vld [vmem:[%s12114_s1 + $0x87] ss:$8 sm:$0xf]  ;;  %12332 = vst [vmem:[#allocation11_spill] sm:$0xff] %v8013_v11  ;;  %vm309_vm5 = vcmp.lt.s32.totalorder %v7874_v14, 71 }
   0xf   :  { %v7006_v63 = vld [vmem:[%s12114_s1 + $0x87] ss:$8 sm:$0xf0]  ;;  %v8015_v12 = vor.u32 %v6912_v57, %v6911_v56  ;;  %vm12217_vm6 = vcmp.lt.s32.totalorder %v7874_v14, 64  ;;  %vm12218_vm7 = vcmp.lt.s32.totalorder %v7874_v14, 72  ;;  %vm12223_vm8 = vcmp.lt.s32.totalorder %v7874_v14, 119 }
  0x10   :  { %vm77_vm9 = vcmp.lt.s32.totalorder %v7874_v14, 73  ;;  %vm12220_vm10 = vcmp.lt.s32.totalorder %v7874_v14, 120  ;;  %vm12186_vm11 = vcmp.lt.s32.totalorder %v7874_v14, 121  ;;  %vm12221_vm12 = vcmp.lt.s32.totalorder %v7874_v14, 1  ;;  %s12611_s12 = smov 65  }
  0x11   :  { %v908_v33 = vrot.slane %v8015_v12, %v8013_v11  ;;  %vm12219_vm13 = vcmp.lt.s32.totalorder %v7874_v14, 127  ;;  %vm1119_vm14 = vcmp.lt.s32.totalorder %v7874_v14, 9  ;;  %vm12222_vm15 = vcmp.lt.s32.totalorder %v7874_v14, 7 }
  0x12   :  { %407 = vrot.lane.b32.xlu1 %v7716_v1, %s12228_s20  ;;  %993 = vrot.lane.b32.xlu0 %v7711_v0, %s7636_s19 }
  0x16   :  { %411 = vrot.lane.b32.xlu1 %v7711_v0, %s12228_s20  ;;  %409 = vrot.lane.b32.xlu0 %v7724_v2, %s12228_s20 }
  0x1a   :  { %641 = vrot.lane.b32.xlu1 %v7724_v2, %s7639_s21  ;;  %639 = vrot.lane.b32.xlu0 %v7716_v1, %s7639_s21 }
  0x1e   :  { %877 = vrot.lane.b32.xlu1 %v7760_v4, %s7634_s17  ;;  %643 = vrot.lane.b32.xlu0 %v7711_v0, %s7639_s21 }
  0x22   :  { %293 = vrot.lane.b32.xlu1 %v7716_v1, %s12160_s24  ;;  %879 = vrot.lane.b32.xlu0 %v7769_v5, %s7634_s17 }
  0x26   :  { %297 = vrot.lane.b32.xlu1 %v7711_v0, %s12160_s24  ;;  %295 = vrot.lane.b32.xlu0 %v7724_v2, %s12160_s24 }
  0x2a   :  { %527 = vrot.lane.b32.xlu1 %v7724_v2, %s7641_s25  ;;  %525 = vrot.lane.b32.xlu0 %v7716_v1, %s7641_s25 }
  0x2e   :  { %763 = vrot.lane.b32.xlu1 %v7760_v4, %s7635_s18  ;;  %529 = vrot.lane.b32.xlu0 %v7711_v0, %s7641_s25 }
  0x32   :  { %995 = vrot.lane.b32.xlu1 %v7760_v4, %s7636_s19  ;;  %765 = vrot.lane.b32.xlu0 %v7769_v5, %s7635_s18 }
  0x36   :  { %175 = vrot.lane.b32.xlu1 %v7716_v1, %s12229_s26  ;;  %997 = vrot.lane.b32.xlu0 %v7769_v5, %s7636_s19 }
  0x3a   :  { %179 = vrot.lane.b32.xlu1 %v7711_v0, %s12229_s26  ;;  %177 = vrot.lane.b32.xlu0 %v7724_v2, %s12229_s26 }
  0x3e   :  { %415 = vrot.lane.b32.xlu1 %v7769_v5, %s12228_s20  ;;  %413 = vrot.lane.b32.xlu0 %v7760_v4, %s12228_s20 }
  0x42   :  { %647 = vrot.lane.b32.xlu1 %v7769_v5, %s7639_s21  ;;  %645 = vrot.lane.b32.xlu0 %v7760_v4, %s7639_s21 }
  0x46   :  { %1955 = vrot.lane.b32.xlu1 %v7724_v2, %s12226_s27  ;;  %1953 = vrot.lane.b32.xlu0 %v7716_v1, %s12226_s27 }
  0x4a   :  { %59 = vrot.lane.b32.xlu1 %v7716_v1, %s7644_s28  ;;  %1957 = vrot.lane.b32.xlu0 %v7711_v0, %s12226_s27 }
  0x4e   :  { %63 = vrot.lane.b32.xlu1 %v7711_v0, %s7644_s28  ;;  %61 = vrot.lane.b32.xlu0 %v7724_v2, %s7644_s28 }
  0x52   :  { %301 = vrot.lane.b32.xlu1 %v7769_v5, %s12160_s24  ;;  %299 = vrot.lane.b32.xlu0 %v7760_v4, %s12160_s24 }
  0x56   :  { %533 = vrot.lane.b32.xlu1 %v7769_v5, %s7641_s25  ;;  %531 = vrot.lane.b32.xlu0 %v7760_v4, %s7641_s25 }
  0x5a   :  { %1841 = vrot.lane.b32.xlu1 %v7724_v2, %s12224_s29  ;;  %1839 = vrot.lane.b32.xlu0 %v7716_v1, %s12224_s29 }
  0x5e   :  { %181 = vrot.lane.b32.xlu1 %v7760_v4, %s12229_s26  ;;  %1843 = vrot.lane.b32.xlu0 %v7711_v0, %s12224_s29 }
  0x62   :  { %1721 = vrot.lane.b32.xlu1 %v7716_v1, %s12124_s30  ;;  %183 = vrot.lane.b32.xlu0 %v7769_v5, %s12229_s26 }
  0x66   :  { %1725 = vrot.lane.b32.xlu1 %v7711_v0, %s12124_s30  ;;  %1723 = vrot.lane.b32.xlu0 %v7724_v2, %s12124_s30 }
  0x6a   :  { %1961 = vrot.lane.b32.xlu1 %v7769_v5, %s12226_s27  ;;  %1959 = vrot.lane.b32.xlu0 %v7760_v4, %s12226_s27 }
  0x6e   :  { %67 = vrot.lane.b32.xlu1 %v7769_v5, %s7644_s28  ;;  %65 = vrot.lane.b32.xlu0 %v7760_v4, %s7644_s28 }
  0x72   :  { %1455 = vrot.lane.b32.xlu1 %v7724_v2, %s12130_s22  ;;  %1453 = vrot.lane.b32.xlu0 %v7716_v1, %s12130_s22 }
  0x74   :  { %v7890_v20 = vpop.permute.xlu1 %875  ;;  %v7892_v21 = vpop.permute.xlu0 %871 }
  0x75   :  { %12328 = vst [vmem:[#allocation7_spill] sm:$0xff] %v7892_v21 }
  0x76   :  { %1607 = vrot.lane.b32.xlu1 %v7716_v1, %s12128_s14  ;;  %1467 = vrot.lane.b32.xlu0 %v7868_v13, %s12130_s22 }
  0x78   :  { %v7905_v25 = vpop.permute.xlu1 %757  ;;  %v874_v26 = vpop.permute.xlu0 %873 }
  0x79   :  { %12329 = vst [vmem:[#allocation8_spill] sm:$0xff] %v7905_v25  ;;  %v7910_v27 = vsel %vm887_vm0, %v874_v26, %v7890_v20  ;;  %v7915_v28 = vsel %vm887_vm0, %v7892_v21, %v874_v26 }
  0x7a   :  { %v2747_v29 = vmul.f32 %v2710_v22, %v7915_v28  ;;  %v2748_v30 = vmul.f32 %v2714_v23, %v7910_v27  ;;  %1611 = vrot.lane.b32.xlu1 %v7711_v0, %s12128_s14  ;;  %1609 = vrot.lane.b32.xlu0 %v7724_v2, %s12128_s14  ;;  %v8028_v22 = vsub.s32 3, %v7858_v10 }
  0x7c   :  { %v7383_v35 = vpack.c.bf16 %v2748_v30, %v2747_v29  ;;  %v7934_v36 = vpop.permute.xlu1 %761  ;;  %v760_v37 = vpop.permute.xlu0 %759  ;;  %12333 = vst [vmem:[#allocation12_spill] sm:$0xff] %v8028_v22  ;;  %v8034_v29 = vor.u32 %v7006_v63, %v7005_v62 }
  0x7d   :  { %v7939_v38 = vsel %vm12216_vm1, %v760_v37, %v7934_v36  ;;  %v7944_v39 = vsel %vm12216_vm1, %v7905_v25, %v760_v37 }
  0x7e   :  { %v2783_v40 = vrot.slane %v7383_v35, 6  ;;  %v2658_v41 = vmul.f32 %v2621_v31, %v7944_v39  ;;  %1847 = vrot.lane.b32.xlu1 %v7769_v5, %s12224_s29  ;;  %v2659_v43 = vmul.f32 %v2625_v32, %v7939_v38  ;;  %1845 = vrot.lane.b32.xlu0 %v7760_v4, %s12224_s29  ;;  %v2528_v37 = vrot.slane %v8034_v29, %v7877_v15 }
  0x80   :  { %2791 = vst [vmem:[#allocation2 + $0x38] sm:$0xcc] %v2783_v40  ;;  %v992_v46 = vpop.permute.xlu1 %991  ;;  %v7961_v47 = vpop.permute.xlu0 %989  ;;  %v7379_v48 = vpack.c.bf16 %v2659_v43, %v2658_v41  ;;  %v912_v40 = vrot.slane %v8015_v12, %v8028_v22  ;;  %v2532_v41 = vrot.slane %v8034_v29, %v7880_v16  ;;  %v6988_v43 = vld [vmem:[%s12114_s1 + $0x84] ss:$8 sm:$0xf0] }
  0x81   :  { %v7974_v52 = vsel %vm1005_vm2, %v7961_v47, %v992_v46 }
  0x82   :  { %1105 = vrot.lane.b32.xlu1 %v7724_v2, %s7649_s23  ;;  %2698 = vst [vmem:[#allocation2 + $0x38] sm:$0x33] %v7379_v48  ;;  %1103 = vrot.lane.b32.xlu0 %v7716_v1, %s7649_s23  ;;  %v2840_v58 = vmul.f32 %v2803_v49, %v7974_v52 }
  0x84   :  { %v7978_v53 = vpop.permute.xlu1 %407  ;;  %v7980_v54 = vpop.permute.xlu0 %993 }
  0x85   :  { %12331 = vst [vmem:[#allocation10_spill] sm:$0xff] %v7978_v53  ;;  %v7985_v55 = vsel %vm1005_vm2, %v992_v46, %v7980_v54  ;;  %v2718_v46 = vrot.slane %v7882_v17, %v8013_v11 }
  0x86   :  { %v2841_v59 = vmul.f32 %v2807_v50, %v7985_v55  ;;  %1335 = vrot.lane.b32.xlu1 %v7716_v1, %s7650_s16  ;;  %1117 = vrot.lane.b32.xlu0 %v7868_v13, %s7649_s23 }
  0x88   :  { %v7387_v6 = vpack.c.bf16 %v2841_v59, %v2840_v58  ;;  %v8010_v7 = vpop.permute.xlu1 %411  ;;  %v410_v8 = vpop.permute.xlu0 %409  ;;  %v2722_v58 = vrot.slane %v7882_v17, %v8028_v22 }
  0x89   :  { %v8020_v18 = vsel %vm423_vm3, %v410_v8, %v8010_v7  ;;  %v8025_v19 = vsel %vm423_vm3, %v7978_v53, %v410_v8 }
  0x8a   :  { %2880 = vst [vmem:[#allocation2 + $0x90] sm:$0x33] %v7387_v6  ;;  %v2383_v23 = vmul.f32 %v2346_v60, %v8025_v19  ;;  %v2384_v26 = vmul.f32 %v2350_v61, %v8020_v18  ;;  %1349 = vrot.lane.b32.xlu1 %v7868_v13, %s7650_s16  ;;  %1337 = vrot.lane.b32.xlu0 %v7724_v2, %s7650_s16 }
  0x8b   :  { %v8080_v60 = vor.u32 %v6988_v43, %v6987_v34  ;;  %v939_v61 = vmul.f32 %v908_v33, %v7910_v27  ;;  %v6905_v27 = vld [vmem:[%s12114_s1 + $0x6] ss:$8 sm:$0xf] }
  0x8c   :  { %v7367_v30 = vpack.c.bf16 %v2384_v26, %v2383_v23  ;;  %v642_v31 = vpop.permute.xlu1 %641  ;;  %v8039_v32 = vpop.permute.xlu0 %639  ;;  %v6906_v33 = vld [vmem:[%s12114_s1 + $0x6] ss:$8 sm:$0xf0] }
  0x8d   :  { %12334 = vst [vmem:[#allocation13_spill] sm:$0xff] %v8039_v32  ;;  %v8060_v44 = vsel %vm655_vm4, %v8039_v32, %v642_v31  ;;  %12335 = vst [vmem:[#allocation14_spill] sm:$0xff] %v8080_v60  ;;  %v6999_v43 = vld [vmem:[%s12114_s1 + $0x86] ss:$8 sm:$0xf] }
  0x8e   :  { %v2419_v35 = vrot.slane %v7367_v30, 6  ;;  %1729 = vrot.lane.b32.xlu1 %v7769_v5, %s12124_s30  ;;  %1727 = vrot.lane.b32.xlu0 %v7760_v4, %s12124_s30  ;;  %v2565_v62 = vmul.f32 %v2528_v37, %v8060_v44  ;;  %s12371_s30 = smov 121  }
  0x90   :  { %2427 = vst [vmem:[#allocation2 + $0x50] sm:$0xcc] %v2419_v35  ;;  %v878_v48 = vpop.permute.xlu1 %877  ;;  %v8068_v49 = vpop.permute.xlu0 %643 }
  0x91   :  { %v892_v50 = vsel %vm887_vm0, %v7890_v20, %v878_v48  ;;  %v8076_v56 = vsel %vm655_vm4, %v642_v31, %v8068_v49  ;;  %v7525_v57 = vld [vmem:[#allocation2 + $0x3c] ss:$88 sps:$4 sm:$0xff]   ;;  %v7527_v59 = vld [vmem:[#allocation2 + $0x38] ss:$88 sps:$4 sm:$0xff]   ;;  %v1592_v20 = vrot.slane %v7336_v45, 6  ;;  %v2257_v31 = vrot.slane %v8080_v60, %v7877_v15 }
  0x92   :  { %v940_v63 = vmul.f32 %v912_v40, %v892_v50  ;;  %v2566_v6 = vmul.f32 %v2532_v41, %v8076_v56  ;;  %1221 = vrot.lane.b32.xlu1 %v7716_v1, %s7651_s11  ;;  %1003 = vrot.lane.b32.xlu0 %v7868_v13, %s7636_s19  ;;  %v2749_v35 = vmul.f32 %v2718_v46, %v892_v50  ;;  %v7000_v45 = vld [vmem:[%s12114_s1 + $0x86] ss:$8 sm:$0xf0] }
  0x93   :  { %3233 = vmatprep.subr.bf16.mxu0 %v7525_v57  ;;  %1600 = vst [vmem:[#allocation2 + $0xa0] sm:$0xcc] %v1592_v20  ;;  %v2261_v41 = vrot.slane %v8080_v60, %v7880_v16  ;;  %v8122_v57 = vor.u32 %v6906_v33, %v6905_v27 }
  0x94   :  { %v7312_v8 = vpack.c.bf16 %v940_v63, %v939_v61  ;;  %v7375_v23 = vpack.c.bf16 %v2566_v6, %v2565_v62  ;;  %v8089_v26 = vpop.permute.xlu1 %293  ;;  %v8091_v30 = vpop.permute.xlu0 %879  ;;  %3234 = vmatpush1.bf16.msra.mxu0 %v7527_v59  ;;  %v8137_v62 = vor.u32 %v7000_v45, %v6999_v43  ;;  %v6917_v63 = vld [vmem:[%s12114_s1 + $0x40] ss:$8 sm:$0xf]  ;;  %v2629_v43 = vrot.slane %v7903_v24, %v8013_v11 }
  0x95   :  { %12336 = vst [vmem:[#allocation15_spill] sm:$0xff] %v8089_v26  ;;  %12337 = vst [vmem:[#allocation16_spill] sm:$0xff] %v8091_v30  ;;  %v8099_v1 = vsel %vm887_vm0, %v878_v48, %v8091_v30  ;;  %v6918_v6 = vld [vmem:[%s12114_s1 + $0x40] ss:$8 sm:$0xf0]  ;;  %v794_v27 = vrot.slane %v8122_v57, %v8013_v11 }
  0x96   :  { %v974_v34 = vrot.slane %v7312_v8, 6  ;;  %v2601_v37 = vrot.slane %v7375_v23, 6  ;;  %v2750_v40 = vmul.f32 %v2722_v58, %v8099_v1  ;;  %1235 = vrot.lane.b32.xlu1 %v7868_v13, %s7651_s11  ;;  %1223 = vrot.lane.b32.xlu0 %v7724_v2, %s7651_s11  ;;  %v8153_v33 = vor.u32 %v6918_v6, %v6917_v63  ;;  %v6887_v30 = vld [vmem:[%s12114_s1 + $0x3] ss:$8 sm:$0xf] }
  0x97   :  { %v2633_v63 = vrot.slane %v7903_v24, %v8028_v22  ;;  %v825_v6 = vmul.f32 %v794_v27, %v7939_v38 }
  0x98   :  { %982 = vst [vmem:[#allocation2 + $0x168] sm:$0xcc] %v974_v34  ;;  %2609 = vst [vmem:[#allocation2 + $0x108] sm:$0xcc] %v2601_v37  ;;  %v7384_v46 = vpack.c.bf16 %v2750_v40, %v2749_v35  ;;  %v8120_v48 = vpop.permute.xlu1 %297  ;;  %v296_v50 = vpop.permute.xlu0 %295  ;;  %v2439_v34 = vrot.slane %v8137_v62, %v7877_v15  ;;  %v798_v35 = vrot.slane %v8122_v57, %v8028_v22 }
  0x99   :  { %v8127_v2 = vsel %vm309_vm5, %v296_v50, %v8120_v48  ;;  %v8132_v58 = vsel %vm309_vm5, %v8089_v26, %v296_v50  ;;  %v2443_v37 = vrot.slane %v8137_v62, %v7880_v16 }
  0x9a   :  { %v2784_v59 = vrot.slane %v7384_v46, 6  ;;  %v2294_v61 = vmul.f32 %v2257_v31, %v8132_v58  ;;  %1459 = vrot.lane.b32.xlu1 %v7760_v4, %s12130_s22  ;;  %v2295_v20 = vmul.f32 %v2261_v41, %v8127_v2  ;;  %1457 = vrot.lane.b32.xlu0 %v7711_v0, %s12130_s22  ;;  %v1026_v41 = vrot.slane %v8153_v33, %v8013_v11 }
  0x9c   :  { %2792 = vst [vmem:[#allocation2 + $0xd0] sm:$0xcc] %v2784_v59  ;;  %v528_v8 = vpop.permute.xlu1 %527  ;;  %v8149_v23 = vpop.permute.xlu0 %525  ;;  %v7363_v31 = vpack.c.bf16 %v2295_v20, %v2294_v61  ;;  %v1030_v61 = vrot.slane %v8153_v33, %v8028_v22 }
  0x9d   :  { %12338 = vst [vmem:[#allocation17_spill] sm:$0xff] %v8149_v23  ;;  %v8166_v40 = vsel %vm12217_vm6, %v8149_v23, %v528_v8 }
  0x9e   :  { %1615 = vrot.lane.b32.xlu1 %v7769_v5, %s12128_s14  ;;  %2334 = vst [vmem:[#allocation2 + $0x50] sm:$0x33] %v7363_v31  ;;  %1613 = vrot.lane.b32.xlu0 %v7760_v4, %s12128_s14  ;;  %v2476_v20 = vmul.f32 %v2439_v34, %v8166_v40  ;;  %v2811_v34 = vrot.slane %v7949_v42, %v8013_v11 }
  0xa0   :  { %v764_v45 = vpop.permute.xlu1 %763  ;;  %v8174_v46 = vpop.permute.xlu0 %529 }
  0xa1   :  { %v778_v50 = vsel %vm12216_vm1, %v7934_v36, %v764_v45  ;;  %v8182_v59 = vsel %vm12217_vm6, %v528_v8, %v8174_v46  ;;  %v6981_v36 = vld [vmem:[%s12114_s1 + $0x83] ss:$8 sm:$0xf] }
  0xa2   :  { %v826_v31 = vmul.f32 %v798_v35, %v778_v50  ;;  %v2477_v3 = vmul.f32 %v2443_v37, %v8182_v59  ;;  %885 = vrot.lane.b32.xlu1 %v7868_v13, %s7634_s17  ;;  %v6982_v8 = vld [vmem:[%s12114_s1 + $0x83] ss:$8 sm:$0xf0]  ;;  %653 = vrot.lane.b32.xlu0 %v7868_v13, %s7639_s21  ;;  %v2660_v23 = vmul.f32 %v2629_v43, %v778_v50  ;;  %v6899_v50 = vld [vmem:[%s12114_s1 + $0x5] ss:$8 sm:$0xf] }
  0xa4   :  { %v7308_v38 = vpack.c.bf16 %v826_v31, %v825_v6  ;;  %v7371_v27 = vpack.c.bf16 %v2477_v3, %v2476_v20  ;;  %v996_v35 = vpop.permute.xlu1 %995  ;;  %v8203_v37 = vpop.permute.xlu0 %765  ;;  %v2815_v3 = vrot.slane %v7949_v42, %v8028_v22  ;;  %v8218_v6 = vor.u32 %v6982_v8, %v6981_v36  ;;  %v6888_v31 = vld [vmem:[%s12114_s1 + $0x3] ss:$8 sm:$0xf0] }
  0xa5   :  { %12339 = vst [vmem:[#allocation18_spill] sm:$0xff] %v8203_v37  ;;  %v1010_v26 = vsel %vm1005_vm2, %v7980_v54, %v996_v35  ;;  %v8214_v53 = vsel %vm12216_vm1, %v764_v45, %v8203_v37  ;;  %v1057_v20 = vmul.f32 %v1026_v41, %v7985_v55  ;;  %v8233_v41 = vor.u32 %v6888_v31, %v6887_v30 }
  0xa6   :  { %12340 = vst [vmem:[#allocation19_spill] sm:$0xff] %v8218_v6  ;;  %864 = vst [vmem:[#allocation2 + $0x168] sm:$0x33] %v7308_v38  ;;  %v1058_v54 = vmul.f32 %v1030_v61, %v1010_v26  ;;  %v2661_v25 = vmul.f32 %v2633_v63, %v8214_v53  ;;  %1109 = vrot.lane.b32.xlu1 %v7760_v4, %s7649_s23  ;;  %1107 = vrot.lane.b32.xlu0 %v7711_v0, %s7649_s23 }
  0xa7   :  { %2516 = vst [vmem:[#allocation2 + $0x108] sm:$0x33] %v7371_v27  ;;  %v2164_v61 = vrot.slane %v8218_v6, %v7877_v15  ;;  %v2168_v63 = vrot.slane %v8218_v6, %v7880_v16  ;;  %v2536_v37 = vrot.slane %v8034_v29, %v8013_v11 }
  0xa8   :  { %v7316_v45 = vpack.c.bf16 %v1058_v54, %v1057_v20  ;;  %v7380_v36 = vpack.c.bf16 %v2661_v25, %v2660_v23  ;;  %v8229_v8 = vpop.permute.xlu1 %175  ;;  %v8231_v55 = vpop.permute.xlu0 %997  ;;  %v6900_v25 = vld [vmem:[%s12114_s1 + $0x5] ss:$8 sm:$0xf0]  ;;  %v2842_v23 = vmul.f32 %v2811_v34, %v1010_v26  ;;  %v444_v26 = vrot.slane %v8233_v41, %v8013_v11 }
  0xa9   :  { %12341 = vst [vmem:[#allocation20_spill] sm:$0xff] %v8229_v8  ;;  %12342 = vst [vmem:[#allocation21_spill] sm:$0xff] %v8231_v55  ;;  %v8238_v43 = vsel %vm1005_vm2, %v996_v35, %v8231_v55  ;;  %v8260_v34 = vor.u32 %v6900_v25, %v6899_v50  ;;  %v448_v50 = vrot.slane %v8233_v41, %v8028_v22 }
  0xaa   :  { %12343 = vst [vmem:[#allocation22_spill] sm:$0xff] %v8238_v43  ;;  %1096 = vst [vmem:[#allocation2 + $0x188] sm:$0x33] %v7316_v45  ;;  %v2843_v30 = vmul.f32 %v2815_v3, %v8238_v43  ;;  %1341 = vrot.lane.b32.xlu1 %v7760_v4, %s7650_s16  ;;  %1339 = vrot.lane.b32.xlu0 %v7711_v0, %s7650_s16  ;;  %v2354_v25 = vrot.slane %v7969_v51, %v8013_v11 }
  0xab   :  { %2699 = vst [vmem:[#allocation2 + $0xd0] sm:$0x33] %v7380_v36  ;;  %v680_v55 = vrot.slane %v8260_v34, %v8028_v22 }
  0xac   :  { %v7388_v38 = vpack.c.bf16 %v2843_v30, %v2842_v23  ;;  %v8256_v27 = vpop.permute.xlu1 %179  ;;  %v178_v35 = vpop.permute.xlu0 %177  ;;  %v2358_v23 = vrot.slane %v7969_v51, %v8028_v22  ;;  %v676_v30 = vrot.slane %v8260_v34, %v8013_v11 }
  0xad   :  { %v8265_v3 = vsel %vm12218_vm7, %v178_v35, %v8256_v27  ;;  %v8270_v20 = vsel %vm12218_vm7, %v8229_v8, %v178_v35 }
  0xae   :  { %12344 = vst [vmem:[#allocation23_spill] sm:$0xff] %v8270_v20  ;;  %v7528_v31 = vld [vmem:[#allocation2 + $0x54] ss:$184 sps:$4 sm:$0xff]   ;;  %v7530_v54 = vld [vmem:[#allocation2 + $0x50] ss:$184 sps:$4 sm:$0xff]   ;;  %v2201_v45 = vmul.f32 %v2164_v61, %v8270_v20  ;;  %v2202_v36 = vmul.f32 %v2168_v63, %v8265_v3  ;;  %771 = vrot.lane.b32.xlu1 %v7868_v13, %s7635_s18  ;;  %539 = vrot.lane.b32.xlu0 %v7868_v13, %s7641_s25 }
  0xaf   :  { %2881 = vst [vmem:[#allocation2 + $0x190] sm:$0x33] %v7388_v38  ;;  %3235 = vmatprep.subr.bf16.mxu0 %v7528_v31  ;;  %v2540_v20 = vrot.slane %v8034_v29, %v8028_v22 }
  0xb0   :  { %v7359_v61 = vpack.c.bf16 %v2202_v36, %v2201_v45  ;;  %v8286_v63 = vpop.permute.xlu1 %415  ;;  %v414_v38 = vpop.permute.xlu0 %413  ;;  %3236 = vmatpush1.bf16.msra.mxu0 %v7530_v54  ;;  %v6969_v45 = vld [vmem:[%s12114_s1 + $0x81] ss:$8 sm:$0xf]  ;;  %v475_v54 = vmul.f32 %v444_v26, %v8020_v18 }
  0xb1   :  { %12345 = vst [vmem:[#allocation24_spill] sm:$0xff] %v8286_v63  ;;  %v8291_v35 = vsel %vm423_vm3, %v414_v38, %v8286_v63  ;;  %v428_v31 = vsel %vm423_vm3, %v8010_v7, %v414_v38  ;;  %v6970_v7 = vld [vmem:[%s12114_s1 + $0x81] ss:$8 sm:$0xf0] }
  0xb2   :  { %12346 = vst [vmem:[#allocation25_spill] sm:$0xff] %v8291_v35  ;;  %v2237_v36 = vrot.slane %v7359_v61, 6  ;;  %v476_v8 = vmul.f32 %v448_v50, %v428_v31  ;;  %v2385_v63 = vmul.f32 %v2354_v25, %v428_v31  ;;  %1227 = vrot.lane.b32.xlu1 %v7760_v4, %s7651_s11  ;;  %v2386_v38 = vmul.f32 %v2358_v23, %v8291_v35 }
  0xb3   :  { %1225 = vrot.lane.b32.xlu0 %v7711_v0, %s7651_s11  ;;  %v8324_v0 = vor.u32 %v6970_v7, %v6969_v45  ;;  %v707_v31 = vmul.f32 %v676_v30, %v8076_v56  ;;  %v6976_v56 = vld [vmem:[%s12114_s1 + $0x82] ss:$8 sm:$0xf0] }
  0xb4   :  { %2245 = vst [vmem:[#allocation2 + $0x1b0] sm:$0xcc] %v2237_v36  ;;  %v7296_v18 = vpack.c.bf16 %v476_v8, %v475_v54  ;;  %v8314_v26 = vpop.permute.xlu1 %647  ;;  %v646_v50 = vpop.permute.xlu0 %645  ;;  %v7368_v25 = vpack.c.bf16 %v2386_v38, %v2385_v63  ;;  %v2934_v63 = vld [vmem:[#allocation2 + $0xd0] sm:$0xff] }
  0xb5   :  { %12347 = vst [vmem:[#allocation26_spill] sm:$0xff] %v8314_v26  ;;  %v8319_v4 = vsel %vm655_vm4, %v646_v50, %v8314_v26  ;;  %v660_v23 = vsel %vm655_vm4, %v8068_v49, %v646_v50  ;;  %12349 = vst [vmem:[#allocation28_spill] sm:$0xff] %v8324_v0  ;;  %v6975_v38 = vld [vmem:[%s12114_s1 + $0x82] ss:$8 sm:$0xf] }
  0xb6   :  { %12348 = vst [vmem:[#allocation27_spill] sm:$0xff] %v8319_v4  ;;  %v2938_v61 = vld [vmem:[#allocation2 + $0x190] sm:$0xff]  ;;  %v510_v36 = vrot.slane %v7296_v18, 6  ;;  %v708_v8 = vmul.f32 %v680_v55, %v660_v23  ;;  %v2567_v54 = vmul.f32 %v2536_v37, %v660_v23  ;;  %421 = vrot.lane.b32.xlu1 %v7868_v13, %s12228_s20  ;;  %v2420_v26 = vrot.slane %v7368_v25, 6 }
  0xb7   :  { %v2568_v35 = vmul.f32 %v2540_v20, %v8319_v4  ;;  %189 = vrot.lane.b32.xlu0 %v7868_v13, %s12229_s26  ;;  %v7080_v49 = vcombine.high %v2934_v63, %v2938_v61  ;;  %v7079_v45 = vcombine.low %v2934_v63, %v2938_v61  ;;  %v6881_v20 = vld [vmem:[%s12114_s1 + $0x2] ss:$8 sm:$0xf]  ;;  %v1982_v25 = vrot.slane %v8324_v0, %v7877_v15  ;;  %v6893_v63 = vld [vmem:[%s12114_s1 + $0x4] ss:$8 sm:$0xf] }
  0xb8   :  { %518 = vst [vmem:[#allocation2 + $0xf0] sm:$0xcc] %v510_v36  ;;  %v7304_v37 = vpack.c.bf16 %v708_v8, %v707_v31  ;;  %v1956_v55 = vpop.permute.xlu1 %1955  ;;  %v8339_v30 = vpop.permute.xlu0 %1953  ;;  %v6882_v7 = vld [vmem:[%s12114_s1 + $0x2] ss:$8 sm:$0xf0]  ;;  %v1986_v23 = vrot.slane %v8324_v0, %v7880_v16  ;;  %v8353_v61 = vor.u32 %v6976_v56, %v6975_v38 }
  0xb9   :  { %12350 = vst [vmem:[#allocation29_spill] sm:$0xff] %v8339_v30  ;;  %2428 = vst [vmem:[#allocation2 + $0x58] sm:$0xcc] %v2420_v26  ;;  %v7376_v18 = vpack.c.bf16 %v2568_v35, %v2567_v54  ;;  %3274 = vmatprep.subr.bf16.mxu1 %v7080_v49  ;;  %v1976_v26 = vsel %vm12223_vm8, %v8339_v30, %v1956_v55  ;;  %v8362_v35 = vcombine.high %v7769_v5, %v7769_v5  ;;  %v6894_v5 = vld [vmem:[%s12114_s1 + $0x4] ss:$8 sm:$0xf0] }
  0xba   :  { %v742_v50 = vrot.slane %v7304_v37, 6  ;;  %3275 = vmatpush1.bf16.msra.mxu1 %v7079_v45  ;;  %307 = vrot.lane.b32.xlu1 %v7868_v13, %s12160_s24  ;;  %12351 = vst [vmem:[#allocation30_spill] sm:$0xff] %v8353_v61  ;;  %v8364_v36 = vor.u32 %v6882_v7, %v6881_v20  ;;  %v2019_v49 = vmul.f32 %v1982_v25, %v1976_v26 }
  0xbb   :  { %v2602_v31 = vrot.slane %v7376_v18, 6  ;;  %73 = vrot.lane.b32.xlu0 %v7868_v13, %s7644_s28  ;;  %v2075_v56 = vrot.slane %v8353_v61, %v7877_v15  ;;  %v2079_v37 = vrot.slane %v8353_v61, %v7880_v16  ;;  %v2447_v30 = vrot.slane %v8137_v62, %v8013_v11 }
  0xbc   :  { %750 = vst [vmem:[#allocation2 + $0x130] sm:$0xcc] %v742_v50  ;;  %v8366_v8 = vpop.permute.xlu1 %59  ;;  %v8368_v54 = vpop.permute.xlu0 %1957  ;;  %v8392_v50 = vor.u32 %v6894_v5, %v6893_v63  ;;  %v2265_v63 = vrot.slane %v8080_v60, %v8013_v11  ;;  %v2269_v5 = vrot.slane %v8080_v60, %v8028_v22  ;;  %v2451_v60 = vrot.slane %v8137_v62, %v8028_v22 }
  0xbd   :  { %12352 = vst [vmem:[#allocation31_spill] sm:$0xff] %v8366_v8  ;;  %2610 = vst [vmem:[#allocation2 + $0x18] sm:$0xcc] %v2602_v31  ;;  %v1975_v38 = vsel %vm12223_vm8, %v1956_v55, %v8368_v54  ;;  %v330_v55 = vrot.slane %v8364_v36, %v8013_v11  ;;  %v334_v31 = vrot.slane %v8364_v36, %v8028_v22 }
  0xbe   :  { %v2020_v45 = vmul.f32 %v1986_v23, %v1975_v38  ;;  %883 = vrot.lane.b32.xlu1 %v7852_v9, %s7634_s17 }
  0xbf   :  { %881 = vrot.lane.b32.xlu0 %v8362_v35, %s7634_s17  ;;  %v361_v32 = vmul.f32 %v330_v55, %v8127_v2 }
  0xc0   :  { %v7351_v20 = vpack.c.bf16 %v2020_v45, %v2019_v49  ;;  %v8390_v7 = vpop.permute.xlu1 %63  ;;  %v62_v18 = vpop.permute.xlu0 %61  ;;  %v562_v45 = vrot.slane %v8392_v50, %v8013_v11 }
  0xc1   :  { %v8397_v25 = vsel %vm77_vm9, %v62_v18, %v8390_v7  ;;  %v8402_v23 = vsel %vm77_vm9, %v8366_v8, %v62_v18  ;;  %v566_v18 = vrot.slane %v8392_v50, %v8028_v22  ;;  %v6876_v8 = vld [vmem:[%s12114_s1 + $0x1] ss:$8 sm:$0xf0] }
  0xc2   :  { %12353 = vst [vmem:[#allocation32_spill] sm:$0xff] %v8402_v23  ;;  %v2055_v26 = vrot.slane %v7351_v20, 6  ;;  %v2112_v38 = vmul.f32 %v2075_v56, %v8402_v23  ;;  %769 = vrot.lane.b32.xlu1 %v7852_v9, %s7635_s18  ;;  %v2113_v49 = vmul.f32 %v2079_v37, %v8397_v25  ;;  %v6875_v37 = vld [vmem:[%s12114_s1 + $0x1] ss:$8 sm:$0xf] }
  0xc3   :  { %767 = vrot.lane.b32.xlu0 %v8362_v35, %s7635_s18 }
  0xc4   :  { %2063 = vst [vmem:[#allocation2 + $0x20] sm:$0xcc] %v2055_v26  ;;  %v8418_v20 = vpop.permute.xlu1 %301  ;;  %v300_v56 = vpop.permute.xlu0 %299  ;;  %v7355_v23 = vpack.c.bf16 %v2113_v49, %v2112_v38  ;;  %v6963_v38 = vld [vmem:[%s12114_s1 + $0x80] ss:$8 sm:$0xf] }
  0xc5   :  { %12354 = vst [vmem:[#allocation33_spill] sm:$0xff] %v8418_v20  ;;  %v8433_v26 = vsel %vm309_vm5, %v300_v56, %v8418_v20  ;;  %v314_v4 = vsel %vm309_vm5, %v8120_v48, %v300_v56  ;;  %v6964_v48 = vld [vmem:[%s12114_s1 + $0x80] ss:$8 sm:$0xf0]  ;;  %v593_v56 = vmul.f32 %v562_v45, %v8182_v59 }
  0xc6   :  { %12355 = vst [vmem:[#allocation34_spill] sm:$0xff] %v8433_v26  ;;  %v362_v21 = vmul.f32 %v334_v31, %v314_v4  ;;  %v2296_v43 = vmul.f32 %v2265_v63, %v314_v4  ;;  %v2297_v51 = vmul.f32 %v2269_v5, %v8433_v26  ;;  %1001 = vrot.lane.b32.xlu1 %v7852_v9, %s7636_s19  ;;  %2152 = vst [vmem:[#allocation2 + $0x1b0] sm:$0x33] %v7355_v23  ;;  %v6957_v59 = vld [vmem:[%s12114_s1 + $0x47] ss:$8 sm:$0xf] }
  0xc7   :  { %999 = vrot.lane.b32.xlu0 %v8362_v35, %s7636_s19  ;;  %v8454_v63 = vor.u32 %v6876_v8, %v6875_v37  ;;  %v8464_v23 = vor.u32 %v6964_v48, %v6963_v38  ;;  %v6958_v38 = vld [vmem:[%s12114_s1 + $0x47] ss:$8 sm:$0xf0] }
  0xc8   :  { %v7292_v2 = vpack.c.bf16 %v362_v21, %v361_v32  ;;  %v7364_v55 = vpack.c.bf16 %v2297_v51, %v2296_v43  ;;  %v8452_v4 = vpop.permute.xlu1 %533  ;;  %v532_v31 = vpop.permute.xlu0 %531 }
  0xc9   :  { %12356 = vst [vmem:[#allocation35_spill] sm:$0xff] %v8452_v4  ;;  %v8459_v5 = vsel %vm12217_vm6, %v532_v31, %v8452_v4  ;;  %v546_v49 = vsel %vm12217_vm6, %v8174_v46, %v532_v31  ;;  %12358 = vst [vmem:[#allocation37_spill] sm:$0xff] %v8464_v23  ;;  %v216_v45 = vrot.slane %v8454_v63, %v8028_v22 }
  0xca   :  { %12357 = vst [vmem:[#allocation36_spill] sm:$0xff] %v8459_v5  ;;  %400 = vst [vmem:[#allocation2 + $0xf0] sm:$0x33] %v7292_v2  ;;  %v594_v21 = vmul.f32 %v566_v18, %v546_v49  ;;  %v2478_v51 = vmul.f32 %v2447_v30, %v546_v49  ;;  %v2479_v32 = vmul.f32 %v2451_v60, %v8459_v5  ;;  %419 = vrot.lane.b32.xlu1 %v7852_v9, %s12228_s20 }
  0xcb   :  { %2335 = vst [vmem:[#allocation2 + $0x58] sm:$0x33] %v7364_v55  ;;  %417 = vrot.lane.b32.xlu0 %v8362_v35, %s12228_s20  ;;  %v212_v60 = vrot.slane %v8454_v63, %v8013_v11  ;;  %v1868_v30 = vrot.slane %v8464_v23, %v7877_v15  ;;  %v1872_v18 = vrot.slane %v8464_v23, %v7880_v16 }
  0xcc   :  { %v7300_v43 = vpack.c.bf16 %v594_v21, %v593_v56  ;;  %v7372_v8 = vpack.c.bf16 %v2479_v32, %v2478_v51  ;;  %v1842_v37 = vpop.permute.xlu1 %1841  ;;  %v8473_v46 = vpop.permute.xlu0 %1839  ;;  %v2172_v2 = vrot.slane %v8218_v6, %v8013_v11  ;;  %v2176_v21 = vrot.slane %v8218_v6, %v8028_v22 }
  0xcd   :  { %12359 = vst [vmem:[#allocation38_spill] sm:$0xff] %v8473_v46  ;;  %v1862_v48 = vsel %vm12220_vm10, %v8473_v46, %v1842_v37  ;;  %v8508_v51 = vor.u32 %v6958_v38, %v6957_v59  ;;  %v243_v32 = vmul.f32 %v212_v60, %v8265_v3 }
  0xce   :  { %632 = vst [vmem:[#allocation2 + $0x130] sm:$0x33] %v7300_v43  ;;  %2517 = vst [vmem:[#allocation2 + $0x18] sm:$0x33] %v7372_v8  ;;  %651 = vrot.lane.b32.xlu1 %v7852_v9, %s7639_s21  ;;  %v1905_v43 = vmul.f32 %v1868_v30, %v1862_v48 }
  0xcf   :  { %649 = vrot.lane.b32.xlu0 %v8362_v35, %s7639_s21  ;;  %12360 = vst [vmem:[#allocation39_spill] sm:$0xff] %v8508_v51 }
  0xd0   :  { %v182_v55 = vpop.permute.xlu1 %181  ;;  %v8498_v31 = vpop.permute.xlu0 %1843 }
  0xd1   :  { %v196_v49 = vsel %vm12218_vm7, %v8256_v27, %v182_v55  ;;  %v1861_v56 = vsel %vm12220_vm10, %v1842_v37, %v8498_v31  ;;  %v44_v27 = vld [vmem:[%s12114_s1] ss:$8 sm:$0xf] }
  0xd2   :  { %v244_v8 = vmul.f32 %v216_v45, %v196_v49  ;;  %v1906_v46 = vmul.f32 %v1872_v18, %v1861_v56  ;;  %305 = vrot.lane.b32.xlu1 %v7852_v9, %s12160_s24  ;;  %v2926_v60 = vld [vmem:[#allocation2 + $0x58] sm:$0xff]  ;;  %v1750_v45 = vrot.slane %v8508_v51, %v7877_v15  ;;  %v1754_v18 = vrot.slane %v8508_v51, %v7880_v16 }
  0xd3   :  { %303 = vrot.lane.b32.xlu0 %v8362_v35, %s12160_s24  ;;  %v2203_v48 = vmul.f32 %v2172_v2, %v196_v49  ;;  %v1990_v49 = vrot.slane %v8324_v0, %v8013_v11  ;;  %s12374_s24 = smov 127  }
  0xd4   :  { %v7288_v37 = vpack.c.bf16 %v244_v8, %v243_v32  ;;  %v7347_v4 = vpack.c.bf16 %v1906_v46, %v1905_v43  ;;  %v8518_v20 = vpop.permute.xlu1 %1721  ;;  %v8520_v59 = vpop.permute.xlu0 %183  ;;  %v45_v46 = vld [vmem:[%s12114_s1] ss:$8 sm:$0xf0] }
  0xd5   :  { %12361 = vst [vmem:[#allocation40_spill] sm:$0xff] %v8518_v20  ;;  %12362 = vst [vmem:[#allocation41_spill] sm:$0xff] %v8520_v59  ;;  %v8525_v3 = vsel %vm12218_vm7, %v182_v55, %v8520_v59  ;;  %v2930_v30 = vld [vmem:[#allocation2 + $0x18] sm:$0xff]  ;;  %v8542_v5 = vor.u32 %v45_v46, %v44_v27  ;;  %v1994_v27 = vrot.slane %v8324_v0, %v8028_v22 }
  0xd6   :  { %12363 = vst [vmem:[#allocation42_spill] sm:$0xff] %v8525_v3  ;;  %v278_v38 = vrot.slane %v7288_v37, 6  ;;  %1945 = vst [vmem:[#allocation2 + $0x20] sm:$0x33] %v7347_v4  ;;  %v2204_v55 = vmul.f32 %v2176_v21, %v8525_v3  ;;  %537 = vrot.lane.b32.xlu1 %v7852_v9, %s7641_s25  ;;  %v7072_v56 = vcombine.high %v2926_v60, %v2930_v30 }
  0xd7   :  { %535 = vrot.lane.b32.xlu0 %v8362_v35, %s7641_s25  ;;  %v7071_v32 = vcombine.low %v2926_v60, %v2930_v30  ;;  %v790_v3 = vrot.slane %v8122_v57, %v7880_v16  ;;  %v1022_v0 = vrot.slane %v8153_v33, %v7880_v16 }
  0xd8   :  { %286 = vst [vmem:[#allocation2 + $0x148] sm:$0xcc] %v278_v38  ;;  %v7360_v43 = vpack.c.bf16 %v2204_v55, %v2203_v48  ;;  %v8540_v8 = vpop.permute.xlu1 %1725  ;;  %3276 = vmatprep.subr.bf16.mxu1 %v7072_v56  ;;  %v1724_v59 = vpop.permute.xlu0 %1723  ;;  %v6941_v38 = vld [vmem:[%s12114_s1 + $0x44] ss:$8 sm:$0xf]  ;;  %v102_v56 = vrot.slane %v8542_v5, %v8028_v22 }
  0xd9   :  { %v1743_v4 = vsel %vm12186_vm11, %v1724_v59, %v8540_v8  ;;  %v1744_v2 = vsel %vm12186_vm11, %v8518_v20, %v1724_v59  ;;  %3277 = vmatpush1.bf16.msra.mxu1 %v7071_v32 }
  0xda   :  { %v2238_v21 = vrot.slane %v7360_v43, 6  ;;  %v1787_v37 = vmul.f32 %v1750_v45, %v1744_v2  ;;  %v1788_v60 = vmul.f32 %v1754_v18, %v1743_v4  ;;  %187 = vrot.lane.b32.xlu1 %v7852_v9, %s12229_s26  ;;  %v98_v45 = vrot.slane %v8542_v5, %v8013_v11 }
  0xdb   :  { %185 = vrot.lane.b32.xlu0 %v8362_v35, %s12229_s26 }
  0xdc   :  { %2246 = vst [vmem:[#allocation2 + $0xe0] sm:$0xcc] %v2238_v21  ;;  %v7343_v30 = vpack.c.bf16 %v1788_v60, %v1787_v37  ;;  %v8558_v46 = vpop.permute.xlu1 %1961  ;;  %v1960_v59 = vpop.permute.xlu0 %1959  ;;  %v2083_v21 = vrot.slane %v8353_v61, %v8013_v11  ;;  %v6942_v37 = vld [vmem:[%s12114_s1 + $0x44] ss:$8 sm:$0xf0] }
  0xdd   :  { %12364 = vst [vmem:[#allocation43_spill] sm:$0xff] %v8558_v46  ;;  %v1973_v18 = vsel %vm12223_vm8, %v1960_v59, %v8558_v46  ;;  %v1974_v48 = vsel %vm12223_vm8, %v8368_v54, %v1960_v59  ;;  %v7532_v55 = vld [vmem:[#allocation2 + $0x24] ss:$400 sps:$4 sm:$0xff]   ;;  %v7534_v32 = vld [vmem:[#allocation2 + $0x20] ss:$400 sps:$4 sm:$0xff]   ;;  %v2087_v54 = vrot.slane %v8353_v61, %v8028_v22 }
  0xde   :  { %v1823_v43 = vrot.slane %v7343_v30, 6  ;;  %v2021_v4 = vmul.f32 %v1990_v49, %v1974_v48  ;;  %v2022_v2 = vmul.f32 %v1994_v27, %v1973_v18  ;;  %1965 = vrot.lane.b32.xlu1 %v7852_v9, %s12226_s27  ;;  %3237 = vmatprep.subr.bf16.mxu0 %v7532_v55  ;;  %v8594_v18 = vor.u32 %v6942_v37, %v6941_v38 }
  0xdf   :  { %1963 = vrot.lane.b32.xlu0 %v8362_v35, %s12226_s27  ;;  %3238 = vmatpush1.bf16.msra.mxu0 %v7534_v32  ;;  %v129_v48 = vmul.f32 %v98_v45, %v8397_v25  ;;  %v6951_v25 = vld [vmem:[%s12114_s1 + $0x46] ss:$8 sm:$0xf] }
  0xe0   :  { %1831 = vst [vmem:[#allocation2 + $0x1a0] sm:$0xcc] %v1823_v43  ;;  %v7352_v49 = vpack.c.bf16 %v2022_v2, %v2021_v4  ;;  %v8584_v60 = vpop.permute.xlu1 %67  ;;  %v66_v27 = vpop.permute.xlu0 %65  ;;  %12367 = vst [vmem:[#allocation46_spill] sm:$0xff] %v8594_v18  ;;  %v6952_v45 = vld [vmem:[%s12114_s1 + $0x46] ss:$8 sm:$0xf0]  ;;  %v1482_v37 = vrot.slane %v8594_v18, %v7877_v15 }
  0xe1   :  { %12365 = vst [vmem:[#allocation44_spill] sm:$0xff] %v8584_v60  ;;  %v8589_v30 = vsel %vm77_vm9, %v66_v27, %v8584_v60  ;;  %v82_v59 = vsel %vm77_vm9, %v8390_v7, %v66_v27 }
  0xe2   :  { %12366 = vst [vmem:[#allocation45_spill] sm:$0xff] %v8589_v30  ;;  %v2056_v55 = vrot.slane %v7352_v49, 6  ;;  %v130_v43 = vmul.f32 %v102_v56, %v82_v59  ;;  %v2114_v4 = vmul.f32 %v2083_v21, %v82_v59  ;;  %71 = vrot.lane.b32.xlu1 %v7852_v9, %s7644_s28  ;;  %v2115_v32 = vmul.f32 %v2087_v54, %v8589_v30 }
  0xe3   :  { %69 = vrot.lane.b32.xlu0 %v8362_v35, %s7644_s28  ;;  %v1486_v21 = vrot.slane %v8594_v18, %v7880_v16  ;;  %v8622_v49 = vor.u32 %v6952_v45, %v6951_v25 }
  0xe4   :  { %2064 = vst [vmem:[#allocation2 + $0x88] sm:$0xcc] %v2056_v55  ;;  %v7284_v2 = vpack.c.bf16 %v130_v43, %v129_v48  ;;  %v8603_v7 = vpop.permute.xlu1 %1455  ;;  %v1454_v38 = vpop.permute.xlu0 %1453  ;;  %v7356_v56 = vpack.c.bf16 %v2115_v32, %v2114_v4 }
  0xe5   :  { %v1476_v54 = vsel %vm12221_vm12, %v1454_v38, %v8603_v7  ;;  %12368 = vst [vmem:[#allocation47_spill] sm:$0xff] %v8622_v49  ;;  %v1636_v4 = vrot.slane %v8622_v49, %v7877_v15  ;;  %v1640_v32 = vrot.slane %v8622_v49, %v7880_v16 }
  0xe6   :  { %168 = vst [vmem:[#allocation2 + $0x148] sm:$0x33] %v7284_v2  ;;  %1851 = vrot.lane.b32.xlu1 %v7852_v9, %s12224_s29  ;;  %2153 = vst [vmem:[#allocation2 + $0xe0] sm:$0x33] %v7356_v56  ;;  %v1520_v55 = vmul.f32 %v1486_v21, %v1476_v54  ;;  %v8643_v2 = vld [vmem:[%s12113_s0 + $0x10] sm:$0xff] }
  0xe7   :  { %1849 = vrot.lane.b32.xlu0 %v8362_v35, %s12224_s29 }
  0xe8   :  { %v8624_v27 = vpop.permute.xlu1 %1607  ;;  %v8626_v59 = vpop.permute.xlu0 %1467 }
  0xe9   :  { %12369 = vst [vmem:[#allocation48_spill] sm:$0xff] %v8624_v27  ;;  %12370 = vst [vmem:[#allocation49_spill] sm:$0xff] %v8626_v59  ;;  %v1477_v48 = vsel %vm12221_vm12, %v8626_v59, %v1454_v38  ;;  %v7337_v38 = vpack.c.bf16 %v8362_v35, %v8643_v2 }
  0xea   :  { %v1519_v43 = vmul.f32 %v1482_v37, %v1477_v48  ;;  %1733 = vrot.lane.b32.xlu1 %v7852_v9, %s12371_s30 }
  0xeb   :  { %1731 = vrot.lane.b32.xlu0 %v8362_v35, %s12371_s30  ;;  %v1593_v56 = vrot.slane %v7337_v38, 6 }
  0xec   :  { %v7331_v9 = vpack.c.bf16 %v1520_v55, %v1519_v43  ;;  %v8647_v25 = vpop.permute.xlu1 %1611  ;;  %v1610_v45 = vpop.permute.xlu0 %1609  ;;  %v1876_v55 = vrot.slane %v8464_v23, %v8013_v11  ;;  %v1880_v43 = vrot.slane %v8464_v23, %v8028_v22  ;;  %v8755_v23 = vsub.s32 6, %v7858_v10 }
  0xed   :  { %v1629_v21 = vsel %vm12219_vm13, %v1610_v45, %v8647_v25  ;;  %v1630_v37 = vsel %vm12219_vm13, %v8624_v27, %v1610_v45  ;;  %1601 = vst [vmem:[#allocation2 + $0x158] sm:$0xcc] %v1593_v56 }
  0xee   :  { %1559 = vst [vmem:[#allocation2 + $0x70] sm:$0x33] %v7331_v9  ;;  %1461 = vrot.lane.b32.xlu1 %v8643_v2, %s12372_s13  ;;  %v1673_v54 = vmul.f32 %v1636_v4, %v1630_v37  ;;  %v1674_v48 = vmul.f32 %v1640_v32, %v1629_v21  ;;  %v6923_v9 = vld [vmem:[%s12114_s1 + $0x41] ss:$8 sm:$0xf]  ;;  %12382 = vst [vmem:[#allocation58_spill] sm:$0xff] %v8755_v23 }
  0xef   :  { %1967 = vrot.lane.b32.xlu0 %v7868_v13, %s12226_s27  ;;  %v6924_v4 = vld [vmem:[%s12114_s1 + $0x41] ss:$8 sm:$0xf0] }
  0xf0   :  { %v8663_v38 = vpop.permute.xlu1 %1847  ;;  %v7339_v32 = vpack.c.bf16 %v1674_v48, %v1673_v54  ;;  %v1846_v45 = vpop.permute.xlu0 %1845  ;;  %v8681_v59 = vor.u32 %v6924_v4, %v6923_v9  ;;  %v6935_v54 = vld [vmem:[%s12114_s1 + $0x43] ss:$8 sm:$0xf] }
  0xf1   :  { %12373 = vst [vmem:[#allocation50_spill] sm:$0xff] %v8663_v38  ;;  %v1859_v21 = vsel %vm12220_vm10, %v1846_v45, %v8663_v38  ;;  %v1860_v56 = vsel %vm12220_vm10, %v8498_v31, %v1846_v45  ;;  %v6936_v48 = vld [vmem:[%s12114_s1 + $0x43] ss:$8 sm:$0xf0] }
  0xf2   :  { %1617 = vrot.lane.b32.xlu1 %v8362_v35, %s12374_s24  ;;  %1713 = vst [vmem:[#allocation2 + $0x1a0] sm:$0x33] %v7339_v32  ;;  %v1907_v37 = vmul.f32 %v1876_v55, %v1860_v56  ;;  %v1908_v27 = vmul.f32 %v1880_v43, %v1859_v21  ;;  %12375 = vst [vmem:[#allocation51_spill] sm:$0xff] %v8681_v59  ;;  %v8694_v43 = vor.u32 %v6936_v48, %v6935_v54  ;;  %v8701_v4 = vld [vmem:[%s12113_s0 + $0x18] sm:$0xff] }
  0xf3   :  { %1463 = vrot.lane.b32.xlu0 %v8362_v35, %s12372_s13  ;;  %v1136_v9 = vrot.slane %v8681_v59, %v7880_v16 }
  0xf4   :  { %v8689_v31 = vpop.permute.xlu1 %1105  ;;  %v7348_v45 = vpack.c.bf16 %v1908_v27, %v1907_v37  ;;  %v1104_v55 = vpop.permute.xlu0 %1103  ;;  %12377 = vst [vmem:[#allocation53_spill] sm:$0xff] %v8694_v43  ;;  %v1132_v27 = vrot.slane %v8681_v59, %v7877_v15  ;;  %v1364_v54 = vrot.slane %v8694_v43, %v7877_v15  ;;  %v1368_v60 = vrot.slane %v8694_v43, %v7880_v16 }
  0xf5   :  { %12376 = vst [vmem:[#allocation52_spill] sm:$0xff] %v8689_v31  ;;  %v1126_v32 = vsel %vm1119_vm14, %v1104_v55, %v8689_v31 }
  0xf6   :  { %1853 = vrot.lane.b32.xlu1 %v7868_v13, %s12224_s29  ;;  %1946 = vst [vmem:[#allocation2 + $0x88] sm:$0x33] %v7348_v45  ;;  %v1170_v20 = vmul.f32 %v1136_v9, %v1126_v32  ;;  %v6929_v9 = vld [vmem:[%s12114_s1 + $0x42] ss:$8 sm:$0xf] }
  0xf7   :  { %1619 = vrot.lane.b32.xlu0 %v8701_v4, %s12374_s24 }
  0xf8   :  { %v1336_v21 = vpop.permute.xlu1 %1335  ;;  %v8710_v56 = vpop.permute.xlu0 %1117 }
  0xf9   :  { %12378 = vst [vmem:[#allocation54_spill] sm:$0xff] %v8710_v56  ;;  %v1127_v37 = vsel %vm1119_vm14, %v8710_v56, %v1104_v55  ;;  %v7535_v48 = vld [vmem:[#allocation2 + $0x74] ss:$304 sps:$4 sm:$0xff]   ;;  %v7537_v45 = vld [vmem:[#allocation2 + $0x70] ss:$304 sps:$4 sm:$0xff]  }
  0xfa   :  { %1113 = vrot.lane.b32.xlu1 %v8362_v35, %s7649_s23  ;;  %v1169_v38 = vmul.f32 %v1132_v27, %v1127_v37  ;;  %3239 = vmatprep.subr.bf16.mxu0 %v7535_v48  ;;  %v8735_v27 = vsub.s32 4, %v7858_v10 }
  0xfb   :  { %1111 = vrot.lane.b32.xlu0 %v8643_v2, %s7649_s23  ;;  %3240 = vmatpush1.bf16.msra.mxu0 %v7537_v45  ;;  %v1758_v45 = vrot.slane %v8508_v51, %v8013_v11 }
  0xfc   :  { %v8724_v30 = vpop.permute.xlu1 %1349  ;;  %v7319_v55 = vpack.c.bf16 %v1170_v20, %v1169_v38  ;;  %v8729_v46 = vpop.permute.xlu0 %1337 }
  0xfd   :  { %12379 = vst [vmem:[#allocation55_spill] sm:$0xff] %v8724_v30  ;;  %v1359_v56 = vsel %vm12222_vm15, %v8724_v30, %v1336_v21  ;;  %12380 = vst [vmem:[#allocation56_spill] sm:$0xff] %v8729_v46  ;;  %v1358_v37 = vsel %vm12222_vm15, %v1336_v21, %v8729_v46  ;;  %v7538_v20 = vld [vmem:[#allocation2 + $0x8c] ss:$88 sps:$4 sm:$0xff]   ;;  %v7540_v38 = vld [vmem:[#allocation2 + $0x88] ss:$88 sps:$4 sm:$0xff]  }
  0xfe   :  { %v1401_v32 = vmul.f32 %v1364_v54, %v1359_v56  ;;  %1345 = vrot.lane.b32.xlu1 %v8362_v35, %s7650_s16  ;;  %v1205_v48 = vrot.slane %v7319_v55, 6  ;;  %v1402_v30 = vmul.f32 %v1368_v60, %v1358_v37  ;;  %v1762_v56 = vrot.slane %v8508_v51, %v8028_v22  ;;  %v6930_v21 = vld [vmem:[%s12114_s1 + $0x42] ss:$8 sm:$0xf0]  ;;  %3278 = vmatprep.subr.bf16.mxu1 %v7538_v20 }
  0xff   :  { %1343 = vrot.lane.b32.xlu0 %v8643_v2, %s7650_s16  ;;  %v8752_v54 = vsub.s32 5, %v7858_v10  ;;  %v8758_v60 = vsub.s32 7, %v7858_v10  ;;  %v7338_v37 = vpack.c.bf16 %v7868_v13, %v8701_v4  ;;  %v904_v51 = vrot.slane %v8015_v12, %v7880_v16  ;;  %3279 = vmatpush1.bf16.msra.mxu1 %v7540_v38 }
 0x100   :  { %v8760_v55 = vpop.permute.xlu1 %1729  ;;  %1213 = vst [vmem:[#allocation2 + $0x60] sm:$0xcc] %v1205_v48  ;;  %v7327_v26 = vpack.c.bf16 %v1402_v30, %v1401_v32  ;;  %v1728_v46 = vpop.permute.xlu0 %1727  ;;  %v8778_v31 = vor.u32 %v6930_v21, %v6929_v9  ;;  %v1018_v30 = vrot.slane %v8153_v33, %v7877_v15  ;;  %v440_v32 = vrot.slane %v8233_v41, %v7880_v16 }
 0x101   :  { %12381 = vst [vmem:[#allocation57_spill] sm:$0xff] %v8752_v54  ;;  %12383 = vst [vmem:[#allocation59_spill] sm:$0xff] %v8760_v55  ;;  %v1741_v20 = vsel %vm12186_vm11, %v1728_v46, %v8760_v55  ;;  %v1742_v10 = vsel %vm12186_vm11, %v8540_v8, %v1728_v46  ;;  %v1594_v54 = vrot.slane %v7338_v37, 6  ;;  %v672_v8 = vrot.slane %v8260_v34, %v7880_v16 }
 0x102   :  { %1229 = vrot.lane.b32.xlu1 %v8643_v2, %s7651_s11  ;;  %12384 = vst [vmem:[#allocation60_spill] sm:$0xff] %v8778_v31  ;;  %v1437_v23 = vrot.slane %v7327_v26, 6  ;;  %v1789_v61 = vmul.f32 %v1758_v45, %v1742_v10  ;;  %v1790_v48 = vmul.f32 %v1762_v56, %v1741_v20  ;;  %v916_v46 = vrot.slane %v8015_v12, %v8735_v27 }
 0x103   :  { %1735 = vrot.lane.b32.xlu0 %v7868_v13, %s12371_s30  ;;  %v326_v26 = vrot.slane %v8364_v36, %v7880_v16  ;;  %1602 = vst [vmem:[#allocation2 + $0xa8] sm:$0xcc] %v1594_v54  ;;  %v558_v2 = vrot.slane %v8392_v50, %v7880_v16  ;;  %vm1237_vm11 = vcmp.lt.s32.totalorder %v7874_v14, 8  ;;  %v8839_v38 = vmul.f32 %v904_v51, %v7915_v28 }
 0x104   :  { %v1222_v10 = vpop.permute.xlu1 %1221  ;;  %1445 = vst [vmem:[#allocation2 + $0xc8] sm:$0xcc] %v1437_v23  ;;  %v7344_v45 = vpack.c.bf16 %v1790_v48, %v1789_v61  ;;  %v8798_v56 = vpop.permute.xlu0 %1003  ;;  %v1250_v23 = vrot.slane %v8778_v31, %v7877_v15  ;;  %v1056_v61 = vmul.f32 %v1022_v0, %v7974_v52  ;;  %v1490_v28 = vrot.slane %v8594_v18, %v8013_v11 }
 0x105   :  { %v8806_v54 = vsel %vm1005_vm2, %v8798_v56, %v7961_v47  ;;  %v1254_v47 = vrot.slane %v8778_v31, %v7880_v16  ;;  %v1494_v51 = vrot.slane %v8594_v18, %v8028_v22  ;;  %v1144_v52 = vrot.slane %v8681_v59, %v8028_v22 }
 0x106   :  { %1465 = vrot.lane.b32.xlu1 %v8701_v4, %s12372_s13  ;;  %v1824_v37 = vrot.slane %v7344_v45, 6  ;;  %v1055_v20 = vmul.f32 %v1018_v30, %v8806_v54  ;;  %v118_v6 = vrot.slane %v8542_v5, %v8758_v60 }
 0x107   :  { %1231 = vrot.lane.b32.xlu0 %v8362_v35, %s7651_s11 }
 0x108   :  { %v8827_v0 = vpop.permute.xlu1 %1235  ;;  %1832 = vst [vmem:[#allocation2 + $0x48] sm:$0xcc] %v1824_v37  ;;  %v7315_v45 = vpack.c.bf16 %v1056_v61, %v1055_v20  ;;  %v8836_v48 = vpop.permute.xlu0 %1223  ;;  %v8849_v61 = vmul.f32 %v790_v3, %v7944_v39  ;;  %v12393_v39 = vld [vmem:[#allocation13_spill] sm:$0xff] }
 0x109   :  { %12385 = vst [vmem:[#allocation61_spill] sm:$0xff] %v8827_v0  ;;  %v1245_v21 = vsel %vm1237_vm11, %v8827_v0, %v1222_v10  ;;  %v1244_v35 = vsel %vm1237_vm11, %v1222_v10, %v8836_v48  ;;  %v8861_v10 = vmul.f32 %v672_v8, %v8060_v44  ;;  %v12388_v44 = vrot.slane %v8122_v57, %v8735_v27 }
 0x10a   :  { %v1287_v9 = vmul.f32 %v1250_v23, %v1245_v21  ;;  %1115 = vrot.lane.b32.xlu1 %v8701_v4, %s7649_s23  ;;  %1095 = vst [vmem:[#allocation2 + $0x60] sm:$0x33] %v7315_v45  ;;  %v1288_v37 = vmul.f32 %v1254_v47, %v1244_v35  ;;  %v8858_v21 = vmul.f32 %v440_v32, %v8025_v19 }
 0x10b   :  { %1621 = vrot.lane.b32.xlu0 %v7868_v13, %s12374_s24  ;;  %v1644_v13 = vrot.slane %v8622_v49, %v8013_v11  ;;  %v1648_v47 = vrot.slane %v8622_v49, %v8028_v22  ;;  %v900_v19 = vrot.slane %v8015_v12, %v7877_v15  ;;  %v8876_v32 = vmul.f32 %v916_v46, %v8099_v1 }
 0x10c   :  { %v8865_v3 = vpop.permute.xlu1 %1459  ;;  %v7323_v23 = vpack.c.bf16 %v1288_v37, %v1287_v9  ;;  %v1458_v20 = vpop.permute.xlu0 %1457  ;;  %v668_v35 = vrot.slane %v8260_v34, %v7877_v15  ;;  %v1140_v46 = vrot.slane %v8681_v59, %v8013_v11  ;;  %v12398_v59 = vld [vmem:[#allocation25_spill] sm:$0xff] }
 0x10d   :  { %12386 = vst [vmem:[#allocation62_spill] sm:$0xff] %v8865_v3  ;;  %v1474_v8 = vsel %vm12221_vm12, %v1458_v20, %v8865_v3  ;;  %v1475_v9 = vsel %vm12221_vm12, %v8603_v7, %v1458_v20  ;;  %v8895_v7 = vmul.f32 %v326_v26, %v8132_v58  ;;  %v12395_v26 = vld [vmem:[#allocation23_spill] sm:$0xff]  ;;  %v12405_v3 = vrot.slane %v8260_v34, %v8735_v27 }
 0x10e   :  { %1233 = vrot.lane.b32.xlu1 %v8701_v4, %s7651_s11  ;;  %1327 = vst [vmem:[#allocation2 + $0xc8] sm:$0x33] %v7323_v23  ;;  %v1521_v45 = vmul.f32 %v1490_v28, %v1475_v9  ;;  %v1522_v37 = vmul.f32 %v1494_v51, %v1474_v8  ;;  %v8909_v51 = vmul.f32 %v558_v2, %v8166_v40  ;;  %v12397_v28 = vld [vmem:[#allocation30_spill] sm:$0xff] }
 0x10f   :  { %1347 = vrot.lane.b32.xlu0 %v8701_v4, %s7650_s16 }
 0x110   :  { %v8897_v20 = vpop.permute.xlu1 %1615  ;;  %v7332_v23 = vpack.c.bf16 %v1522_v37, %v1521_v45  ;;  %v1614_v58 = vpop.permute.xlu0 %1613 }
 0x111   :  { %12387 = vst [vmem:[#allocation63_spill] sm:$0xff] %v8897_v20  ;;  %v1627_v9 = vsel %vm12219_vm13, %v1614_v58, %v8897_v20  ;;  %v1628_v1 = vsel %vm12219_vm13, %v8647_v25, %v1614_v58  ;;  %v8933_v25 = vmul.f32 %v12388_v44, %v8214_v53  ;;  %v12392_v53 = vld [vmem:[#allocation7_spill] sm:$0xff] }
 0x112   :  { %1560 = vst [vmem:[#allocation2 + $0xa0] sm:$0x33] %v7332_v23  ;;  %v1675_v45 = vmul.f32 %v1644_v13, %v1628_v1  ;;  %v1676_v37 = vmul.f32 %v1648_v47, %v1627_v9  ;;  %v12389_v13 = vld [vmem:[#allocation9_spill] sm:$0xff]  ;;  %v12390_v23 = vld [vmem:[#allocation22_spill] sm:$0xff]  ;;  %v12391_v9 = vrot.slane %v8153_v33, %v8735_v27  ;;  %v12396_v47 = vrot.slane %v8454_v63, %v7880_v16 }
 0x114   :  { %v8935_v58 = vpop.permute.xlu1 %885  ;;  %v8947_v30 = vmul.f32 %v12391_v9, %v12390_v23  ;;  %v7340_v8 = vpack.c.bf16 %v1676_v37, %v1675_v45  ;;  %v8955_v2 = vpop.permute.xlu0 %653  ;;  %v8974_v4 = vmul.f32 %v12396_v47, %v12395_v26  ;;  %v12399_v9 = vrot.slane %v8233_v41, %v8735_v27  ;;  %v12401_v26 = vld [vmem:[#allocation58_spill] sm:$0xff] }
 0x115   :  { %v8953_v44 = vsel %vm887_vm0, %v8935_v58, %v12392_v53  ;;  %v8964_v23 = vsel %vm655_vm4, %v8955_v2, %v12393_v39  ;;  %v7541_v45 = vld [vmem:[#allocation2 + $0x64] ss:$104 sps:$4 sm:$0xff]   ;;  %v7543_v37 = vld [vmem:[#allocation2 + $0x60] ss:$104 sps:$4 sm:$0xff]   ;;  %v12394_v53 = vld [vmem:[#allocation14_spill] sm:$0xff] }
 0x116   :  { %v937_v1 = vmul.f32 %v900_v19, %v8953_v44  ;;  %1714 = vst [vmem:[#allocation2 + $0x48] sm:$0x33] %v7340_v8  ;;  %v705_v19 = vmul.f32 %v668_v35, %v8964_v23  ;;  %v8985_v40 = vmul.f32 %v12399_v9, %v12398_v59  ;;  %3241 = vmatprep.subr.bf16.mxu0 %v7541_v45  ;;  %v12402_v39 = vld [vmem:[#allocation57_spill] sm:$0xff]  ;;  %v12403_v9 = vld [vmem:[#allocation52_spill] sm:$0xff] }
 0x117   :  { %3242 = vmatpush1.bf16.msra.mxu0 %v7543_v37 }
 0x118   :  { %v7311_v20 = vpack.c.bf16 %v8839_v38, %v937_v1  ;;  %v8988_v49 = vpop.permute.xlu1 %1109  ;;  %v7303_v47 = vpack.c.bf16 %v8861_v10, %v705_v19  ;;  %v1108_v0 = vpop.permute.xlu0 %1107  ;;  %v12404_v19 = vld [vmem:[#allocation27_spill] sm:$0xff] }
 0x119   :  { %12400 = vst [vmem:[#allocation9_spill] sm:$0xff] %v8988_v49  ;;  %v1124_v45 = vsel %vm1119_vm14, %v1108_v0, %v8988_v49  ;;  %v1125_v10 = vsel %vm1119_vm14, %v12403_v9, %v1108_v0  ;;  %v9013_v59 = vmul.f32 %v12405_v3, %v12404_v19  ;;  %v12409_v9 = vrot.slane %v8694_v43, %v8028_v22 }
 0x11a   :  { %v973_v1 = vrot.slane %v7311_v20, 6  ;;  %v741_v8 = vrot.slane %v7303_v47, 6  ;;  %v1171_v38 = vmul.f32 %v1140_v46, %v1125_v10  ;;  %v1172_v20 = vmul.f32 %v1144_v52, %v1124_v45  ;;  %v12407_v10 = vld [vmem:[#allocation56_spill] sm:$0xff] }
 0x11c   :  { %981 = vst [vmem:[#allocation2 + $0xc0] sm:$0xcc] %v973_v1  ;;  %v9015_v35 = vpop.permute.xlu1 %1341  ;;  %749 = vst [vmem:[#allocation2 + $0x100] sm:$0xcc] %v741_v8  ;;  %v7320_v3 = vpack.c.bf16 %v1172_v20, %v1171_v38  ;;  %v1340_v47 = vpop.permute.xlu0 %1339  ;;  %v12408_v1 = vrot.slane %v8694_v43, %v8013_v11  ;;  %v12433_v43 = vld [vmem:[#allocation28_spill] sm:$0xff] }
 0x11d   :  { %12406 = vst [vmem:[#allocation22_spill] sm:$0xff] %v9015_v35  ;;  %v1356_v45 = vsel %vm12222_vm15, %v1340_v47, %v9015_v35  ;;  %v1357_v19 = vsel %vm12222_vm15, %v12407_v10, %v1340_v47  ;;  %v7544_v8 = vld [vmem:[#allocation2 + $0xa4] ss:$-88 sps:$4 sm:$0xff]   ;;  %v7546_v38 = vld [vmem:[#allocation2 + $0xa0] ss:$-88 sps:$4 sm:$0xff]  }
 0x11e   :  { %v1206_v46 = vrot.slane %v7320_v3, 6  ;;  %v1403_v37 = vmul.f32 %v12408_v1, %v1357_v19  ;;  %v1404_v0 = vmul.f32 %v12409_v9, %v1356_v45  ;;  %3280 = vmatprep.subr.bf16.mxu1 %v7544_v8  ;;  %v2941_v9 = vld [vmem:[%s12115_s3] sm:$0x3]  ;;  %v12411_v1 = vrot.slane %v8122_v57, %v7877_v15 }
 0x11f   :  { %v12410_v19 = vld [vmem:[#allocation8_spill] sm:$0xff]  ;;  %3281 = vmatpush1.bf16.msra.mxu1 %v7546_v38  ;;  %2944 = vperm.xlu0 %7520, %v2941_v9   ;;  %v12414_v9 = vrot.slane %v8542_v5, %v7880_v16  ;;  %v12417_v38 = vld [vmem:[#allocation34_spill] sm:$0xff] }
 0x120   :  { %v9049_v10 = vpop.permute.xlu1 %771  ;;  %1214 = vst [vmem:[#allocation2 + $0x188] sm:$0xcc] %v1206_v46  ;;  %v7328_v45 = vpack.c.bf16 %v1404_v0, %v1403_v37  ;;  %v9068_v20 = vpop.permute.xlu0 %539  ;;  %v12412_v46 = vld [vmem:[#allocation17_spill] sm:$0xff] }
 0x121   :  { %v9066_v8 = vsel %vm12216_vm1, %v9049_v10, %v12410_v19  ;;  %v9080_v37 = vsel %vm12217_vm6, %v9068_v20, %v12412_v46  ;;  %v12413_v19 = vld [vmem:[#allocation32_spill] sm:$0xff] }
 0x122   :  { %v823_v3 = vmul.f32 %v12411_v1, %v9066_v8  ;;  %v9090_v52 = vmul.f32 %v12414_v9, %v12413_v19  ;;  %v1438_v47 = vrot.slane %v7328_v45, 6  ;;  %v12415_v1 = vrot.slane %v8392_v50, %v7877_v15  ;;  %v12421_v45 = vld [vmem:[#allocation36_spill] sm:$0xff] }
 0x123   :  { %v12418_v19 = vrot.slane %v8364_v36, %v8735_v27 }
 0x124   :  { %v591_v49 = vmul.f32 %v12415_v1, %v9080_v37  ;;  %v7307_v0 = vpack.c.bf16 %v8849_v61, %v823_v3  ;;  %v9099_v35 = vpop.permute.xlu1 %1227  ;;  %1446 = vst [vmem:[#allocation2 + $0xd8] sm:$0xcc] %v1438_v47  ;;  %v12419_v3 = vrot.slane %v8778_v31, %v8013_v11 }
 0x125   :  { %12416 = vst [vmem:[#allocation7_spill] sm:$0xff] %v9099_v35  ;;  %v1226_v1 = vpop.permute.xlu0 %1225  ;;  %v9118_v16 = vmul.f32 %v12418_v19, %v12417_v38  ;;  %v12420_v38 = vrot.slane %v8778_v31, %v8028_v22  ;;  %v12424_v19 = vld [vmem:[#allocation10_spill] sm:$0xff] }
 0x126   :  { %v7299_v9 = vpack.c.bf16 %v8909_v51, %v591_v49  ;;  %863 = vst [vmem:[#allocation2 + $0xc0] sm:$0x33] %v7307_v0  ;;  %v1242_v49 = vsel %vm1237_vm11, %v1226_v1, %v9099_v35  ;;  %v1243_v51 = vsel %vm1237_vm11, %v8836_v48, %v1226_v1  ;;  %v12422_v48 = vrot.slane %v8392_v50, %v8735_v27  ;;  %v12429_v35 = vld [vmem:[#allocation15_spill] sm:$0xff] }
 0x127   :  { %v1289_v61 = vmul.f32 %v12419_v3, %v1243_v51  ;;  %v1290_v0 = vmul.f32 %v12420_v38, %v1242_v49  ;;  %v12426_v49 = vrot.slane %v8233_v41, %v7877_v15  ;;  %v12428_v3 = vrot.slane %v8454_v63, %v7877_v15 }
 0x128   :  { %631 = vst [vmem:[#allocation2 + $0x100] sm:$0x33] %v7299_v9  ;;  %v9142_v1 = vmul.f32 %v12422_v48, %v12421_v45  ;;  %v9144_v9 = vpop.permute.xlu1 %421 }
 0x129   :  { %v7324_v38 = vpack.c.bf16 %v1290_v0, %v1289_v61  ;;  %v9156_v46 = vsel %vm423_vm3, %v9144_v9, %v12424_v19  ;;  %v9158_v45 = vpop.permute.xlu0 %189  ;;  %v12427_v61 = vld [vmem:[#allocation20_spill] sm:$0xff] }
 0x12a   :  { %12423 = vst [vmem:[#allocation13_spill] sm:$0xff] %v9142_v1  ;;  %12425 = vst [vmem:[#allocation14_spill] sm:$0xff] %v9158_v45  ;;  %v473_v51 = vmul.f32 %v12426_v49, %v9156_v46  ;;  %v9172_v0 = vsel %vm12218_vm7, %v9158_v45, %v12427_v61  ;;  %v12435_v1 = vld [vmem:[#allocation42_spill] sm:$0xff]  ;;  %v12436_v45 = vrot.slane %v8454_v63, %v8735_v27 }
 0x12b   :  { %1328 = vst [vmem:[#allocation2 + $0xd8] sm:$0x33] %v7324_v38  ;;  %v241_v47 = vmul.f32 %v12428_v3, %v9172_v0  ;;  %v12432_v3 = vld [vmem:[#allocation31_spill] sm:$0xff] }
 0x12c   :  { %v7295_v19 = vpack.c.bf16 %v8858_v21, %v473_v51  ;;  %v9189_v11 = vpop.permute.xlu1 %307 }
 0x12d   :  { %v7287_v49 = vpack.c.bf16 %v8974_v4, %v241_v47  ;;  %v9202_v61 = vsel %vm309_vm5, %v9189_v11, %v12429_v35  ;;  %v9204_v21 = vpop.permute.xlu0 %73  ;;  %v2897_v51 = vld [vmem:[#allocation2 + $0xc0] sm:$0xff]  ;;  %v12431_v4 = vrot.slane %v8364_v36, %v7877_v15 }
 0x12e   :  { %12430 = vst [vmem:[#allocation23_spill] sm:$0xff] %v9204_v21  ;;  %v509_v22 = vrot.slane %v7295_v19, 6  ;;  %v9218_v35 = vsel %vm77_vm9, %v9204_v21, %v12432_v3  ;;  %v12434_v19 = vrot.slane %v8542_v5, %v7877_v15  ;;  %v9232_v3 = vmul.f32 %v12436_v45, %v12435_v1 }
 0x12f   :  { %v359_v47 = vmul.f32 %v12431_v4, %v9202_v61  ;;  %v2893_v31 = vld [vmem:[#allocation2 + $0x100] sm:$0xff]  ;;  %v277_v38 = vrot.slane %v7287_v49, 6 }
 0x130   :  { %v127_v48 = vmul.f32 %v12434_v19, %v9218_v35  ;;  %v7038_v55 = vcombine.high %v2893_v31, %v2897_v51  ;;  %517 = vst [vmem:[#allocation2 + $0x160] sm:$0xcc] %v509_v22  ;;  %v884_v18 = vpop.permute.xlu1 %883  ;;  %v7037_v49 = vcombine.low %v2893_v31, %v2897_v51  ;;  %v12437_v19 = vrot.slane %v7882_v17, %v8758_v60 }
 0x131   :  { %v7291_v21 = vpack.c.bf16 %v8895_v7, %v359_v47  ;;  %285 = vst [vmem:[#allocation2 + $0x30] sm:$0xcc] %v277_v38  ;;  %v888_v1 = vsel %vm887_vm0, %v884_v18, %v8935_v58  ;;  %v882_v22 = vpop.permute.xlu0 %881  ;;  %v12438_v7 = vrot.slane %v8015_v12, %v8758_v60 }
 0x132   :  { %v2754_v15 = vmul.f32 %v12437_v19, %v8953_v44  ;;  %v7283_v4 = vpack.c.bf16 %v9090_v52, %v127_v48  ;;  %3243 = vmatprep.subr.bf16.mxu0 %v7038_v55  ;;  %v12439_v44 = vrot.slane %v7882_v17, %v12401_v26  ;;  %v889_v52 = vsel %vm887_vm0, %v882_v22, %v884_v18  ;;  %v12440_v48 = vld [vmem:[#allocation16_spill] sm:$0xff]  ;;  %v7547_v55 = vld [vmem:[#allocation2 + $0x18c] ss:$-176 sps:$4 sm:$0xff]   ;;  %v7549_v51 = vld [vmem:[#allocation2 + $0x188] ss:$-176 sps:$4 sm:$0xff]  }
 0x133   :  { %399 = vst [vmem:[#allocation2 + $0x160] sm:$0x33] %v7291_v21  ;;  %v944_v45 = vmul.f32 %v12438_v7, %v888_v1  ;;  %v890_v58 = vsel %vm887_vm0, %v12440_v48, %v882_v22  ;;  %3244 = vmatpush1.bf16.msra.mxu0 %v7037_v49  ;;  %v12441_v21 = vrot.slane %v8015_v12, %v12402_v39 }
 0x134   :  { %v2753_v38 = vmul.f32 %v12439_v44, %v888_v1  ;;  %167 = vst [vmem:[#allocation2 + $0x30] sm:$0x33] %v7283_v4  ;;  %v12442_v19 = vrot.slane %v8015_v12, %v12401_v26  ;;  %v12443_v1 = vrot.slane %v7882_v17, %v8735_v27  ;;  %v12444_v44 = vrot.slane %v7882_v17, %v12402_v39  ;;  %v770_v31 = vpop.permute.xlu1 %769 }
 0x135   :  { %v942_v47 = vmul.f32 %v12441_v21, %v890_v58  ;;  %v12445_v4 = vrot.slane %v7903_v24, %v8758_v60  ;;  %3282 = vmatprep.subr.bf16.mxu1 %v7547_v55  ;;  %v7550_v21 = vld [vmem:[#allocation2 + $0x134] ss:$56 sps:$4 sm:$0xff]   ;;  %v110_v12 = vrot.slane %v8542_v5, %v12402_v39  ;;  %v12447_v55 = vrot.slane %v7903_v24, %v12401_v26 }
 0x136   :  { %v943_v7 = vmul.f32 %v12442_v19, %v889_v52  ;;  %v2751_v18 = vmul.f32 %v12443_v1, %v890_v58  ;;  %v2752_v22 = vmul.f32 %v12444_v44, %v889_v52  ;;  %v7386_v48 = vpack.c.bf16 %v2754_v15, %v2753_v38  ;;  %v768_v44 = vpop.permute.xlu0 %767  ;;  %3283 = vmatpush1.bf16.msra.mxu1 %v7549_v51  ;;  %v7552_v51 = vld [vmem:[#allocation2 + $0x130] ss:$56 sps:$4 sm:$0xff]  }
 0x137   :  { %v2665_v49 = vmul.f32 %v12445_v4, %v9066_v8  ;;  %v114_v19 = vrot.slane %v8542_v5, %v12401_v26  ;;  %v7313_v58 = vpack.c.bf16 %v942_v47, %v8876_v32  ;;  %v774_v52 = vsel %vm12216_vm1, %v770_v31, %v9049_v10  ;;  %3284 = vmatprep.subr.bf16.mxu1 %v7550_v21 }
 0x138   :  { %v7314_v1 = vpack.c.bf16 %v944_v45, %v943_v7  ;;  %v7385_v17 = vpack.c.bf16 %v2752_v22, %v2751_v18  ;;  %v2786_v15 = vrot.slane %v7386_v48, 6  ;;  %v12446_v8 = vrot.slane %v8122_v57, %v8758_v60  ;;  %v12448_v18 = vld [vmem:[#allocation18_spill] sm:$0xff] }
 0x139   :  { %v2664_v4 = vmul.f32 %v12447_v55, %v774_v52  ;;  %v775_v32 = vsel %vm12216_vm1, %v768_v44, %v770_v31  ;;  %v975_v45 = vrot.slane %v7313_v58, 6  ;;  %v776_v10 = vsel %vm12216_vm1, %v12448_v18, %v768_v44  ;;  %v1002_v58 = vpop.permute.xlu1 %1001 }
 0x13a   :  { %v830_v38 = vmul.f32 %v12446_v8, %v774_v52  ;;  %v976_v47 = vrot.slane %v7314_v1, 6  ;;  %v2785_v7 = vrot.slane %v7385_v17, 6  ;;  %2794 = vst [vmem:[#allocation2 + $0x178] sm:$0xcc] %v2786_v15  ;;  %v12449_v48 = vrot.slane %v8122_v57, %v12402_v39  ;;  %v7553_v1 = vld [vmem:[#allocation2 + $0x14c] ss:$-88 sps:$4 sm:$0xff]   ;;  %3285 = vmatpush1.bf16.msra.mxu1 %v7552_v51 }
 0x13b   :  { %v7382_v22 = vpack.c.bf16 %v2665_v49, %v2664_v4  ;;  %v12450_v52 = vrot.slane %v8122_v57, %v12401_v26  ;;  %v12451_v31 = vrot.slane %v7903_v24, %v8735_v27  ;;  %v12452_v17 = vrot.slane %v7949_v42, %v8758_v60  ;;  %983 = vst [vmem:[#allocation2 + $0x118] sm:$0xcc] %v975_v45  ;;  %v1000_v4 = vpop.permute.xlu0 %999 }
 0x13c   :  { %v828_v8 = vmul.f32 %v12449_v48, %v776_v10  ;;  %984 = vst [vmem:[#allocation2 + $0x120] sm:$0xcc] %v976_v47  ;;  %2793 = vst [vmem:[#allocation2 + $0x10] sm:$0xcc] %v2785_v7  ;;  %v12453_v49 = vrot.slane %v7903_v24, %v12402_v39  ;;  %v1006_v57 = vsel %vm1005_vm2, %v1002_v58, %v8798_v56  ;;  %3286 = vmatprep.subr.bf16.mxu1 %v7553_v1  ;;  %v7555_v7 = vld [vmem:[#allocation2 + $0x34] ss:$304 sps:$4 sm:$0xff]  }
 0x13d   :  { %v829_v55 = vmul.f32 %v12450_v52, %v775_v32  ;;  %v2662_v21 = vmul.f32 %v12451_v31, %v776_v10  ;;  %v2847_v44 = vmul.f32 %v12452_v17, %v8806_v54  ;;  %v2091_v18 = vrot.slane %v12397_v28, %v8735_v27  ;;  %2701 = vst [vmem:[#allocation2 + $0x178] sm:$0x33] %v7382_v22  ;;  %v7557_v56 = vld [vmem:[#allocation2 + $0x30] ss:$304 sps:$4 sm:$0xff]  }
 0x13e   :  { %v2663_v15 = vmul.f32 %v12453_v49, %v775_v32  ;;  %v7309_v10 = vpack.c.bf16 %v828_v8, %v8933_v25  ;;  %v12454_v45 = vrot.slane %v8153_v33, %v8758_v60  ;;  %v12455_v24 = vrot.slane %v7949_v42, %v12401_v26  ;;  %v7558_v52 = vld [vmem:[#allocation2 + $0x148] ss:$-88 sps:$4 sm:$0xff]   ;;  %v420_v49 = vpop.permute.xlu1 %419  ;;  %3245 = vmatprep.subr.bf16.mxu0 %v7555_v7 }
 0x13f   :  { %v7310_v54 = vpack.c.bf16 %v830_v38, %v829_v55  ;;  %v12456_v51 = vrot.slane %v8034_v29, %v8758_v60  ;;  %v1007_v25 = vsel %vm1005_vm2, %v1000_v4, %v1002_v58  ;;  %v12457_v38 = vld [vmem:[#allocation21_spill] sm:$0xff]  ;;  %v12458_v31 = vrot.slane %v8153_v33, %v12402_v39  ;;  %3246 = vmatpush1.bf16.msra.mxu0 %v7557_v56 }
 0x140   :  { %v1062_v47 = vmul.f32 %v12454_v45, %v1006_v57  ;;  %v2846_v32 = vmul.f32 %v12455_v24, %v1006_v57  ;;  %v7381_v22 = vpack.c.bf16 %v2663_v15, %v2662_v21  ;;  %v1008_v8 = vsel %vm1005_vm2, %v12457_v38, %v1000_v4  ;;  %865 = vst [vmem:[#allocation2 + $0x118] sm:$0x33] %v7309_v10  ;;  %v418_v10 = vpop.permute.xlu0 %417 }
 0x141   :  { %v9325_v48 = vmul.f32 %v12456_v51, %v8964_v23  ;;  %866 = vst [vmem:[#allocation2 + $0x120] sm:$0x33] %v7310_v54  ;;  %v1060_v1 = vmul.f32 %v12458_v31, %v1008_v8  ;;  %v12459_v23 = vrot.slane %v8153_v33, %v12401_v26  ;;  %v12460_v21 = vrot.slane %v7949_v42, %v8735_v27  ;;  %v9354_v54 = vld [vmem:[%s12116_s2] sm:$0x1] }
 0x142   :  { %v7390_v55 = vpack.c.bf16 %v2847_v44, %v2846_v32  ;;  %v12461_v15 = vrot.slane %v12389_v13, %v8758_v60  ;;  %2700 = vst [vmem:[#allocation2 + $0x10] sm:$0x33] %v7381_v22  ;;  %v12462_v44 = vrot.slane %v7949_v42, %v12402_v39  ;;  %v424_v33 = vsel %vm423_vm3, %v420_v49, %v9144_v9 }
 0x143   :  { %v1061_v17 = vmul.f32 %v12459_v23, %v1007_v25  ;;  %v2844_v58 = vmul.f32 %v12460_v21, %v1008_v8  ;;  %3287 = vmatpush1.bf16.msra.mxu1 %v7558_v52  ;;  %vm3227_vm1 = vcmask 916480   ;;  %v12463_v42 = vrot.slane %v8233_v41, %v8758_v60 }
 0x144   :  { %v2390_v57 = vmul.f32 %v12461_v15, %v9156_v46  ;;  %v2845_v4 = vmul.f32 %v12462_v44, %v1007_v25  ;;  %2883 = vst [vmem:[#allocation2 + $0x1b8] sm:$0x33] %v7390_v55  ;;  %v7317_v46 = vpack.c.bf16 %v1060_v1, %v8947_v30  ;;  %v12464_v9 = vrot.slane %v12389_v13, %v12401_v26  ;;  %v12466_v30 = vld [vmem:[#allocation24_spill] sm:$0xff]  ;;  %v652_v1 = vpop.permute.xlu1 %651 }
 0x145   :  { %v7318_v45 = vpack.c.bf16 %v1062_v47, %v1061_v17  ;;  %v480_v24 = vmul.f32 %v12463_v42, %v424_v33  ;;  %v12465_v7 = vrot.slane %v8137_v62, %v8758_v60  ;;  %v425_v22 = vsel %vm423_vm3, %v418_v10, %v420_v49  ;;  %7085 = vmatmul.mubr.msk.bf16.vlgmr.msra.gmra.mxu0 %vm3227_vm1, %v9354_v54  ;;  %v650_v49 = vpop.permute.xlu0 %649 }
 0x146   :  { %v2389_v32 = vmul.f32 %v12464_v9, %v424_v33  ;;  %v7389_v51 = vpack.c.bf16 %v2845_v4, %v2844_v58  ;;  %v426_v47 = vsel %vm423_vm3, %v12466_v30, %v418_v10  ;;  %1097 = vst [vmem:[#allocation2 + $0x198] sm:$0x33] %v7317_v46  ;;  %v12467_v38 = vrot.slane %v8233_v41, %v12402_v39 }
 0x147   :  { %v9367_v56 = vmul.f32 %v12465_v7, %v9080_v37  ;;  %1098 = vst [vmem:[#allocation2 + $0x8] sm:$0x33] %v7318_v45  ;;  %v12468_v52 = vrot.slane %v8233_v41, %v12401_v26  ;;  %v12469_v55 = vrot.slane %v12389_v13, %v8735_v27  ;;  %v12470_v23 = vrot.slane %v12394_v53, %v8758_v60  ;;  %v12475_v45 = vld [vmem:[#allocation26_spill] sm:$0xff] }
 0x148   :  { %v7370_v25 = vpack.c.bf16 %v2390_v57, %v2389_v32  ;;  %v478_v8 = vmul.f32 %v12467_v38, %v426_v47  ;;  %2882 = vst [vmem:[#allocation2 + $0xb8] sm:$0x33] %v7389_v51  ;;  %v12471_v21 = vrot.slane %v12389_v13, %v12402_v39  ;;  %v656_v41 = vsel %vm655_vm4, %v652_v1, %v8955_v2 }
 0x149   :  { %v479_v37 = vmul.f32 %v12468_v52, %v425_v22  ;;  %v2387_v31 = vmul.f32 %v12469_v55, %v426_v47  ;;  %v2301_v17 = vmul.f32 %v12470_v23, %v9202_v61  ;;  %7086 = vmatmul.mubr.msk.bf16.vlgmr.msra.gmra.mxu1 %vm3227_vm1, %v9354_v54  ;;  %v12472_v15 = vmov 0  }
 0x14a   :  { %v2388_v58 = vmul.f32 %v12471_v21, %v425_v22  ;;  %3345 = vmatprep.mubr.bf16.mxu0 %v12472_v15  ;;  %v2422_v57 = vrot.slane %v7370_v25, 6  ;;  %v7297_v44 = vpack.c.bf16 %v478_v8, %v8985_v40  ;;  %v12473_v61 = vrot.slane %v8260_v34, %v8758_v60  ;;  %3386 = vmatprep.mubr.bf16.mxu1 %v12472_v15  ;;  %v306_v22 = vpop.permute.xlu1 %305 }
 0x14b   :  { %v7298_v4 = vpack.c.bf16 %v480_v24, %v479_v37  ;;  %v12474_v2 = vrot.slane %v8034_v29, %v12401_v26  ;;  %v657_v46 = vsel %vm655_vm4, %v650_v49, %v652_v1  ;;  %v658_v42 = vsel %vm655_vm4, %v12475_v45, %v650_v49  ;;  %v304_v37 = vpop.permute.xlu0 %303 }
 0x14c   :  { %v712_v33 = vmul.f32 %v12473_v61, %v656_v41  ;;  %v7369_v13 = vpack.c.bf16 %v2388_v58, %v2387_v31  ;;  %2430 = vst [vmem:[#allocation2 + $0x138] sm:$0xcc] %v2422_v57  ;;  %v511_v40 = vrot.slane %v7297_v44, 6  ;;  %v12476_v9 = vrot.slane %v8260_v34, %v12402_v39  ;;  %v12482_v44 = vld [vmem:[#allocation33_spill] sm:$0xff] }
 0x14d   :  { %v2571_v10 = vmul.f32 %v12474_v2, %v656_v41  ;;  %v512_v24 = vrot.slane %v7298_v4, 6  ;;  %v12477_v7 = vrot.slane %v8260_v34, %v12401_v26  ;;  %v12478_v25 = vrot.slane %v8034_v29, %v8735_v27 }
 0x14e   :  { %v710_v32 = vmul.f32 %v12476_v9, %v658_v42  ;;  %v2421_v30 = vrot.slane %v7369_v13, 6  ;;  %v12479_v8 = vrot.slane %v8034_v29, %v12402_v39  ;;  %519 = vst [vmem:[#allocation2 + $0xf8] sm:$0xcc] %v511_v40  ;;  %v310_v34 = vsel %vm309_vm5, %v306_v22, %v9189_v11 }
 0x14f   :  { %v711_v51 = vmul.f32 %v12477_v7, %v657_v46  ;;  %v7378_v47 = vpack.c.bf16 %v9325_v48, %v2571_v10  ;;  %v2569_v38 = vmul.f32 %v12478_v25, %v658_v42  ;;  %520 = vst [vmem:[#allocation2 + $0x78] sm:$0xcc] %v512_v24  ;;  %v311_v48 = vsel %vm309_vm5, %v304_v37, %v306_v22  ;;  %v7559_v13 = vld [vmem:[#allocation2 + $0x10] ss:$168 sps:$4 sm:$0xff]   ;;  %v536_v9 = vpop.permute.xlu0 %535 }
 0x150   :  { %v2570_v52 = vmul.f32 %v12479_v8, %v657_v46  ;;  %v7305_v55 = vpack.c.bf16 %v710_v32, %v9013_v59  ;;  %2429 = vst [vmem:[#allocation2 + $0x80] sm:$0xcc] %v2421_v30  ;;  %v12480_v29 = vrot.slane %v8364_v36, %v8758_v60  ;;  %v12481_v58 = vrot.slane %v12394_v53, %v12401_v26  ;;  %v2940_v59 = vld [vmem:[#allocation2 + $0x1b8] sm:$0xff] }
 0x151   :  { %v7306_v31 = vpack.c.bf16 %v712_v33, %v711_v51  ;;  %v2604_v1 = vrot.slane %v7378_v47, 6  ;;  %v312_v11 = vsel %vm309_vm5, %v12482_v44, %v304_v37  ;;  %v12483_v4 = vrot.slane %v8364_v36, %v12401_v26  ;;  %v538_v33 = vpop.permute.xlu1 %537  ;;  %v2936_v24 = vld [vmem:[#allocation2 + $0x178] sm:$0xff] }
 0x152   :  { %v7377_v23 = vpack.c.bf16 %v2570_v52, %v2569_v38  ;;  %v366_v21 = vmul.f32 %v12480_v29, %v310_v34  ;;  %v2300_v41 = vmul.f32 %v12481_v58, %v310_v34  ;;  %v743_v49 = vrot.slane %v7305_v55, 6  ;;  %v7561_v32 = vld [vmem:[#allocation2 + $0x14] ss:$168 sps:$4 sm:$0xff]  }
 0x153   :  { %v744_v57 = vrot.slane %v7306_v31, 6  ;;  %v365_v61 = vmul.f32 %v12483_v4, %v311_v48  ;;  %2612 = vst [vmem:[#allocation2 + $0x150] sm:$0xcc] %v2604_v1  ;;  %v12484_v46 = vrot.slane %v8364_v36, %v12402_v39  ;;  %v12485_v42 = vrot.slane %v12394_v53, %v8735_v27  ;;  %3315 = vmatprep.subr.bf16.mxu0 %v7561_v32  ;;  %v12491_v31 = vld [vmem:[#allocation35_spill] sm:$0xff] }
 0x154   :  { %v2603_v2 = vrot.slane %v7377_v23, 6  ;;  %v7366_v10 = vpack.c.bf16 %v2301_v17, %v2300_v41  ;;  %751 = vst [vmem:[#allocation2 + $0xe8] sm:$0xcc] %v743_v49  ;;  %v12486_v51 = vrot.slane %v12394_v53, %v12402_v39  ;;  %v542_v17 = vsel %vm12217_vm6, %v538_v33, %v9068_v20  ;;  %v12489_v53 = vld [vmem:[#allocation19_spill] sm:$0xff]  ;;  %3316 = vmatpush1.bf16.msra.mxu0 %v7559_v13 }
 0x155   :  { %v364_v45 = vmul.f32 %v12484_v46, %v312_v11  ;;  %v2298_v40 = vmul.f32 %v12485_v42, %v312_v11  ;;  %752 = vst [vmem:[#allocation2 + $0x40] sm:$0xcc] %v744_v57  ;;  %v7294_v7 = vpack.c.bf16 %v366_v21, %v365_v61  ;;  %v7083_v36 = vcombine.low %v2936_v24, %v2940_v59  ;;  %v12498_v61 = vld [vmem:[#allocation13_spill] sm:$0xff] }
 0x156   :  { %v2299_v22 = vmul.f32 %v12486_v51, %v311_v48  ;;  %2611 = vst [vmem:[#allocation2 + $0x68] sm:$0xcc] %v2603_v2  ;;  %2337 = vst [vmem:[#allocation2 + $0x138] sm:$0x33] %v7366_v10  ;;  %v12487_v47 = vrot.slane %v8392_v50, %v8758_v60  ;;  %v12488_v38 = vrot.slane %v8137_v62, %v12401_v26  ;;  %v188_v48 = vpop.permute.xlu1 %187 }
 0x157   :  { %v7293_v30 = vpack.c.bf16 %v364_v45, %v9118_v16  ;;  %v7084_v52 = vcombine.high %v2936_v24, %v2940_v59  ;;  %v12490_v37 = vrot.slane %v12489_v53, %v8758_v60  ;;  %402 = vst [vmem:[#allocation2 + $0x78] sm:$0x33] %v7294_v7  ;;  %v543_v16 = vsel %vm12217_vm6, %v536_v9, %v538_v33  ;;  %v186_v59 = vpop.permute.xlu0 %185 }
 0x158   :  { %v598_v25 = vmul.f32 %v12487_v47, %v542_v17  ;;  %v2482_v8 = vmul.f32 %v12488_v38, %v542_v17  ;;  %v7365_v55 = vpack.c.bf16 %v2299_v22, %v2298_v40  ;;  %v544_v34 = vsel %vm12217_vm6, %v12491_v31, %v536_v9 }
 0x159   :  { %v2208_v20 = vmul.f32 %v12490_v37, %v9172_v0  ;;  %401 = vst [vmem:[#allocation2 + $0xf8] sm:$0x33] %v7293_v30  ;;  %3356 = vmatprep.subr.bf16.mxu1 %v7084_v52  ;;  %v12492_v23 = vrot.slane %v8392_v50, %v12402_v39  ;;  %v12493_v0 = vrot.slane %v8392_v50, %v12401_v26  ;;  %v12497_v50 = vld [vmem:[#allocation41_spill] sm:$0xff]  ;;  %v12506_v37 = vld [vmem:[#allocation43_spill] sm:$0xff]  ;;  %vm12517_vm6 = vcmp.lt.s32.totalorder %v7874_v14, 121 }
 0x15a   :  { %v7374_v1 = vpack.c.bf16 %v9367_v56, %v2482_v8  ;;  %v12494_v58 = vrot.slane %v8137_v62, %v8735_v27  ;;  %2336 = vst [vmem:[#allocation2 + $0x80] sm:$0x33] %v7365_v55  ;;  %v12495_v49 = vrot.slane %v8137_v62, %v12402_v39  ;;  %3357 = vmatpush1.bf16.msra.mxu1 %v7083_v36  ;;  %v12496_v56 = vld [vmem:[#allocation14_spill] sm:$0xff]  ;;  %v9507_v51 = vpop.permute.xlu1 %1965 }
 0x15b   :  { %v596_v29 = vmul.f32 %v12492_v23, %v544_v34  ;;  %v597_v21 = vmul.f32 %v12493_v0, %v543_v16  ;;  %v192_v44 = vsel %vm12218_vm7, %v188_v48, %v12496_v56  ;;  %v193_v11 = vsel %vm12218_vm7, %v186_v59, %v188_v48  ;;  %v1964_v30 = vpop.permute.xlu0 %1963  ;;  %v12512_v56 = vld [vmem:[#allocation23_spill] sm:$0xff] }
 0x15c   :  { %v2480_v41 = vmul.f32 %v12494_v58, %v544_v34  ;;  %v2481_v57 = vmul.f32 %v12495_v49, %v543_v16  ;;  %v194_v4 = vsel %vm12218_vm7, %v12497_v50, %v186_v59  ;;  %2519 = vst [vmem:[#allocation2 + $0x150] sm:$0x33] %v7374_v1  ;;  %v12499_v62 = vrot.slane %v8454_v63, %v8758_v60  ;;  %vm12519_vm7 = vmmov %vm12517_vm6 }
 0x15d   :  { %v7301_v33 = vpack.c.bf16 %v596_v29, %v12498_v61  ;;  %v7302_v13 = vpack.c.bf16 %v598_v25, %v597_v21  ;;  %v12500_v10 = vrot.slane %v12489_v53, %v12401_v26  ;;  %v12501_v42 = vrot.slane %v8454_v63, %v12402_v39 }
 0x15e   :  { %v248_v2 = vmul.f32 %v12499_v62, %v192_v44  ;;  %v7373_v45 = vpack.c.bf16 %v2481_v57, %v2480_v41  ;;  %v12502_v24 = vrot.slane %v8454_v63, %v12401_v26  ;;  %v12503_v32 = vrot.slane %v12489_v53, %v8735_v27  ;;  %v12505_v63 = vld [vmem:[#allocation37_spill] sm:$0xff]  ;;  %v72_v21 = vpop.permute.xlu1 %71 }
 0x15f   :  { %v2207_v46 = vmul.f32 %v12500_v10, %v192_v44  ;;  %v246_v40 = vmul.f32 %v12501_v42, %v194_v4  ;;  %633 = vst [vmem:[#allocation2 + $0xe8] sm:$0x33] %v7301_v33  ;;  %634 = vst [vmem:[#allocation2 + $0x40] sm:$0x33] %v7302_v13  ;;  %v12504_v17 = vrot.slane %v12489_v53, %v12402_v39  ;;  %v12514_v33 = vld [vmem:[#allocation44_spill] sm:$0xff] }
 0x160   :  { %v247_v9 = vmul.f32 %v12502_v24, %v193_v11  ;;  %v2205_v7 = vmul.f32 %v12503_v32, %v194_v4  ;;  %v2095_v47 = vrot.slane %v12397_v28, %v12402_v39  ;;  %v1884_v25 = vrot.slane %v12505_v63, %v8735_v27  ;;  %2518 = vst [vmem:[#allocation2 + $0x68] sm:$0x33] %v7373_v45 }
 0x161   :  { %v7362_v22 = vpack.c.bf16 %v2208_v20, %v2207_v46  ;;  %v2206_v36 = vmul.f32 %v12504_v17, %v193_v11  ;;  %v7289_v38 = vpack.c.bf16 %v246_v40, %v9232_v3  ;;  %v1971_v52 = vsel %vm12223_vm8, %v1964_v30, %v9507_v51  ;;  %v12509_v3 = vld [vmem:[#allocation45_spill] sm:$0xff]  ;;  %v70_v11 = vpop.permute.xlu0 %69 }
 0x162   :  { %v7290_v8 = vpack.c.bf16 %v248_v2, %v247_v9  ;;  %v1972_v53 = vsel %vm12223_vm8, %v12506_v37, %v1964_v30  ;;  %v12507_v16 = vrot.slane %v12433_v43, %v8735_v27  ;;  %v12508_v34 = vrot.slane %v12433_v43, %v12402_v39  ;;  %v9562_v24 = vpop.permute.xlu1 %1851  ;;  %v12516_v30 = vld [vmem:[#allocation39_spill] sm:$0xff] }
 0x163   :  { %v2240_v20 = vrot.slane %v7362_v22, 6  ;;  %v7361_v55 = vpack.c.bf16 %v2206_v36, %v2205_v7  ;;  %v12510_v1 = vrot.slane %v8542_v5, %v8735_v27  ;;  %v279_v29 = vrot.slane %v7289_v38, 6  ;;  %v7562_v62 = vld [vmem:[#allocation2 + $0x138] ss:$24 sps:$4 sm:$0xff]   ;;  %v7564_v2 = vld [vmem:[#allocation2 + $0x13c] ss:$24 sps:$4 sm:$0xff]  }
 0x164   :  { %v2023_v31 = vmul.f32 %v12507_v16, %v1972_v53  ;;  %v2024_v48 = vmul.f32 %v12508_v34, %v1971_v52  ;;  %v280_v0 = vrot.slane %v7290_v8, 6  ;;  %v1888_v58 = vrot.slane %v12505_v63, %v12402_v39  ;;  %3358 = vmatprep.subr.bf16.mxu1 %v7564_v2 }
 0x165   :  { %v131_v23 = vmul.f32 %v12510_v1, %v12509_v3  ;;  %v12511_v41 = vrot.slane %v12397_v28, %v8758_v60  ;;  %2248 = vst [vmem:[#allocation2] sm:$0xcc] %v2240_v20  ;;  %v2239_v49 = vrot.slane %v7361_v55, 6  ;;  %v78_v44 = vsel %vm77_vm9, %v72_v21, %v12512_v56  ;;  %287 = vst [vmem:[#allocation2 + $0x110] sm:$0xcc] %v279_v29  ;;  %v1850_v7 = vpop.permute.xlu0 %1849  ;;  %v12518_v20 = vld [vmem:[#allocation59_spill] sm:$0xff] }
 0x166   :  { %v7353_v57 = vpack.c.bf16 %v2024_v48, %v2023_v31  ;;  %288 = vst [vmem:[#allocation2 + $0x28] sm:$0xcc] %v280_v0  ;;  %v134_v50 = vmul.f32 %v118_v6, %v78_v44  ;;  %v12513_v4 = vrot.slane %v12397_v28, %v12401_v26  ;;  %v80_v13 = vsel %vm77_vm9, %v12514_v33, %v70_v11  ;;  %v12515_v28 = vld [vmem:[#allocation50_spill] sm:$0xff]  ;;  %v9574_v8 = vpop.permute.xlu1 %1733 }
 0x167   :  { %v2119_v59 = vmul.f32 %v12511_v41, %v9218_v35  ;;  %v79_v35 = vsel %vm77_vm9, %v70_v11, %v72_v21  ;;  %2247 = vst [vmem:[#allocation2 + $0x140] sm:$0xcc] %v2239_v49  ;;  %v132_v46 = vmul.f32 %v110_v12, %v80_v13  ;;  %v2116_v45 = vmul.f32 %v2091_v18, %v80_v13  ;;  %v7565_v22 = vld [vmem:[#allocation2 + $0x80] ss:$-24 sps:$4 sm:$0xff]   ;;  %v7567_v17 = vld [vmem:[#allocation2 + $0x84] ss:$-24 sps:$4 sm:$0xff]  }
 0x168   :  { %v2118_v61 = vmul.f32 %v12513_v4, %v78_v44  ;;  %v2057_v10 = vrot.slane %v7353_v57, 6  ;;  %v133_v6 = vmul.f32 %v114_v19, %v79_v35  ;;  %v2117_v40 = vmul.f32 %v2095_v47, %v79_v35  ;;  %3359 = vmatpush1.bf16.msra.mxu1 %v7562_v62  ;;  %3317 = vmatprep.subr.bf16.mxu0 %v7567_v17  ;;  %v12521_v21 = vld [vmem:[#allocation29_spill] sm:$0xff]  ;;  %v12522_v57 = vld [vmem:[#allocation62_spill] sm:$0xff] }
 0x169   :  { %v7285_v9 = vpack.c.bf16 %v132_v46, %v131_v23  ;;  %v1857_v5 = vsel %vm12220_vm10, %v1850_v7, %v9562_v24  ;;  %v1858_v19 = vsel %vm12220_vm10, %v12515_v28, %v1850_v7  ;;  %v1766_v47 = vrot.slane %v12516_v30, %v8735_v27  ;;  %3318 = vmatpush1.bf16.msra.mxu0 %v7565_v22  ;;  %v1732_v37 = vpop.permute.xlu0 %1731  ;;  %v12520_v23 = vld [vmem:[#allocation46_spill] sm:$0xff] }
 0x16a   :  { %v7358_v42 = vpack.c.bf16 %v2119_v59, %v2118_v61  ;;  %2065 = vst [vmem:[#allocation2 + $0xb0] sm:$0xcc] %v2057_v10  ;;  %v7286_v32 = vpack.c.bf16 %v134_v50, %v133_v6  ;;  %v7357_v12 = vpack.c.bf16 %v2117_v40, %v2116_v45  ;;  %v1909_v18 = vmul.f32 %v1884_v25, %v1858_v19  ;;  %v1462_v48 = vpop.permute.xlu1 %1461  ;;  %v12524_v45 = vld [vmem:[#allocation63_spill] sm:$0xff] }
 0x16b   :  { %169 = vst [vmem:[#allocation2 + $0x110] sm:$0x33] %v7285_v9  ;;  %v1910_v36 = vmul.f32 %v1888_v58, %v1857_v5  ;;  %v1770_v38 = vrot.slane %v12516_v30, %v12402_v39  ;;  %v1739_v53 = vsel %vm12517_vm6, %v1732_v37, %v9574_v8  ;;  %v1740_v25 = vsel %vm12519_vm7, %v12518_v20, %v1732_v37  ;;  %v12527_v20 = vld [vmem:[#allocation9_spill] sm:$0xff]  ;;  %vm12532_vm7 = vmmov %vm12517_vm6 }
 0x16c   :  { %2155 = vst [vmem:[#allocation2] sm:$0x33] %v7358_v42  ;;  %170 = vst [vmem:[#allocation2 + $0x28] sm:$0x33] %v7286_v32  ;;  %v1791_v55 = vmul.f32 %v1766_v47, %v1740_v25  ;;  %v2006_v31 = vrot.slane %v12433_v43, %v12401_v26  ;;  %v2010_v34 = vrot.slane %v12433_v43, %v8758_v60  ;;  %v12525_v32 = vld [vmem:[#allocation38_spill] sm:$0xff] }
 0x16d   :  { %2154 = vst [vmem:[#allocation2 + $0x140] sm:$0x33] %v7357_v12  ;;  %v7349_v52 = vpack.c.bf16 %v1910_v36, %v1909_v18  ;;  %v1792_v16 = vmul.f32 %v1770_v38, %v1739_v53  ;;  %v1968_v1 = vpop.permute.xlu0 %1967  ;;  %v1498_v29 = vrot.slane %v12520_v23, %v8735_v27  ;;  %v1502_v43 = vrot.slane %v12520_v23, %v12402_v39  ;;  %v12526_v18 = vld [vmem:[#allocation51_spill] sm:$0xff] }
 0x16e   :  { %v1970_v0 = vsel %vm12223_vm8, %v9507_v51, %v1968_v1  ;;  %v1977_v58 = vsel %vm12223_vm8, %v1968_v1, %v12521_v21  ;;  %v1473_v56 = vsel %vm12221_vm12, %v12522_v57, %v1462_v48  ;;  %v1618_v44 = vpop.permute.xlu1 %1617  ;;  %v12523_v51 = vld [vmem:[#allocation47_spill] sm:$0xff]  ;;  %v1892_v35 = vrot.slane %v12505_v63, %v12401_v26  ;;  %v12529_v21 = vld [vmem:[#allocation22_spill] sm:$0xff] }
 0x16f   :  { %1947 = vst [vmem:[#allocation2 + $0xb0] sm:$0x33] %v7349_v52  ;;  %v7345_v3 = vpack.c.bf16 %v1792_v16, %v1791_v55  ;;  %v2025_v59 = vmul.f32 %v2006_v31, %v1970_v0  ;;  %v2026_v49 = vmul.f32 %v2010_v34, %v1977_v58  ;;  %v1652_v4 = vrot.slane %v12523_v51, %v8735_v27  ;;  %v12528_v31 = vld [vmem:[#allocation53_spill] sm:$0xff] }
 0x170   :  { %v1896_v33 = vrot.slane %v12505_v63, %v8758_v60  ;;  %v1523_v2 = vmul.f32 %v1498_v29, %v1473_v56  ;;  %v1656_v6 = vrot.slane %v12523_v51, %v12402_v39  ;;  %v1626_v42 = vsel %vm12219_vm13, %v12524_v45, %v1618_v44 }
 0x171   :  { %v1825_v41 = vrot.slane %v7345_v3, 6  ;;  %v7354_v11 = vpack.c.bf16 %v2026_v49, %v2025_v59  ;;  %v9599_v50 = vpop.permute.xlu0 %1463  ;;  %v1677_v28 = vmul.f32 %v1652_v4, %v1626_v42  ;;  %v1148_v36 = vrot.slane %v12526_v18, %v8735_v27 }
 0x172   :  { %v1472_v61 = vsel %vm12221_vm12, %v1462_v48, %v9599_v50  ;;  %v1854_v40 = vpop.permute.xlu1 %1853  ;;  %v1380_v34 = vrot.slane %v12528_v31, %v8735_v27  ;;  %v1384_v48 = vrot.slane %v12528_v31, %v12402_v39  ;;  %v1778_v57 = vrot.slane %v12516_v30, %v8758_v60 }
 0x173   :  { %1833 = vst [vmem:[#allocation2 + $0x128] sm:$0xcc] %v1825_v41  ;;  %v2058_v10 = vrot.slane %v7354_v11, 6  ;;  %v1524_v46 = vmul.f32 %v1502_v43, %v1472_v61  ;;  %v1856_v63 = vsel %vm12220_vm10, %v9562_v24, %v1854_v40  ;;  %v1863_v7 = vsel %vm12220_vm10, %v1854_v40, %v12525_v32  ;;  %v12530_v11 = vld [vmem:[#allocation60_spill] sm:$0xff]  ;;  %v12533_v32 = vld [vmem:[#allocation7_spill] sm:$0xff] }
 0x174   :  { %v1911_v17 = vmul.f32 %v1892_v35, %v1856_v63  ;;  %v1912_v12 = vmul.f32 %v1896_v33, %v1863_v7  ;;  %v1152_v24 = vrot.slane %v12526_v18, %v12402_v39  ;;  %v1774_v41 = vrot.slane %v12516_v30, %v12401_v26  ;;  %v12531_v30 = vld [vmem:[#allocation40_spill] sm:$0xff] }
 0x175   :  { %2066 = vst [vmem:[#allocation2 + $0x180] sm:$0xcc] %v2058_v10  ;;  %v7333_v9 = vpack.c.bf16 %v1524_v46, %v1523_v2  ;;  %v9621_v22 = vpop.permute.xlu0 %1619  ;;  %v1266_v4 = vrot.slane %v12530_v11, %v8735_v27  ;;  %v1506_v35 = vrot.slane %v12520_v23, %v12401_v26  ;;  %v1510_v33 = vrot.slane %v12520_v23, %v8758_v60 }
 0x176   :  { %v7568_v13 = vld [vmem:[#allocation2 + $0xb0] ss:$144 sps:$4 sm:$0xff]   ;;  %v7570_v62 = vld [vmem:[#allocation2 + $0xb4] ss:$144 sps:$4 sm:$0xff]   ;;  %v1625_v5 = vsel %vm12219_vm13, %v1618_v44, %v9621_v22  ;;  %v7350_v47 = vpack.c.bf16 %v1912_v12, %v1911_v17  ;;  %v9630_v38 = vpop.permute.xlu1 %1113  ;;  %v1160_v12 = vrot.slane %v12526_v18, %v8758_v60 }
 0x177   :  { %3319 = vmatprep.subr.bf16.mxu0 %v7570_v62  ;;  %1561 = vst [vmem:[#allocation2 + $0x158] sm:$0x33] %v7333_v9  ;;  %v1678_v19 = vmul.f32 %v1656_v6, %v1625_v5  ;;  %v2924_v62 = vld [vmem:[#allocation2] sm:$0xff]  ;;  %v1270_v6 = vrot.slane %v12530_v11, %v12402_v39 }
 0x178   :  { %3320 = vmatpush1.bf16.msra.mxu0 %v7568_v13  ;;  %1948 = vst [vmem:[#allocation2 + $0x180] sm:$0x33] %v7350_v47 }
 0x179   :  { %v7341_v52 = vpack.c.bf16 %v1678_v19, %v1677_v28  ;;  %v1112_v37 = vpop.permute.xlu0 %1111  ;;  %v12534_v28 = vld [vmem:[#allocation49_spill] sm:$0xff] }
 0x17a   :  { %v1122_v53 = vsel %vm1119_vm14, %v1112_v37, %v9630_v38  ;;  %v1123_v25 = vsel %vm1119_vm14, %v12527_v20, %v1112_v37  ;;  %v9642_v3 = vpop.permute.xlu1 %1345 }
 0x17b   :  { %1715 = vst [vmem:[#allocation2 + $0x128] sm:$0x33] %v7341_v52  ;;  %v1173_v55 = vmul.f32 %v1148_v36, %v1123_v25  ;;  %v1174_v16 = vmul.f32 %v1152_v24, %v1122_v53 }
 0x17d   :  { %v7321_v1 = vpack.c.bf16 %v1174_v16, %v1173_v55  ;;  %v1344_v29 = vpop.permute.xlu0 %1343  ;;  %v1664_v55 = vrot.slane %v12523_v51, %v8758_v60 }
 0x17e   :  { %v1354_v0 = vsel %vm12222_vm15, %v1344_v29, %v9642_v3  ;;  %v1355_v58 = vsel %vm12222_vm15, %v12529_v21, %v1344_v29  ;;  %v1230_v56 = vpop.permute.xlu1 %1229 }
 0x17f   :  { %v1207_v59 = vrot.slane %v7321_v1, 6  ;;  %v1405_v49 = vmul.f32 %v1380_v34, %v1355_v58  ;;  %v1406_v43 = vmul.f32 %v1384_v48, %v1354_v0  ;;  %v2920_v13 = vld [vmem:[#allocation2 + $0x180] sm:$0xff]  ;;  %v1241_v7 = vsel %vm1237_vm11, %v12533_v32, %v1230_v56  ;;  %v12535_v1 = vld [vmem:[#allocation54_spill] sm:$0xff]  ;;  %v7577_v32 = vld [vmem:[#allocation2 + $0xec] ss:$48 sps:$4 sm:$0xff]  }
 0x180   :  { %v7067_v46 = vcombine.low %v2920_v13, %v2924_v62  ;;  %v7068_v23 = vcombine.high %v2920_v13, %v2924_v62  ;;  %v1291_v53 = vmul.f32 %v1266_v4, %v1241_v7  ;;  %v1274_v34 = vrot.slane %v12530_v11, %v12401_v26 }
 0x181   :  { %1215 = vst [vmem:[#allocation2 + $0x198] sm:$0xcc] %v1207_v59  ;;  %v7329_v44 = vpack.c.bf16 %v1406_v43, %v1405_v49  ;;  %v1736_v61 = vpop.permute.xlu0 %1735  ;;  %v1278_v58 = vrot.slane %v12530_v11, %v8758_v60  ;;  %v12536_v49 = vld [vmem:[#allocation48_spill] sm:$0xff]  ;;  %v1388_v11 = vrot.slane %v12528_v31, %v12401_v26 }
 0x182   :  { %v1738_v2 = vsel %vm12517_vm6, %v9574_v8, %v1736_v61  ;;  %v1745_v10 = vsel %vm12532_vm7, %v1736_v61, %v12531_v30  ;;  %v7571_v45 = vld [vmem:[#allocation2 + $0x158] ss:$-48 sps:$4 sm:$0xff]   ;;  %v7573_v42 = vld [vmem:[#allocation2 + $0x15c] ss:$-48 sps:$4 sm:$0xff]   ;;  %v1466_v17 = vpop.permute.xlu1 %1465  ;;  %v1156_v8 = vrot.slane %v12526_v18, %v12401_v26  ;;  %3360 = vmatprep.subr.bf16.mxu1 %v7068_v23  ;;  %v1660_v18 = vrot.slane %v12523_v51, %v12401_v26 }
 0x183   :  { %v1439_v40 = vrot.slane %v7329_v44, 6  ;;  %v1793_v9 = vmul.f32 %v1774_v41, %v1738_v2  ;;  %v1794_v63 = vmul.f32 %v1778_v57, %v1745_v10  ;;  %3321 = vmatprep.subr.bf16.mxu0 %v7573_v42  ;;  %v1470_v19 = vsel %vm12221_vm12, %v1466_v17, %v12534_v28  ;;  %3361 = vmatpush1.bf16.msra.mxu1 %v7067_v46  ;;  %v12538_v10 = vld [vmem:[#allocation55_spill] sm:$0xff] }
 0x184   :  { %v1471_v36 = vsel %vm12221_vm12, %v9599_v50, %v1466_v17  ;;  %3322 = vmatpush1.bf16.msra.mxu0 %v7571_v45  ;;  %v1526_v52 = vmul.f32 %v1510_v33, %v1470_v19  ;;  %v7582_v28 = vld [vmem:[#allocation2 + $0x110] ss:$-24 sps:$4 sm:$0xff]   ;;  %v2896_v19 = vld [vmem:[#allocation2 + $0x40] sm:$0xff]  ;;  %vm3395_vm6 = vcmask 1041408  }
 0x185   :  { %1447 = vst [vmem:[#allocation2 + $0x170] sm:$0xcc] %v1439_v40  ;;  %v7346_v5 = vpack.c.bf16 %v1794_v63, %v1793_v9  ;;  %v1232_v24 = vpop.permute.xlu0 %1231  ;;  %v1525_v47 = vmul.f32 %v1506_v35, %v1471_v36  ;;  %v12537_v35 = vld [vmem:[#allocation61_spill] sm:$0xff] }
 0x186   :  { %v1240_v37 = vsel %vm1237_vm11, %v1230_v56, %v1232_v24  ;;  %v1116_v50 = vpop.permute.xlu1 %1115 }
 0x187   :  { %v1826_v20 = vrot.slane %v7346_v5, 6  ;;  %v1292_v25 = vmul.f32 %v1270_v6, %v1240_v37  ;;  %v7334_v16 = vpack.c.bf16 %v1526_v52, %v1525_v47  ;;  %v1120_v29 = vsel %vm1119_vm14, %v1116_v50, %v12535_v1  ;;  %v7579_v5 = vld [vmem:[#allocation2 + $0xe8] ss:$48 sps:$4 sm:$0xff]   ;;  %v2900_v47 = vld [vmem:[#allocation2 + $0x120] sm:$0xff] }
 0x188   :  { %v1121_v0 = vsel %vm1119_vm14, %v9630_v38, %v1116_v50  ;;  %v1176_v41 = vmul.f32 %v1160_v12, %v1120_v29  ;;  %v1392_v38 = vrot.slane %v12528_v31, %v8758_v60  ;;  %v7044_v52 = vcombine.high %v2896_v19, %v2900_v47 }
 0x189   :  { %1834 = vst [vmem:[#allocation2 + $0x1a8] sm:$0xcc] %v1826_v20  ;;  %v7325_v48 = vpack.c.bf16 %v1292_v25, %v1291_v53  ;;  %v1622_v21 = vpop.permute.xlu0 %1621  ;;  %1562 = vst [vmem:[#allocation2 + $0xa8] sm:$0x33] %v7334_v16  ;;  %v1175_v51 = vmul.f32 %v1156_v8, %v1121_v0  ;;  %v7043_v37 = vcombine.low %v2896_v19, %v2900_v47  ;;  %v7588_v53 = vld [vmem:[#allocation2 + $0x28] ss:$80 sps:$4 sm:$0xff]  }
 0x18a   :  { %v1624_v59 = vsel %vm12219_vm13, %v9621_v22, %v1622_v21  ;;  %v1631_v43 = vsel %vm12219_vm13, %v1622_v21, %v12536_v49  ;;  %v1234_v4 = vpop.permute.xlu1 %1233 }
 0x18b   :  { %1329 = vst [vmem:[#allocation2 + $0x170] sm:$0x33] %v7325_v48  ;;  %v1679_v57 = vmul.f32 %v1660_v18, %v1624_v59  ;;  %v1680_v56 = vmul.f32 %v1664_v55, %v1631_v43  ;;  %v7322_v44 = vpack.c.bf16 %v1176_v41, %v1175_v51  ;;  %v1238_v22 = vsel %vm1237_vm11, %v1234_v4, %v12537_v35  ;;  %v7586_v18 = vld [vmem:[#allocation2 + $0x2c] ss:$80 sps:$4 sm:$0xff]  }
 0x18c   :  { %v1239_v33 = vsel %vm1237_vm11, %v1232_v24, %v1234_v4  ;;  %v1294_v30 = vmul.f32 %v1278_v58, %v1238_v22 }
 0x18d   :  { %v7342_v61 = vpack.c.bf16 %v1680_v56, %v1679_v57  ;;  %v1348_v13 = vpop.permute.xlu0 %1347  ;;  %v1208_v62 = vrot.slane %v7322_v44, 6  ;;  %v1293_v2 = vmul.f32 %v1274_v34, %v1239_v33 }
 0x18e   :  { %v1352_v46 = vsel %vm12222_vm15, %v1348_v13, %v12538_v10  ;;  %v1353_v31 = vsel %vm12222_vm15, %v9642_v3, %v1348_v13  ;;  %v7580_v3 = vld [vmem:[#allocation2 + $0x114] ss:$-24 sps:$4 sm:$0xff]  }
 0x18f   :  { %1716 = vst [vmem:[#allocation2 + $0x1a8] sm:$0x33] %v7342_v61  ;;  %v1408_v6 = vmul.f32 %v1392_v38, %v1352_v46  ;;  %1216 = vst [vmem:[#allocation2 + $0x8] sm:$0xcc] %v1208_v62  ;;  %v7326_v45 = vpack.c.bf16 %v1294_v30, %v1293_v2  ;;  %v1407_v42 = vmul.f32 %v1388_v11, %v1353_v31 }
 0x190   :  { %v2912_v7 = vld [vmem:[#allocation2 + $0xa8] sm:$0xff] }
 0x191   :  { %1330 = vst [vmem:[#allocation2 + $0x98] sm:$0x33] %v7326_v45  ;;  %v7330_v40 = vpack.c.bf16 %v1408_v6, %v1407_v42 }
 0x192   :  { %v7574_v9 = vld [vmem:[#allocation2 + $0x19c] ss:$-40 sps:$4 sm:$0xff]   ;;  %v7576_v63 = vld [vmem:[#allocation2 + $0x198] ss:$-40 sps:$4 sm:$0xff]  }
 0x193   :  { %v1440_v23 = vrot.slane %v7330_v40, 6  ;;  %3323 = vmatprep.subr.bf16.mxu0 %v7574_v9 }
 0x194   :  { %3324 = vmatpush1.bf16.msra.mxu0 %v7576_v63 }
 0x195   :  { %1448 = vst [vmem:[#allocation2 + $0x98] sm:$0xcc] %v1440_v23  ;;  %3325 = vmatprep.subr.bf16.mxu0 %v7577_v32 }
 0x196   :  { %v2916_v17 = vld [vmem:[#allocation2 + $0x1a8] sm:$0xff] }
 0x197   :  { %v7059_v8 = vcombine.low %v2912_v7, %v2916_v17  ;;  %v7060_v12 = vcombine.high %v2912_v7, %v2916_v17 }
 0x198   :  { %3326 = vmatpush1.bf16.msra.mxu0 %v7579_v5 }
 0x199   :  { %3362 = vmatprep.subr.bf16.mxu1 %v7060_v12  ;;  %3327 = vmatprep.subr.bf16.mxu0 %v7580_v3 }
 0x19a   :  { %3363 = vmatpush1.bf16.msra.mxu1 %v7059_v8  ;;  %v2945_v29 = vpop.permute.xlu0 %2944 }
 0x19c   :  { %3328 = vmatpush1.bf16.msra.mxu0 %v7582_v28  ;;  %v7583_v36 = vld [vmem:[#allocation2 + $0xc] ss:$144 sps:$4 sm:$0xff]   ;;  %v7585_v24 = vld [vmem:[#allocation2 + $0x8] ss:$144 sps:$4 sm:$0xff]  }
 0x19d   :  { %3364 = vmatprep.subr.bf16.mxu1 %v7583_v36 }
 0x19e   :  { %3365 = vmatpush1.bf16.msra.mxu1 %v7585_v24 }
 0x19f   :  { %7087 = vmatmul.mubr.msk.bf16.vlgmr.msra.gmra.mxu0 %vm3227_vm1, %v9354_v54  ;;  %3366 = vmatprep.subr.bf16.mxu1 %v7044_v52 }
 0x1a0   :  { %6639 = vmatprep.mubr.bf16.mxu0 %v12472_v15 }
 0x1a2   :  { %3367 = vmatpush1.bf16.msra.mxu1 %v7043_v37 }
 0x1a3   :  { %3368 = vmatprep.subr.bf16.mxu1 %v7586_v18 }
 0x1a6   :  { %3369 = vmatpush1.bf16.msra.mxu1 %v7588_v53 }
 0x1a9   :  { %7088 = vmatmul.mubr.msk.bf16.vlgmr.msra.gmra.mxu1 %vm3227_vm1, %v9354_v54 }
 0x1aa   :  { %6680 = vmatprep.mubr.bf16.mxu1 %v12472_v15  ;;  %v7117_v15 = vld [vmem:[%s12114_s1 + $0x5] ss:$8 sm:$0xf] }
 0x205   :  { %v3265_v20 = vpop.f32.mrf.mxu0 }
 0x206   :  { %v9724_v0 = vadd.f32 %v3265_v20, %v2945_v29 }
 0x207   :  { %v3267_v55 = vpop.f32.mrf.mxu0 }
 0x208   :  { %v9726_v21 = vadd.f32 %v3267_v55, %v2945_v29  ;;  %v3414_v54 = vmul.f32 %v9724_v0, %v9724_v0  ;;  %v3396_v41 = vsel %vm3395_vm6, %v9724_v0, 0.0 }
 0x209   :  { %v3306_v25 = vpop.f32.mrf.mxu1  ;;  %v3269_v50 = vpop.f32.mrf.mxu0 }
 0x20a   :  { %v9728_v58 = vadd.f32 %v3306_v25, %v2945_v29  ;;  %v3415_v51 = vmul.f32 %v9726_v21, %v9726_v21  ;;  %v3397_v59 = vsel %vm3395_vm6, %v9726_v21, 0.0  ;;  %v3422_v57 = vsel %vm3395_vm6, %v3414_v54, 0.0 }
 0x20b   :  { %v3308_v16 = vpop.f32.mrf.mxu1  ;;  %v3270_v48 = vpop.f32.mrf.mxu0  ;;  %v3398_v38 = vadd.f32 %v3397_v59, %v3396_v41 }
 0x20c   :  { %v9738_v49 = vadd.f32 %v3308_v16, %v2945_v29  ;;  %v3416_v43 = vmul.f32 %v9728_v58, %v9728_v58  ;;  %v3423_v56 = vsel %vm3395_vm6, %v3415_v51, 0.0  ;;  %v3399_v4 = vsel %vm3395_vm6, %v9728_v58, 0.0 }
 0x20d   :  { %v3310_v34 = vpop.f32.mrf.mxu1  ;;  %v3424_v61 = vadd.f32 %v3423_v56, %v3422_v57  ;;  %v3400_v13 = vadd.f32 %v3399_v4, %v3398_v38  ;;  %v3447_v38 = vld [vmem:[%s12118_s5] sm:$0x3] }
 0x20e   :  { %v3417_v35 = vmul.f32 %v9738_v49, %v9738_v49  ;;  %v3425_v22 = vsel %vm3395_vm6, %v3416_v43, 0.0  ;;  %v3401_v62 = vsel %vm3395_vm6, %v9738_v49, 0.0  ;;  %v3445_v43 = vld [vmem:[%s12117_s4] sm:$0x3]  ;;  %s12541_s4 = smov 71  }
 0x20f   :  { %v3311_v1 = vpop.f32.mrf.mxu1  ;;  %v3426_v46 = vadd.f32 %v3425_v22, %v3424_v61  ;;  %v3402_v42 = vadd.f32 %v3401_v62, %v3400_v13  ;;  %v7652_v61 = vmov 1983009808  }
 0x210   :  { %v3427_v6 = vsel %vm3395_vm6, %v3417_v35, 0.0  ;;  %v3511_v35 = vunpack.c.l.s4 %v7652_v61 }
 0x211   :  { %v3428_v23 = vadd.f32 %v3427_v6, %v3426_v46 }
 0x25f   :  { %v3347_v44 = vpop.f32.mrf.mxu0 }
 0x260   :  { %v9746_v11 = vadd.f32 %v3347_v44, %v2945_v29 }
 0x261   :  { %v3349_v33 = vpop.f32.mrf.mxu0 }
 0x262   :  { %v3418_v2 = vmul.f32 %v9746_v11, %v9746_v11  ;;  %v3350_v30 = vadd.f32 %v3349_v33, %v2945_v29  ;;  %v3403_v31 = vsel %vm3395_vm6, %v9746_v11, 0.0  ;;  %v3512_v33 = vunpack.c.0.s8 %v3511_v35 }
 0x263   :  { %v3351_v10 = vpop.f32.mrf.mxu0  ;;  %v3404_v63 = vadd.f32 %v3403_v31, %v3402_v42 }
 0x264   :  { %v3429_v40 = vsel %vm3395_vm6, %v3418_v2, 0.0  ;;  %v3419_v9 = vmul.f32 %v3350_v30, %v3350_v30  ;;  %v3405_v32 = vsel %vm3395_vm6, %v3350_v30, 0.0 }
 0x265   :  { %v3352_v45 = vpop.f32.mrf.mxu0  ;;  %v3430_v7 = vadd.f32 %v3429_v40, %v3428_v23  ;;  %v3406_v5 = vadd.f32 %v3405_v32, %v3404_v63 }
 0x266   :  { %v3431_v8 = vsel %vm3395_vm6, %v3419_v9, 0.0 }
 0x267   :  { %v3432_v52 = vadd.f32 %v3431_v8, %v3430_v7 }
 0x269   :  { %v3388_v17 = vpop.f32.mrf.mxu1 }
 0x26a   :  { %v3389_v12 = vadd.f32 %v3388_v17, %v2945_v29 }
 0x26b   :  { %v3390_v3 = vpop.f32.mrf.mxu1 }
 0x26c   :  { %v3407_v28 = vsel %vm3395_vm6, %v3389_v12, 0.0  ;;  %v3420_v19 = vmul.f32 %v3389_v12, %v3389_v12  ;;  %v3391_v36 = vadd.f32 %v3390_v3, %v2945_v29 }
 0x26d   :  { %v3392_v24 = vpop.f32.mrf.mxu1  ;;  %v3408_v47 = vadd.f32 %v3407_v28, %v3406_v5 }
 0x26e   :  { %v3421_v37 = vmul.f32 %v3391_v36, %v3391_v36  ;;  %v3409_v18 = vsel %vm3395_vm6, %v3391_v36, 0.0  ;;  %v3433_v53 = vsel %vm3395_vm6, %v3420_v19, 0.0 }
 0x26f   :  { %v3393_v20 = vpop.f32.mrf.mxu1  ;;  %v3410_v25 = vadd.f32 %v3409_v18, %v3408_v47  ;;  %v3434_v55 = vadd.f32 %v3433_v53, %v3432_v52 }
 0x270   :  { %v3435_v16 = vsel %vm3395_vm6, %v3421_v37, 0.0 }
 0x271   :  { %3411 = vadd.xlane.f32.xlu1 %v3410_v25  ;;  %v3436_v50 = vadd.f32 %v3435_v16, %v3434_v55 }
 0x273   :  { %3437 = vadd.xlane.f32.xlu0 %v3436_v50 }
 0x2fa   :  { %v3412_v34 = vpop.xlane.xlu1 %3411 }
 0x2fb   :  { %v3413_v48 = vmul.f32 0.0009765625, %v3412_v34 }
 0x2fc   :  { %v3438_v1 = vpop.xlane.xlu0 %3437 }
 0x2fd   :  { %v3440_v29 = vmul.f32 %v3413_v48, %v3413_v48  ;;  %v3439_v54 = vmul.f32 0.0009765625, %v3438_v1 }
 0x2ff   :  { %v3441_v51 = vsub.f32 %v3439_v54, %v3440_v29 }
 0x301   :  { %v3442_v41 = vmax.f32 %v3441_v51, 0.0 }
 0x303   :  { %v3443_v59 = vadd.f32 1e-05, %v3442_v41 }
 0x305   :  { %7628 = vrsqrt.f32 %v3443_v59 }
 0x312   :  { %v7629_v57 = vpop.eup %7628 }
 0x313   :  { %v3446_v56 = vmul.f32 %v7629_v57, %v3445_v43 }
 0x315   :  { %3452 = vperm.xlu1 %7521, %v3446_v56   ;;  %v3448_v44 = vmul.f32 %v3446_v56, %v3413_v48 }
 0x317   :  { %v3449_v4 = vsub.f32 %v3447_v38, %v3448_v44 }
 0x319   :  { %3465 = vperm.xlu0 %7520, %v3449_v4  }
 0x390   :  { %v3453_v22 = vpop.permute.xlu1 %3452 }
 0x391   :  { %v3455_v13 = vmul.f32 %v3453_v22, %v9724_v0  ;;  %v3456_v62 = vmul.f32 %v3453_v22, %v9726_v21  ;;  %v3457_v2 = vmul.f32 %v3453_v22, %v9728_v58  ;;  %v3458_v10 = vmul.f32 %v3453_v22, %v9738_v49 }
 0x392   :  { %v3459_v46 = vmul.f32 %v3453_v22, %v9746_v11  ;;  %v3460_v31 = vmul.f32 %v3453_v22, %v3350_v30  ;;  %v3461_v6 = vmul.f32 %v3453_v22, %v3389_v12  ;;  %v3462_v45 = vmul.f32 %v3453_v22, %v3391_v36  ;;  %v12539_v11 = vld [vmem:[#allocation4_spill] sm:$0xff] }
 0x393   :  { %v3515_v30 = vsub.s32 %v3512_v33, %v12539_v11 }
 0x394   :  { %v3466_v42 = vpop.permute.xlu0 %3465 }
 0x395   :  { %v3468_v40 = vadd.f32 %v3466_v42, %v3455_v13  ;;  %v3469_v9 = vadd.f32 %v3466_v42, %v3456_v62  ;;  %v3470_v63 = vadd.f32 %v3466_v42, %v3457_v2  ;;  %v3471_v23 = vadd.f32 %v3466_v42, %v3458_v10 }
 0x396   :  { %v3472_v32 = vadd.f32 %v3466_v42, %v3459_v46  ;;  %v3473_v7 = vadd.f32 %v3466_v42, %v3460_v31  ;;  %v3474_v17 = vadd.f32 %v3466_v42, %v3461_v6  ;;  %v3475_v0 = vadd.f32 %v3466_v42, %v3462_v45 }
 0x397   :  { %vm3476_vm1 = vcmp.gt.f32.partialorder %v3468_v40, 0.0  ;;  %vm3477_vm7 = vcmp.gt.f32.partialorder %v3469_v9, 0.0  ;;  %vm3478_vm6 = vcmp.gt.f32.partialorder %v3470_v63, 0.0  ;;  %vm3479_vm13 = vcmp.gt.f32.partialorder %v3471_v23, 0.0 }
 0x398   :  { %vm3480_vm10 = vcmp.gt.f32.partialorder %v3472_v32, 0.0  ;;  %vm3481_vm12 = vcmp.gt.f32.partialorder %v3473_v7, 0.0  ;;  %vm3482_vm15 = vcmp.gt.f32.partialorder %v3474_v17, 0.0  ;;  %vm3483_vm8 = vcmp.gt.f32.partialorder %v3475_v0, 0.0 }
 0x399   :  { %v3484_v21 = vmul.f32 0.01, %v3468_v40  ;;  %v3485_v58 = vmul.f32 0.01, %v3469_v9  ;;  %v3486_v49 = vmul.f32 0.01, %v3470_v63 }
 0x39a   :  { %v3487_v8 = vmul.f32 0.01, %v3471_v23  ;;  %v3488_v12 = vmul.f32 0.01, %v3472_v32  ;;  %v3489_v5 = vmul.f32 0.01, %v3473_v7 }
 0x39b   :  { %v3490_v3 = vmul.f32 0.01, %v3474_v17  ;;  %v3491_v28 = vmul.f32 0.01, %v3475_v0  ;;  %v3492_v19 = vsel %vm3476_vm1, %v3468_v40, %v3484_v21  ;;  %v3493_v36 = vsel %vm3477_vm7, %v3469_v9, %v3485_v58 }
 0x39c   :  { %v3494_v24 = vsel %vm3478_vm6, %v3470_v63, %v3486_v49  ;;  %v3495_v47 = vsel %vm3479_vm13, %v3471_v23, %v3487_v8  ;;  %v3496_v52 = vsel %vm3480_vm10, %v3472_v32, %v3488_v12  ;;  %v3497_v37 = vsel %vm3481_vm12, %v3473_v7, %v3489_v5 }
 0x39d   :  { %v3498_v18 = vsel %vm3482_vm15, %v3474_v17, %v3490_v3  ;;  %v3499_v53 = vsel %vm3483_vm8, %v3475_v0, %v3491_v28  ;;  %v3508_v20 = vcombine.low %v3492_v19, %v3493_v36  ;;  %v3509_v25 = vcombine.low %v3494_v24, %v3495_v47 }
 0x39e   :  { %v3525_v55 = vcombine.low %v3496_v52, %v3497_v37  ;;  %v3526_v16 = vcombine.low %v3498_v18, %v3499_v53  ;;  %vm12638_vm8 = vcmp.lt.s32.totalorder %v7874_v14, 57  ;;  %vm12671_vm12 = vcmp.lt.s32.totalorder %v7874_v14, 121 }
 0x39f   :  { %v3516_v50 = vrot.slane %v3508_v20, %v3515_v30  ;;  %v3523_v34 = vrot.slane %v3509_v25, %v3515_v30  ;;  %vm12639_vm10 = vmmov %vm12638_vm8  ;;  %vm12687_vm15 = vcmp.lt.s32.totalorder %v7874_v14, 119 }
 0x3a0   :  { %v3533_v48 = vrot.slane %v3525_v55, %v3515_v30  ;;  %v3540_v1 = vrot.slane %v3526_v16, %v3515_v30  ;;  %vm12673_vm13 = vmmov %vm12671_vm12 }
 0x3a1   :  { %v3524_v29 = vcombine.low %v3516_v50, %v3523_v34  ;;  %v7499_v54 = vcombine.low %v3523_v34, %v3523_v34  ;;  %vm12689_vm1 = vmmov %vm12687_vm15 }
 0x3a2   :  { %v3541_v51 = vcombine.low %v3533_v48, %v3540_v1  ;;  %v7500_v41 = vcombine.low %v3540_v1, %v3540_v1  ;;  %vm12690_vm7 = vmmov %vm12638_vm8 }
 0x3a3   :  { %v3560_v59 = vrot.slane %v3524_v29, %v3515_v30  ;;  %v3567_v43 = vrot.slane %v7499_v54, %v3515_v30  ;;  %v7135_v29 = vld [vmem:[%s12114_s1 + $0x40] ss:$8 sm:$0xf]  ;;  %vm12694_vm6 = vmmov %vm12690_vm7 }
 0x3a4   :  { %v9785_v57 = vrot.slane %v3541_v51, %v3515_v30  ;;  %v9787_v56 = vrot.slane %v7500_v41, %v3515_v30  ;;  %v7136_v54 = vld [vmem:[%s12114_s1 + $0x40] ss:$8 sm:$0xf0]  ;;  %v7241_v51 = vld [vmem:[%s12114_s1 + $0xc2] ss:$8 sm:$0xf] }
 0x3a5   :  { %4403 = vrot.lane.b32.xlu0 %v3567_v43, %s7634_s17  ;;  %4399 = vrot.lane.b32.xlu1 %v3560_v59, %s7634_s17  ;;  %v9791_v38 = vcombine.high %v3560_v59, %v3560_v59  ;;  %v9793_v44 = vcombine.high %v3567_v43, %v3567_v43  ;;  %v7242_v41 = vld [vmem:[%s12114_s1 + $0xc2] ss:$8 sm:$0xf0] }
 0x3a6   :  { %12540 = vst [vmem:[#allocation30_spill] sm:$0xff] %v9787_v56  ;;  %v9797_v4 = vcombine.high %v9787_v56, %v9787_v56  ;;  %v9801_v61 = vcombine.high %v9785_v57, %v9785_v57 }
 0x3a7   :  { %v7443_v35 = vpack.c.bf16 %v9791_v38, %v3560_v59  ;;  %v7444_v22 = vpack.c.bf16 %v9793_v44, %v3567_v43 }
 0x3a8   :  { %v7445_v33 = vpack.c.bf16 %v9801_v61, %v9785_v57  ;;  %v7446_v13 = vpack.c.bf16 %v9797_v4, %v9787_v56 }
 0x3a9   :  { %4283 = vrot.lane.b32.xlu0 %v3560_v59, %s7635_s18  ;;  %4515 = vrot.lane.b32.xlu1 %v3560_v59, %s7636_s19  ;;  %v5112_v62 = vrot.slane %v7443_v35, 7  ;;  %v5113_v2 = vrot.slane %v7444_v22, 7  ;;  %v7193_v22 = vld [vmem:[%s12114_s1 + $0x82] ss:$8 sm:$0xf] }
 0x3aa   :  { %v5114_v10 = vrot.slane %v7445_v33, 7  ;;  %v5115_v46 = vrot.slane %v7446_v13, 7  ;;  %v7194_v33 = vld [vmem:[%s12114_s1 + $0x82] ss:$8 sm:$0xf0] }
 0x3ab   :  { %5120 = vst [vmem:[#allocation2 + $0xc0] sm:$0x22] %v5112_v62  ;;  %5121 = vst [vmem:[#allocation2 + $0x168] sm:$0x22] %v5113_v2 }
 0x3ac   :  { %5122 = vst [vmem:[#allocation2 + $0x118] sm:$0x22] %v5114_v10  ;;  %5123 = vst [vmem:[#allocation2 + $0x120] sm:$0x22] %v5115_v46  ;;  %v10085_v46 = vor.u32 %v7136_v54, %v7135_v29 }
 0x3ad   :  { %4287 = vrot.lane.b32.xlu0 %v3567_v43, %s7635_s18  ;;  %4519 = vrot.lane.b32.xlu1 %v3567_v43, %s7636_s19  ;;  %v7105_v13 = vld [vmem:[%s12114_s1 + $0x3] ss:$8 sm:$0xf]  ;;  %v7211_v2 = vld [vmem:[%s12114_s1 + $0x85] ss:$8 sm:$0xf] }
 0x3ae   :  { %v7106_v62 = vld [vmem:[%s12114_s1 + $0x3] ss:$8 sm:$0xf0]  ;;  %v7212_v10 = vld [vmem:[%s12114_s1 + $0x85] ss:$8 sm:$0xf0] }
 0x3af   :  { %v7223_v29 = vld [vmem:[%s12114_s1 + $0x87] ss:$8 sm:$0xf] }
 0x3b0   :  { %v7224_v54 = vld [vmem:[%s12114_s1 + $0x87] ss:$8 sm:$0xf0] }
 0x3b1   :  { %3707 = vrot.lane.b32.xlu0 %v3560_v59, %s12229_s26  ;;  %3595 = vrot.lane.b32.xlu1 %v3560_v59, %s7644_s28 }
 0x3b5   :  { %3711 = vrot.lane.b32.xlu0 %v3567_v43, %s12229_s26  ;;  %3599 = vrot.lane.b32.xlu1 %v3567_v43, %s7644_s28 }
 0x3b9   :  { %4055 = vrot.lane.b32.xlu0 %v3560_v59, %s7641_s25  ;;  %3939 = vrot.lane.b32.xlu1 %v3560_v59, %s12228_s20 }
 0x3bd   :  { %4059 = vrot.lane.b32.xlu0 %v3567_v43, %s7641_s25  ;;  %3943 = vrot.lane.b32.xlu1 %v3567_v43, %s12228_s20 }
 0x3c1   :  { %5471 = vrot.lane.b32.xlu0 %v3560_v59, %s12226_s27  ;;  %4167 = vrot.lane.b32.xlu1 %v3560_v59, %s7639_s21 }
 0x3c5   :  { %5475 = vrot.lane.b32.xlu0 %v3567_v43, %s12226_s27  ;;  %4171 = vrot.lane.b32.xlu1 %v3567_v43, %s7639_s21 }
 0x3c9   :  { %5359 = vrot.lane.b32.xlu0 %v3560_v59, %s12224_s29  ;;  %4407 = vrot.lane.b32.xlu1 %v9785_v57, %s7634_s17 }
 0x3cd   :  { %5363 = vrot.lane.b32.xlu0 %v3567_v43, %s12224_s29  ;;  %4523 = vrot.lane.b32.xlu1 %v9785_v57, %s7636_s19 }
 0x3d1   :  { %3603 = vrot.lane.b32.xlu0 %v9785_v57, %s7644_s28  ;;  %3823 = vrot.lane.b32.xlu1 %v3560_v59, %s12541_s4 }
 0x3d5   :  { %3715 = vrot.lane.b32.xlu0 %v9785_v57, %s12229_s26  ;;  %3827 = vrot.lane.b32.xlu1 %v3567_v43, %s12541_s4 }
 0x3d9   :  { %3947 = vrot.lane.b32.xlu0 %v9785_v57, %s12228_s20  ;;  %4291 = vrot.lane.b32.xlu1 %v9785_v57, %s7635_s18 }
 0x3dd   :  { %4063 = vrot.lane.b32.xlu0 %v9785_v57, %s7641_s25  ;;  %4627 = vrot.lane.b32.xlu1 %v3560_v59, %s7649_s23 }
 0x3e1   :  { %4175 = vrot.lane.b32.xlu0 %v9785_v57, %s7639_s21  ;;  %4859 = vrot.lane.b32.xlu1 %v3560_v59, %s7650_s16 }
 0x3e5   :  { %4743 = vrot.lane.b32.xlu0 %v3560_v59, %s7651_s11  ;;  %5243 = vrot.lane.b32.xlu1 %v3560_v59, %s12371_s30 }
 0x3e9   :  { %5127 = vrot.lane.b32.xlu0 %v3560_v59, %s12374_s24  ;;  %5247 = vrot.lane.b32.xlu1 %v3567_v43, %s12371_s30 }
 0x3ed   :  { %5131 = vrot.lane.b32.xlu0 %v3567_v43, %s12374_s24  ;;  %5479 = vrot.lane.b32.xlu1 %v9785_v57, %s12226_s27 }
 0x3f1   :  { %4631 = vrot.lane.b32.xlu0 %v3567_v43, %s7649_s23  ;;  %3831 = vrot.lane.b32.xlu1 %v9785_v57, %s12541_s4 }
 0x3f5   :  { %4747 = vrot.lane.b32.xlu0 %v3567_v43, %s7651_s11  ;;  %4975 = vrot.lane.b32.xlu1 %v3560_v59, %s12372_s13  ;;  %v3548_v59 = vld [vmem:[%s12114_s1] ss:$8 sm:$0xf] }
 0x3f9   :  { %4863 = vrot.lane.b32.xlu0 %v3567_v43, %s7650_s16  ;;  %5367 = vrot.lane.b32.xlu1 %v9785_v57, %s12224_s29 }
 0x3fd   :  { %4979 = vrot.lane.b32.xlu0 %v3567_v43, %s12372_s13  ;;  %5135 = vrot.lane.b32.xlu1 %v9785_v57, %s12374_s24  ;;  %v3549_v43 = vld [vmem:[%s12114_s1] ss:$8 sm:$0xf0] }
 0x401   :  { %4635 = vrot.lane.b32.xlu0 %v9785_v57, %s7649_s23  ;;  %5251 = vrot.lane.b32.xlu1 %v9785_v57, %s12371_s30 }
 0x405   :  { %4751 = vrot.lane.b32.xlu0 %v9785_v57, %s7651_s11  ;;  %4411 = vrot.lane.b32.xlu1 %v9787_v56, %s7634_s17 }
 0x409   :  { %4867 = vrot.lane.b32.xlu0 %v9785_v57, %s7650_s16  ;;  %4527 = vrot.lane.b32.xlu1 %v9787_v56, %s7636_s19 }
 0x40d   :  { %4639 = vrot.lane.b32.xlu0 %v9787_v56, %s7649_s23  ;;  %4295 = vrot.lane.b32.xlu1 %v9787_v56, %s7635_s18 }
 0x411   :  { %4871 = vrot.lane.b32.xlu0 %v9787_v56, %s7650_s16  ;;  %3607 = vrot.lane.b32.xlu1 %v9787_v56, %s7644_s28 }
 0x415   :  { %3719 = vrot.lane.b32.xlu1 %v9787_v56, %s12229_s26  ;;  %4517 = vrot.lane.b32.xlu0 %v9791_v38, %s7636_s19 }
 0x417   :  { %v9889_v31 = vpop.permute.xlu0 %4403  ;;  %v9891_v6 = vpop.permute.xlu1 %4399 }
 0x418   :  { %12542 = vst [vmem:[#allocation25_spill] sm:$0xff] %v9891_v6  ;;  %v7160_v6 = vld [vmem:[%s12114_s1 + $0x44] ss:$8 sm:$0xf0] }
 0x419   :  { %3951 = vrot.lane.b32.xlu1 %v9787_v56, %s12228_s20  ;;  %3597 = vrot.lane.b32.xlu0 %v9791_v38, %s7644_s28 }
 0x41b   :  { %v9897_v45 = vpop.permute.xlu0 %4283  ;;  %v9899_v42 = vpop.permute.xlu1 %4515 }
 0x41c   :  { %12543 = vst [vmem:[#allocation58_spill] sm:$0xff] %v9897_v45  ;;  %12544 = vst [vmem:[#allocation52_spill] sm:$0xff] %v9899_v42  ;;  %v7147_v45 = vld [vmem:[%s12114_s1 + $0x42] ss:$8 sm:$0xf] }
 0x41d   :  { %4067 = vrot.lane.b32.xlu1 %v9787_v56, %s7641_s25  ;;  %3941 = vrot.lane.b32.xlu0 %v9791_v38, %s12228_s20 }
 0x41f   :  { %v9905_v40 = vpop.permute.xlu0 %4287  ;;  %v9907_v9 = vpop.permute.xlu1 %4519 }
 0x421   :  { %4179 = vrot.lane.b32.xlu1 %v9787_v56, %s7639_s21  ;;  %4169 = vrot.lane.b32.xlu0 %v9791_v38, %s7639_s21 }
 0x423   :  { %v9913_v63 = vpop.permute.xlu0 %3707  ;;  %v9915_v23 = vpop.permute.xlu1 %3595 }
 0x424   :  { %12545 = vst [vmem:[#allocation27_spill] sm:$0xff] %v9913_v63  ;;  %12546 = vst [vmem:[#allocation56_spill] sm:$0xff] %v9915_v23 }
 0x425   :  { %5483 = vrot.lane.b32.xlu1 %v9787_v56, %s12226_s27  ;;  %4405 = vrot.lane.b32.xlu0 %v9793_v44, %s7634_s17 }
 0x427   :  { %v9921_v32 = vpop.permute.xlu0 %3711  ;;  %v9923_v7 = vpop.permute.xlu1 %3599 }
 0x428   :  { %12547 = vst [vmem:[#allocation8_spill] sm:$0xff] %v9921_v32  ;;  %12548 = vst [vmem:[#allocation17_spill] sm:$0xff] %v9923_v7  ;;  %v12592_v32 = vld [vmem:[#allocation12_spill] sm:$0xff] }
 0x429   :  { %3835 = vrot.lane.b32.xlu1 %v9787_v56, %s12541_s4  ;;  %4521 = vrot.lane.b32.xlu0 %v9793_v44, %s7636_s19 }
 0x42b   :  { %v9929_v17 = vpop.permute.xlu0 %4055  ;;  %v9931_v0 = vpop.permute.xlu1 %3939 }
 0x42c   :  { %12549 = vst [vmem:[#allocation32_spill] sm:$0xff] %v9929_v17  ;;  %12550 = vst [vmem:[#allocation34_spill] sm:$0xff] %v9931_v0  ;;  %v7230_v17 = vld [vmem:[%s12114_s1 + $0xc0] ss:$8 sm:$0xf0] }
 0x42d   :  { %5371 = vrot.lane.b32.xlu1 %v9787_v56, %s12224_s29  ;;  %3825 = vrot.lane.b32.xlu0 %v9791_v38, %s12541_s4 }
 0x42f   :  { %v9937_v21 = vpop.permute.xlu0 %4059  ;;  %v9939_v58 = vpop.permute.xlu1 %3943 }
 0x430   :  { %12551 = vst [vmem:[#allocation36_spill] sm:$0xff] %v9937_v21  ;;  %12552 = vst [vmem:[#allocation10_spill] sm:$0xff] %v9939_v58 }
 0x431   :  { %5139 = vrot.lane.b32.xlu1 %v9787_v56, %s12374_s24  ;;  %4289 = vrot.lane.b32.xlu0 %v9793_v44, %s7635_s18 }
 0x433   :  { %v9945_v49 = vpop.permute.xlu0 %5471  ;;  %v9947_v11 = vpop.permute.xlu1 %4167 }
 0x434   :  { %12553 = vst [vmem:[#allocation20_spill] sm:$0xff] %v9945_v49  ;;  %12554 = vst [vmem:[#allocation15_spill] sm:$0xff] %v9947_v11 }
 0x435   :  { %5255 = vrot.lane.b32.xlu1 %v9787_v56, %s12371_s30  ;;  %4629 = vrot.lane.b32.xlu0 %v9791_v38, %s7649_s23 }
 0x437   :  { %v9953_v30 = vpop.permute.xlu0 %5475  ;;  %v9955_v8 = vpop.permute.xlu1 %4171 }
 0x438   :  { %12555 = vst [vmem:[#allocation31_spill] sm:$0xff] %v9953_v30  ;;  %12556 = vst [vmem:[#allocation28_spill] sm:$0xff] %v9955_v8  ;;  %v7159_v30 = vld [vmem:[%s12114_s1 + $0x44] ss:$8 sm:$0xf] }
 0x439   :  { %4983 = vrot.lane.b32.xlu1 %v9785_v57, %s12372_s13  ;;  %4757 = vrot.lane.b32.xlu0 %v9797_v4, %s7651_s11 }
 0x43b   :  { %v9961_v12 = vpop.permute.xlu0 %5359  ;;  %v9963_v5 = vpop.permute.xlu1 %4407 }
 0x43c   :  { %12557 = vst [vmem:[#allocation42_spill] sm:$0xff] %v9961_v12  ;;  %12558 = vst [vmem:[#allocation16_spill] sm:$0xff] %v9963_v5  ;;  %v7206_v12 = vld [vmem:[%s12114_s1 + $0x84] ss:$8 sm:$0xf0] }
 0x43d   :  { %4755 = vrot.lane.b32.xlu1 %v9787_v56, %s7651_s11  ;;  %4861 = vrot.lane.b32.xlu0 %v9791_v38, %s7650_s16  ;;  %v7218_v56 = vld [vmem:[%s12114_s1 + $0x86] ss:$8 sm:$0xf0] }
 0x43f   :  { %v9969_v3 = vpop.permute.xlu0 %5363  ;;  %v9971_v28 = vpop.permute.xlu1 %4523 }
 0x440   :  { %12559 = vst [vmem:[#allocation18_spill] sm:$0xff] %v9969_v3  ;;  %12560 = vst [vmem:[#allocation21_spill] sm:$0xff] %v9971_v28 }
 0x441   :  { %5245 = vrot.lane.b32.xlu0 %v9791_v38, %s12371_s30  ;;  %4401 = vrot.lane.b32.xlu1 %v9791_v38, %s7634_s17 }
 0x443   :  { %v9977_v19 = vpop.permute.xlu0 %3603  ;;  %v9979_v36 = vpop.permute.xlu1 %3823 }
 0x444   :  { %12561 = vst [vmem:[#allocation24_spill] sm:$0xff] %v9977_v19  ;;  %12562 = vst [vmem:[#allocation26_spill] sm:$0xff] %v9979_v36  ;;  %v12587_v19 = vld [vmem:[#allocation5_spill] sm:$0xff] }
 0x445   :  { %5477 = vrot.lane.b32.xlu0 %v9793_v44, %s12226_s27  ;;  %4285 = vrot.lane.b32.xlu1 %v9791_v38, %s7635_s18 }
 0x447   :  { %v9985_v24 = vpop.permute.xlu0 %3715  ;;  %v9987_v47 = vpop.permute.xlu1 %3827 }
 0x448   :  { %12563 = vst [vmem:[#allocation33_spill] sm:$0xff] %v9985_v24  ;;  %v10107_v24 = vor.u32 %v7194_v33, %v7193_v22  ;;  %v7236_v22 = vld [vmem:[%s12114_s1 + $0xc1] ss:$8 sm:$0xf0] }
 0x449   :  { %3829 = vrot.lane.b32.xlu0 %v9793_v44, %s12541_s4  ;;  %3709 = vrot.lane.b32.xlu1 %v9791_v38, %s12229_s26  ;;  %v12582_v33 = vld [vmem:[#allocation6_spill] sm:$0xff] }
 0x44a   :  { %12581 = vst [vmem:[#allocation63_spill] sm:$0xff] %v10107_v24 }
 0x44b   :  { %v9993_v52 = vpop.permute.xlu0 %3947  ;;  %v9995_v37 = vpop.permute.xlu1 %4291 }
 0x44c   :  { %12564 = vst [vmem:[#allocation19_spill] sm:$0xff] %v9993_v52  ;;  %12565 = vst [vmem:[#allocation35_spill] sm:$0xff] %v9995_v37  ;;  %v10099_v52 = vor.u32 %v3549_v43, %v3548_v59  ;;  %v10121_v59 = vor.u32 %v7212_v10, %v7211_v2  ;;  %v7235_v43 = vld [vmem:[%s12114_s1 + $0xc1] ss:$8 sm:$0xf] }
 0x44d   :  { %4529 = vrot.lane.b32.xlu0 %v9797_v4, %s7636_s19  ;;  %4057 = vrot.lane.b32.xlu1 %v9791_v38, %s7641_s25  ;;  %v7100_v2 = vld [vmem:[%s12114_s1 + $0x2] ss:$8 sm:$0xf0] }
 0x44f   :  { %v10001_v18 = vpop.permute.xlu0 %4063  ;;  %v10003_v53 = vpop.permute.xlu1 %4627 }
 0x450   :  { %12566 = vst [vmem:[#allocation14_spill] sm:$0xff] %v10001_v18  ;;  %12567 = vst [vmem:[#allocation41_spill] sm:$0xff] %v10003_v53 }
 0x451   :  { %4977 = vrot.lane.b32.xlu0 %v9791_v38, %s12372_s13  ;;  %5473 = vrot.lane.b32.xlu1 %v9791_v38, %s12226_s27 }
 0x453   :  { %v10009_v20 = vpop.permute.xlu0 %4175  ;;  %v10011_v25 = vpop.permute.xlu1 %4859 }
 0x454   :  { %12568 = vst [vmem:[#allocation13_spill] sm:$0xff] %v10009_v20  ;;  %12569 = vst [vmem:[#allocation37_spill] sm:$0xff] %v10011_v25  ;;  %v7141_v25 = vld [vmem:[%s12114_s1 + $0x41] ss:$8 sm:$0xf] }
 0x455   :  { %5365 = vrot.lane.b32.xlu0 %v9793_v44, %s12224_s29  ;;  %5361 = vrot.lane.b32.xlu1 %v9791_v38, %s12224_s29 }
 0x457   :  { %v10017_v55 = vpop.permute.xlu0 %4743  ;;  %v10019_v16 = vpop.permute.xlu1 %5243 }
 0x458   :  { %12570 = vst [vmem:[#allocation43_spill] sm:$0xff] %v10017_v55  ;;  %12571 = vst [vmem:[#allocation45_spill] sm:$0xff] %v10019_v16 }
 0x459   :  { %3721 = vrot.lane.b32.xlu0 %v9797_v4, %s12229_s26  ;;  %3601 = vrot.lane.b32.xlu1 %v9793_v44, %s7644_s28 }
 0x45b   :  { %v10025_v50 = vpop.permute.xlu0 %5127  ;;  %v10027_v34 = vpop.permute.xlu1 %5247 }
 0x45c   :  { %12572 = vst [vmem:[#allocation23_spill] sm:$0xff] %v10025_v50  ;;  %12573 = vst [vmem:[#allocation44_spill] sm:$0xff] %v10027_v34  ;;  %v7118_v50 = vld [vmem:[%s12114_s1 + $0x5] ss:$8 sm:$0xf0] }
 0x45d   :  { %3953 = vrot.lane.b32.xlu0 %v9797_v4, %s12228_s20  ;;  %3713 = vrot.lane.b32.xlu1 %v9793_v44, %s12229_s26  ;;  %v10133_v3 = vor.u32 %v7118_v50, %v7117_v15  ;;  %v10167_v50 = vor.u32 %v7236_v22, %v7235_v43  ;;  %v7229_v15 = vld [vmem:[%s12114_s1 + $0xc0] ss:$8 sm:$0xf]  ;;  %v7175_v43 = vld [vmem:[%s12114_s1 + $0x47] ss:$8 sm:$0xf] }
 0x45f   :  { %v10033_v48 = vpop.permute.xlu0 %5131  ;;  %v10035_v1 = vpop.permute.xlu1 %5479  ;;  %12589 = vst [vmem:[#allocation22_spill] sm:$0xff] %v10167_v50 }
 0x460   :  { %12574 = vst [vmem:[#allocation50_spill] sm:$0xff] %v10033_v48  ;;  %12575 = vst [vmem:[#allocation39_spill] sm:$0xff] %v10035_v1  ;;  %v10097_v48 = vor.u32 %v7242_v41, %v7241_v51  ;;  %v7130_v51 = vld [vmem:[%s12114_s1 + $0x7] ss:$8 sm:$0xf0]  ;;  %v10119_v41 = vor.u32 %v7106_v62, %v7105_v13  ;;  %v10135_v13 = vor.u32 %v7224_v54, %v7223_v29 }
 0x461   :  { %4297 = vrot.lane.b32.xlu0 %v9797_v4, %s7635_s18  ;;  %3945 = vrot.lane.b32.xlu1 %v9793_v44, %s12228_s20  ;;  %v7099_v62 = vld [vmem:[%s12114_s1 + $0x2] ss:$8 sm:$0xf]  ;;  %v7205_v54 = vld [vmem:[%s12114_s1 + $0x84] ss:$8 sm:$0xf] }
 0x462   :  { %12580 = vst [vmem:[#allocation47_spill] sm:$0xff] %v10097_v48  ;;  %12584 = vst [vmem:[#allocation38_spill] sm:$0xff] %v10135_v13  ;;  %v10215_v22 = vor.u32 %v7206_v12, %v7205_v54  ;;  %v7153_v12 = vld [vmem:[%s12114_s1 + $0x43] ss:$8 sm:$0xf]  ;;  %v12614_v16 = vrot.slane %v10097_v48, %v12582_v33 }
 0x463   :  { %v10059_v57 = vpop.permute.xlu0 %4631  ;;  %v10061_v35 = vpop.permute.xlu1 %3831  ;;  %v7154_v54 = vld [vmem:[%s12114_s1 + $0x43] ss:$8 sm:$0xf0] }
 0x464   :  { %12576 = vst [vmem:[#allocation59_spill] sm:$0xff] %v10059_v57  ;;  %12577 = vst [vmem:[#allocation46_spill] sm:$0xff] %v10061_v35  ;;  %v10213_v35 = vor.u32 %v7100_v2, %v7099_v62  ;;  %v7176_v62 = vld [vmem:[%s12114_s1 + $0x47] ss:$8 sm:$0xf0] }
 0x465   :  { %5133 = vrot.lane.b32.xlu0 %v9793_v44, %s12374_s24  ;;  %4061 = vrot.lane.b32.xlu1 %v9793_v44, %s7641_s25  ;;  %12594 = vst [vmem:[#allocation49_spill] sm:$0xff] %v10215_v22 }
 0x466   :  { %12593 = vst [vmem:[#allocation7_spill] sm:$0xff] %v10213_v35 }
 0x467   :  { %v10093_v20 = vpop.permute.xlu0 %4747  ;;  %v10095_v18 = vpop.permute.xlu1 %4975 }
 0x468   :  { %12578 = vst [vmem:[#allocation29_spill] sm:$0xff] %v10093_v20  ;;  %12579 = vst [vmem:[#allocation62_spill] sm:$0xff] %v10095_v18  ;;  %v7129_v20 = vld [vmem:[%s12114_s1 + $0x7] ss:$8 sm:$0xf] }
 0x469   :  { %5249 = vrot.lane.b32.xlu0 %v9793_v44, %s12371_s30  ;;  %4173 = vrot.lane.b32.xlu1 %v9793_v44, %s7639_s21  ;;  %v12583_v18 = vld [vmem:[#allocation11_spill] sm:$0xff]  ;;  %v10153_v29 = vor.u32 %v7130_v51, %v7129_v20 }
 0x46a   :  { %v7123_v20 = vld [vmem:[%s12114_s1 + $0x6] ss:$8 sm:$0xf] }
 0x46b   :  { %v10143_v10 = vpop.permute.xlu0 %4863  ;;  %v10145_v49 = vpop.permute.xlu1 %5367  ;;  %12588 = vst [vmem:[#allocation53_spill] sm:$0xff] %v10153_v29  ;;  %v7124_v51 = vld [vmem:[%s12114_s1 + $0x6] ss:$8 sm:$0xf0] }
 0x46c   :  { %12585 = vst [vmem:[#allocation51_spill] sm:$0xff] %v10143_v10  ;;  %12586 = vst [vmem:[#allocation9_spill] sm:$0xff] %v10145_v49  ;;  %v7142_v10 = vld [vmem:[%s12114_s1 + $0x41] ss:$8 sm:$0xf0]  ;;  %v10229_v2 = vor.u32 %v7124_v51, %v7123_v20  ;;  %v10245_v51 = vor.u32 %v7230_v17, %v7229_v15 }
 0x46d   :  { %3609 = vrot.lane.b32.xlu0 %v9797_v4, %s7644_s28  ;;  %4641 = vrot.lane.b32.xlu1 %v9797_v4, %s7649_s23  ;;  %v7187_v17 = vld [vmem:[%s12114_s1 + $0x81] ss:$8 sm:$0xf] }
 0x46e   :  { %v7188_v15 = vld [vmem:[%s12114_s1 + $0x81] ss:$8 sm:$0xf0] }
 0x46f   :  { %v10205_v63 = vpop.permute.xlu0 %4979  ;;  %v10207_v21 = vpop.permute.xlu1 %5135 }
 0x470   :  { %12590 = vst [vmem:[#allocation60_spill] sm:$0xff] %v10205_v63  ;;  %12591 = vst [vmem:[#allocation40_spill] sm:$0xff] %v10207_v21  ;;  %v7148_v63 = vld [vmem:[%s12114_s1 + $0x42] ss:$8 sm:$0xf0]  ;;  %v10257_v21 = vor.u32 %v7142_v10, %v7141_v25  ;;  %v10295_v25 = vor.u32 %v7188_v15, %v7187_v17 }
 0x471   :  { %4409 = vrot.lane.b32.xlu0 %v9801_v61, %s7634_s17  ;;  %4745 = vrot.lane.b32.xlu1 %v9791_v38, %s7651_s11  ;;  %v10259_v1 = vor.u32 %v7148_v63, %v7147_v45  ;;  %v10277_v63 = vor.u32 %v7154_v54, %v7153_v12  ;;  %v7199_v15 = vld [vmem:[%s12114_s1 + $0x83] ss:$8 sm:$0xf]  ;;  %v7111_v45 = vld [vmem:[%s12114_s1 + $0x4] ss:$8 sm:$0xf] }
 0x472   :  { %12595 = vst [vmem:[#allocation54_spill] sm:$0xff] %v10257_v21  ;;  %12600 = vst [vmem:[#allocation6_spill] sm:$0xff] %v10295_v25  ;;  %v7200_v54 = vld [vmem:[%s12114_s1 + $0x83] ss:$8 sm:$0xf0] }
 0x473   :  { %12596 = vst [vmem:[#allocation48_spill] sm:$0xff] %v10259_v1  ;;  %v10267_v20 = vpop.permute.xlu0 %4635  ;;  %v10269_v55 = vpop.permute.xlu1 %5251  ;;  %v10371_v10 = vor.u32 %v7200_v54, %v7199_v15 }
 0x474   :  { %12597 = vst [vmem:[#allocation61_spill] sm:$0xff] %v10267_v20  ;;  %12598 = vst [vmem:[#allocation55_spill] sm:$0xff] %v10269_v55  ;;  %v10285_v55 = vor.u32 %v7176_v62, %v7175_v43  ;;  %v7093_v20 = vld [vmem:[%s12114_s1 + $0x1] ss:$8 sm:$0xf] }
 0x475   :  { %4525 = vrot.lane.b32.xlu0 %v9801_v61, %s7636_s19  ;;  %4873 = vrot.lane.b32.xlu1 %v9797_v4, %s7650_s16  ;;  %v7094_v43 = vld [vmem:[%s12114_s1 + $0x1] ss:$8 sm:$0xf0] }
 0x476   :  { %12599 = vst [vmem:[#allocation4_spill] sm:$0xff] %v10285_v55  ;;  %v10357_v49 = vor.u32 %v7094_v43, %v7093_v20  ;;  %v7181_v20 = vld [vmem:[%s12114_s1 + $0x80] ss:$8 sm:$0xf] }
 0x477   :  { %v10317_v12 = vpop.permute.xlu0 %4751  ;;  %v10319_v62 = vpop.permute.xlu1 %4411  ;;  %v7182_v43 = vld [vmem:[%s12114_s1 + $0x80] ss:$8 sm:$0xf0] }
 0x478   :  { %12601 = vst [vmem:[#allocation11_spill] sm:$0xff] %v10317_v12  ;;  %12602 = vst [vmem:[#allocation5_spill] sm:$0xff] %v10319_v62  ;;  %v7112_v12 = vld [vmem:[%s12114_s1 + $0x4] ss:$8 sm:$0xf0]  ;;  %v10407_v54 = vor.u32 %v7182_v43, %v7181_v20  ;;  %v12613_v20 = vrot.slane %v10097_v48, %v12587_v19 }
 0x479   :  { %v7217_v62 = vld [vmem:[%s12114_s1 + $0x86] ss:$8 sm:$0xf]  ;;  %4293 = vrot.lane.b32.xlu0 %v9801_v61, %s7635_s18  ;;  %5129 = vrot.lane.b32.xlu1 %v9791_v38, %s12374_s24  ;;  %v10389_v15 = vor.u32 %v7112_v12, %v7111_v45 }
 0x47a   :  { %12605 = vst [vmem:[#allocation66_spill] sm:$0xff] %v10407_v54  ;;  %v7169_v43 = vld [vmem:[%s12114_s1 + $0x46] ss:$8 sm:$0xf] }
 0x47b   :  { %v10379_v34 = vpop.permute.xlu0 %4867  ;;  %v10381_v53 = vpop.permute.xlu1 %4527 }
 0x47c   :  { %12603 = vst [vmem:[#allocation64_spill] sm:$0xff] %v10379_v34  ;;  %12604 = vst [vmem:[#allocation65_spill] sm:$0xff] %v10381_v53  ;;  %v10395_v34 = vor.u32 %v7218_v56, %v7217_v62  ;;  %v10397_v53 = vor.u32 %v7160_v6, %v7159_v30  ;;  %v7170_v30 = vld [vmem:[%s12114_s1 + $0x46] ss:$8 sm:$0xf0]  ;;  %s12621_s1 = smov 119  }
 0x47d   :  { %3605 = vrot.lane.b32.xlu0 %v9801_v61, %s7644_s28  ;;  %4989 = vrot.lane.b32.xlu1 %v9797_v4, %s12372_s13  ;;  %s12608_s28 = smov 72  }
 0x47f   :  { %v10417_v57 = vpop.permute.xlu0 %4639  ;;  %v10419_v45 = vpop.permute.xlu1 %4295 }
 0x480   :  { %12606 = vst [vmem:[#allocation67_spill] sm:$0xff] %v10417_v57  ;;  %12607 = vst [vmem:[#allocation68_spill] sm:$0xff] %v10419_v45 }
 0x481   :  { %3717 = vrot.lane.b32.xlu0 %v9801_v61, %s12608_s28  ;;  %3837 = vrot.lane.b32.xlu1 %v9797_v4, %s12541_s4 }
 0x483   :  { %v10455_v38 = vpop.permute.xlu0 %4871  ;;  %v10457_v6 = vpop.permute.xlu1 %3607 }
 0x484   :  { %12609 = vst [vmem:[#allocation69_spill] sm:$0xff] %v10455_v38  ;;  %12610 = vst [vmem:[#allocation70_spill] sm:$0xff] %v10457_v6  ;;  %v10497_v38 = vor.u32 %v7170_v30, %v7169_v43 }
 0x485   :  { %3949 = vrot.lane.b32.xlu0 %v9801_v61, %s12611_s12  ;;  %4181 = vrot.lane.b32.xlu1 %v9797_v4, %s7639_s21 }
 0x487   :  { %v10499_v57 = vpop.permute.xlu1 %3719  ;;  %v4518_v17 = vpop.permute.xlu0 %4517 }
 0x488   :  { %12612 = vst [vmem:[#allocation71_spill] sm:$0xff] %v10499_v57  ;;  %v10512_v30 = vsel %vm1005_vm2, %v4518_v17, %v9907_v9  ;;  %v10517_v43 = vsel %vm1005_vm2, %v9899_v42, %v4518_v17 }
 0x489   :  { %v6356_v56 = vmul.f32 %v12613_v20, %v10517_v43  ;;  %v6357_v6 = vmul.f32 %v12614_v16, %v10512_v30  ;;  %4065 = vrot.lane.b32.xlu0 %v9801_v61, %s7641_s25  ;;  %4413 = vrot.lane.b32.xlu1 %v9797_v4, %s7634_s17  ;;  %v12616_v20 = vrot.slane %v10107_v24, %v12587_v19  ;;  %s12628_s17 = smov 120  }
 0x48b   :  { %v7495_v57 = vpack.c.bf16 %v6357_v6, %v6356_v56  ;;  %v10547_v17 = vpop.permute.xlu1 %3951  ;;  %v3598_v42 = vpop.permute.xlu0 %3597  ;;  %v12617_v6 = vrot.slane %v10107_v24, %v12582_v33  ;;  %v12630_v24 = vrot.slane %v10085_v46, %v12583_v18 }
 0x48c   :  { %12615 = vst [vmem:[#allocation72_spill] sm:$0xff] %v10547_v17  ;;  %v10558_v62 = vsel %vm77_vm9, %v3598_v42, %v9923_v7  ;;  %v10563_v56 = vsel %vm77_vm9, %v9915_v23, %v3598_v42  ;;  %v12619_v7 = vrot.slane %v10121_v59, %v12587_v19 }
 0x48d   :  { %v6392_v54 = vrot.slane %v7495_v57, 6  ;;  %v5628_v45 = vmul.f32 %v12616_v20, %v10563_v56  ;;  %4177 = vrot.lane.b32.xlu0 %v9801_v61, %s7639_s21  ;;  %v5629_v12 = vmul.f32 %v12617_v6, %v10558_v62  ;;  %4633 = vrot.lane.b32.xlu1 %v9793_v44, %s7649_s23 }
 0x48f   :  { %6400 = vst [vmem:[#allocation2 + $0x70] sm:$0x44] %v6392_v54  ;;  %v10591_v23 = vpop.permute.xlu1 %4067  ;;  %v3942_v42 = vpop.permute.xlu0 %3941  ;;  %v7463_v20 = vpack.c.bf16 %v5629_v12, %v5628_v45  ;;  %v12620_v45 = vrot.slane %v10121_v59, %v12582_v33 }
 0x490   :  { %12618 = vst [vmem:[#allocation73_spill] sm:$0xff] %v10591_v23  ;;  %v10604_v54 = vsel %vm423_vm3, %v3942_v42, %v9939_v58  ;;  %v10609_v16 = vsel %vm423_vm3, %v9931_v0, %v3942_v42 }
 0x491   :  { %v5900_v17 = vmul.f32 %v12619_v7, %v10609_v16  ;;  %v5901_v12 = vmul.f32 %v12620_v45, %v10604_v54  ;;  %5481 = vrot.lane.b32.xlu0 %v9801_v61, %s12621_s1  ;;  %v5664_v6 = vrot.slane %v7463_v20, 6  ;;  %4749 = vrot.lane.b32.xlu1 %v9793_v44, %s7651_s11 }
 0x493   :  { %v7475_v58 = vpack.c.bf16 %v5901_v12, %v5900_v17  ;;  %v10635_v0 = vpop.permute.xlu1 %4179  ;;  %v4170_v42 = vpop.permute.xlu0 %4169  ;;  %5672 = vst [vmem:[#allocation2 + $0x60] sm:$0x44] %v5664_v6  ;;  %v12623_v6 = vrot.slane %v10135_v13, %v12587_v19  ;;  %v12624_v12 = vrot.slane %v10135_v13, %v12582_v33  ;;  %v12714_v13 = vld [vmem:[#allocation65_spill] sm:$0xff] }
 0x494   :  { %12622 = vst [vmem:[#allocation74_spill] sm:$0xff] %v10635_v0  ;;  %v10646_v7 = vsel %vm655_vm4, %v4170_v42, %v9955_v8  ;;  %v10651_v17 = vsel %vm655_vm4, %v9947_v11, %v4170_v42  ;;  %v12626_v0 = vrot.slane %v10167_v50, %v12583_v18 }
 0x495   :  { %v5936_v45 = vrot.slane %v7475_v58, 7  ;;  %v6084_v55 = vmul.f32 %v12623_v6, %v10651_v17  ;;  %3833 = vrot.lane.b32.xlu0 %v9801_v61, %s12541_s4  ;;  %v6085_v20 = vmul.f32 %v12624_v12, %v10646_v7  ;;  %4865 = vrot.lane.b32.xlu1 %v9793_v44, %s7650_s16 }
 0x497   :  { %5944 = vst [vmem:[#allocation2 + $0xc8] sm:$0x22] %v5936_v45  ;;  %v10679_v23 = vpop.permute.xlu1 %5483  ;;  %v4406_v42 = vpop.permute.xlu0 %4405  ;;  %v7483_v6 = vpack.c.bf16 %v6085_v20, %v6084_v55  ;;  %v12627_v55 = vrot.slane %v10167_v50, %v12592_v32 }
 0x498   :  { %12625 = vst [vmem:[#allocation75_spill] sm:$0xff] %v10679_v23  ;;  %v10692_v45 = vsel %vm887_vm0, %v4406_v42, %v9963_v5  ;;  %v10697_v57 = vsel %vm887_vm0, %v9889_v31, %v4406_v42 }
 0x499   :  { %v6266_v11 = vmul.f32 %v12626_v0, %v10697_v57  ;;  %v6267_v20 = vmul.f32 %v12627_v55, %v10692_v45  ;;  %5369 = vrot.lane.b32.xlu0 %v9801_v61, %s12628_s17  ;;  %v6120_v12 = vrot.slane %v7483_v6, 5  ;;  %4069 = vrot.lane.b32.xlu1 %v9797_v4, %s7641_s25  ;;  %v12631_v55 = vrot.slane %v10085_v46, %v12592_v32 }
 0x49b   :  { %v7492_v5 = vpack.c.bf16 %v6267_v20, %v6266_v11  ;;  %v10723_v8 = vpop.permute.xlu1 %3835  ;;  %v4522_v42 = vpop.permute.xlu0 %4521  ;;  %6128 = vst [vmem:[#allocation2 + $0xc8] sm:$0x88] %v6120_v12  ;;  %v4582_v12 = vmul.f32 %v12630_v24, %v10512_v30 }
 0x49c   :  { %12629 = vst [vmem:[#allocation76_spill] sm:$0xff] %v10723_v8  ;;  %v10734_v23 = vsel %vm1005_vm2, %v4522_v42, %v9971_v28  ;;  %v4535_v11 = vsel %vm1005_vm2, %v9907_v9, %v4522_v42  ;;  %v12632_v8 = vrot.slane %v10097_v48, %v12583_v18  ;;  %v12633_v42 = vrot.slane %v10097_v48, %v12592_v32 }
 0x49d   :  { %v6301_v6 = vrot.slane %v7492_v5, 7  ;;  %v4583_v0 = vmul.f32 %v12631_v55, %v4535_v11  ;;  %5137 = vrot.lane.b32.xlu0 %v9801_v61, %s12374_s24  ;;  %4981 = vrot.lane.b32.xlu1 %v9793_v44, %s12372_s13 }
 0x49e   :  { %v6358_v9 = vmul.f32 %v12632_v8, %v4535_v11  ;;  %v6359_v58 = vmul.f32 %v12633_v42, %v10734_v23 }
 0x49f   :  { %6309 = vst [vmem:[#allocation2 + $0xa0] sm:$0x22] %v6301_v6  ;;  %v7424_v30 = vpack.c.bf16 %v4583_v0, %v4582_v12  ;;  %v10767_v55 = vpop.permute.xlu1 %5371  ;;  %v3826_v11 = vpop.permute.xlu0 %3825  ;;  %v12635_v12 = vrot.slane %v10215_v22, %v12587_v19  ;;  %v12641_v6 = vrot.slane %v10245_v51, %v12592_v32 }
 0x4a0   :  { %12634 = vst [vmem:[#allocation77_spill] sm:$0xff] %v10767_v55  ;;  %v7496_v20 = vpack.c.bf16 %v6359_v58, %v6358_v9  ;;  %v10778_v24 = vsel %vm309_vm5, %v3826_v11, %v9987_v47  ;;  %v10783_v0 = vsel %vm309_vm5, %v9979_v36, %v3826_v11  ;;  %v12636_v58 = vrot.slane %v10215_v22, %v12582_v33 }
 0x4a1   :  { %4621 = vst [vmem:[#allocation2 + $0x130] sm:$0x11] %v7424_v30  ;;  %v5812_v5 = vmul.f32 %v12635_v12, %v10783_v0  ;;  %5253 = vrot.lane.b32.xlu0 %v9801_v61, %s12371_s30  ;;  %4637 = vrot.lane.b32.xlu1 %v9801_v61, %s7649_s23  ;;  %v12643_v12 = vrot.slane %v10099_v52, %v12582_v33 }
 0x4a2   :  { %v5813_v9 = vmul.f32 %v12636_v58, %v10778_v24  ;;  %v6393_v30 = vrot.slane %v7496_v20, 6 }
 0x4a3   :  { %v10809_v8 = vpop.permute.xlu1 %5139  ;;  %v4290_v11 = vpop.permute.xlu0 %4289 }
 0x4a4   :  { %v7471_v44 = vpack.c.bf16 %v5813_v9, %v5812_v5  ;;  %12637 = vst [vmem:[#allocation78_spill] sm:$0xff] %v10809_v8  ;;  %6401 = vst [vmem:[#allocation2 + $0xa0] sm:$0x44] %v6393_v30  ;;  %v10820_v42 = vsel %vm12638_vm8, %v4290_v11, %v9995_v37  ;;  %v10825_v5 = vsel %vm12639_vm10, %v9905_v40, %v4290_v11  ;;  %vm12703_vm8 = vcmp.lt.s32.totalorder %v7874_v14, 72 }
 0x4a5   :  { %v12640_v30 = vrot.slane %v10245_v51, %v12583_v18  ;;  %v6179_v58 = vmul.f32 %v12641_v6, %v10820_v42  ;;  %5485 = vrot.lane.b32.xlu0 %v9797_v4, %s12621_s1  ;;  %4753 = vrot.lane.b32.xlu1 %v9801_v61, %s7651_s11  ;;  %v12642_v11 = vrot.slane %v10085_v46, %v12582_v33  ;;  %vm12707_vm10 = vmmov %vm12703_vm8 }
 0x4a6   :  { %5852 = vst [vmem:[#allocation2 + $0xc8] sm:$0x11] %v7471_v44  ;;  %v10865_v44 = vmul.f32 %v12643_v12, %v10563_v56  ;;  %v12660_v56 = vld [vmem:[#allocation4_spill] sm:$0xff] }
 0x4a7   :  { %v6178_v55 = vmul.f32 %v12640_v30, %v10825_v5  ;;  %v10859_v20 = vmul.f32 %v12642_v11, %v10517_v43  ;;  %v12645_v30 = vrot.slane %v10099_v52, %v12583_v18  ;;  %v10873_v9 = vpop.permute.xlu1 %5255  ;;  %v4630_v36 = vpop.permute.xlu0 %4629  ;;  %v12647_v43 = vrot.slane %v10119_v41, %v12582_v33 }
 0x4a8   :  { %12644 = vst [vmem:[#allocation79_spill] sm:$0xff] %v10865_v44  ;;  %12646 = vst [vmem:[#allocation80_spill] sm:$0xff] %v10873_v9  ;;  %v12663_v9 = vrot.slane %v10213_v35, %v12583_v18  ;;  %v12676_v28 = vrot.slane %v12660_v56, %v12582_v33  ;;  %v12685_v44 = vld [vmem:[#allocation43_spill] sm:$0xff] }
 0x4a9   :  { %v10871_v6 = vmul.f32 %v12645_v30, %v10558_v62  ;;  %v7488_v8 = vpack.c.bf16 %v6179_v58, %v6178_v55  ;;  %v10879_v11 = vmul.f32 %v12647_v43, %v10609_v16  ;;  %v12648_v55 = vrot.slane %v10119_v41, %v12583_v18  ;;  %4985 = vrot.lane.b32.xlu0 %v9801_v61, %s12372_s13 }
 0x4aa   :  { %v12649_v62 = vrot.slane %v10133_v3, %v12582_v33  ;;  %4869 = vrot.lane.b32.xlu1 %v9801_v61, %s7650_s16  ;;  %v12651_v43 = vrot.slane %v10133_v3, %v12583_v18  ;;  %v12655_v61 = vrot.slane %v10153_v29, %v12592_v32 }
 0x4ab   :  { %v10891_v58 = vmul.f32 %v12648_v55, %v10604_v54  ;;  %6217 = vst [vmem:[#allocation2 + $0xa0] sm:$0x11] %v7488_v8  ;;  %v12654_v54 = vld [vmem:[#allocation66_spill] sm:$0xff]  ;;  %v12656_v8 = vrot.slane %v10153_v29, %v8735_v27 }
 0x4ac   :  { %v10905_v12 = vmul.f32 %v12649_v62, %v10651_v17  ;;  %v10919_v30 = vmul.f32 %v12651_v43, %v10646_v7  ;;  %v10921_v17 = vpop.permute.xlu1 %4983  ;;  %v10923_v62 = vpop.permute.xlu0 %4757  ;;  %v10943_v16 = vmul.f32 %v12655_v61, %v10697_v57  ;;  %v12658_v57 = vrot.slane %v10085_v46, %v8735_v27  ;;  %v12668_v7 = vld [vmem:[#allocation59_spill] sm:$0xff]  ;;  %v12669_v43 = vld [vmem:[#allocation41_spill] sm:$0xff] }
 0x4ad   :  { %12653 = vst [vmem:[#allocation83_spill] sm:$0xff] %v10921_v17  ;;  %v10949_v55 = vmul.f32 %v12656_v8, %v10692_v45  ;;  %5257 = vrot.lane.b32.xlu0 %v9797_v4, %s12371_s30  ;;  %v6437_v45 = vld [vmem:[%s12119_s7] sm:$0xff]  ;;  %v10984_v17 = vmul.f32 %v12663_v9, %v10778_v24  ;;  %v12665_v24 = vrot.slane %v10229_v2, %v12592_v32 }
 0x4ae   :  { %12650 = vst [vmem:[#allocation81_spill] sm:$0xff] %v10905_v12  ;;  %12652 = vst [vmem:[#allocation82_spill] sm:$0xff] %v10919_v30  ;;  %v10961_v61 = vmul.f32 %v12658_v57, %v10734_v23  ;;  %5373 = vrot.lane.b32.xlu1 %v9797_v4, %s12628_s17  ;;  %v12661_v23 = vrot.slane %v10213_v35, %v12582_v33 }
 0x4af   :  { %12657 = vst [vmem:[#allocation84_spill] sm:$0xff] %v10949_v55 }
 0x4b0   :  { %12659 = vst [vmem:[#allocation85_spill] sm:$0xff] %v10961_v61  ;;  %v10978_v57 = vmul.f32 %v12661_v23, %v10783_v0  ;;  %v10986_v12 = vpop.permute.xlu1 %4755  ;;  %v10988_v8 = vpop.permute.xlu0 %4861  ;;  %v4351_v23 = vmul.f32 %v12665_v24, %v10825_v5  ;;  %v4648_v0 = vsel %vm1119_vm14, %v4630_v36, %v12668_v7  ;;  %v4649_v5 = vsel %vm1119_vm14, %v12669_v43, %v4630_v36 }
 0x4b1   :  { %12664 = vst [vmem:[#allocation87_spill] sm:$0xff] %v10986_v12  ;;  %6440 = vperm.xlu0 %7520, %v6437_v45   ;;  %v12666_v45 = vrot.slane %v10229_v2, %v8735_v27  ;;  %v12678_v43 = vrot.slane %v10257_v21, %v12582_v33 }
 0x4b2   :  { %12662 = vst [vmem:[#allocation86_spill] sm:$0xff] %v10978_v57  ;;  %v7589_v37 = vld [vmem:[#allocation2 + $0xa0] ss:$-88 sps:$4 sm:$0xff]   ;;  %v7591_v61 = vld [vmem:[#allocation2 + $0xa4] ss:$-88 sps:$4 sm:$0xff]   ;;  %5141 = vrot.lane.b32.xlu1 %v9797_v4, %s12374_s24  ;;  %v12675_v4 = vrot.slane %v12660_v56, %v12587_v19 }
 0x4b3   :  { %v11018_v9 = vmul.f32 %v12666_v45, %v10820_v42  ;;  %6656 = vmatprep.subr.bf16.mxu1 %v7591_v61  ;;  %v12670_v61 = vld [vmem:[#allocation44_spill] sm:$0xff]  ;;  %v12672_v57 = vld [vmem:[#allocation45_spill] sm:$0xff] }
 0x4b4   :  { %v5246_v24 = vpop.permute.xlu0 %5245  ;;  %v4402_v55 = vpop.permute.xlu1 %4401  ;;  %6657 = vmatpush1.bf16.msra.mxu1 %v7589_v37 }
 0x4b5   :  { %12667 = vst [vmem:[#allocation88_spill] sm:$0xff] %v11018_v9  ;;  %v5264_v45 = vsel %vm12671_vm12, %v5246_v24, %v12670_v61  ;;  %v5265_v7 = vsel %vm12673_vm13, %v12672_v57, %v5246_v24  ;;  %v4420_v36 = vsel %vm887_vm0, %v4402_v55, %v9889_v31  ;;  %v12674_v9 = vld [vmem:[#allocation25_spill] sm:$0xff]  ;;  %v12677_v24 = vrot.slane %v10153_v29, %v12583_v18  ;;  %v12684_v31 = vld [vmem:[#allocation30_spill] sm:$0xff] }
 0x4b6   :  { %v11046_v37 = vsel %vm887_vm0, %v12674_v9, %v4402_v55  ;;  %v5308_v42 = vmul.f32 %v12675_v4, %v5265_v7  ;;  %v5309_v39 = vmul.f32 %v12676_v28, %v5264_v45  ;;  %v11062_v55 = vmul.f32 %v12678_v43, %v4649_v5  ;;  %4987 = vrot.lane.b32.xlu1 %v12684_v31, %s12372_s13 }
 0x4b7   :  { %v4466_v57 = vmul.f32 %v12677_v24, %v4420_v36  ;;  %v12680_v9 = vrot.slane %v10257_v21, %v12583_v18  ;;  %v12682_v28 = vrot.slane %v10167_v50, %v12587_v19  ;;  %v12683_v45 = vrot.slane %v10167_v50, %v12582_v33  ;;  %v12686_v21 = vld [vmem:[#allocation39_spill] sm:$0xff] }
 0x4b8   :  { %12679 = vst [vmem:[#allocation44_spill] sm:$0xff] %v11062_v55  ;;  %v4766_v43 = vsel %vm1237_vm11, %v10923_v62, %v12685_v44  ;;  %v7451_v5 = vpack.c.bf16 %v5309_v39, %v5308_v42  ;;  %vm12709_vm12 = vcmp.lt.s32.totalorder %v7874_v14, 7 }
 0x4b9   :  { %v11067_v7 = vmul.f32 %v12680_v9, %v4648_v0  ;;  %v6264_v4 = vmul.f32 %v12682_v28, %v11046_v37  ;;  %v6265_v24 = vmul.f32 %v12683_v45, %v4420_v36  ;;  %v7420_v0 = vpack.c.bf16 %v10943_v16, %v4466_v57  ;;  %v5478_v9 = vpop.permute.xlu0 %5477  ;;  %v12688_v45 = vld [vmem:[#allocation31_spill] sm:$0xff]  ;;  %vm12711_vm13 = vmmov %vm12709_vm12 }
 0x4ba   :  { %v5490_v36 = vsel %vm12687_vm15, %v5478_v9, %v12686_v21  ;;  %v5491_v31 = vsel %vm12689_vm1, %v12688_v45, %v5478_v9  ;;  %v5344_v42 = vrot.slane %v7451_v5, 5  ;;  %v12691_v57 = vrot.slane %v10295_v25, %v12583_v18  ;;  %v12693_v21 = vld [vmem:[#allocation58_spill] sm:$0xff] }
 0x4bb   :  { %12681 = vst [vmem:[#allocation89_spill] sm:$0xff] %v11067_v7  ;;  %v4286_v7 = vpop.permute.xlu1 %4285  ;;  %v7491_v55 = vpack.c.bf16 %v6265_v24, %v6264_v4  ;;  %v4501_v16 = vrot.slane %v7420_v0, 5  ;;  %v12692_v4 = vrot.slane %v10295_v25, %v12592_v32  ;;  %v12695_v9 = vrot.slane %v10229_v2, %v12583_v18 }
 0x4bc   :  { %v4304_v39 = vsel %vm12690_vm7, %v4286_v7, %v9905_v40  ;;  %v5538_v44 = vmul.f32 %v12691_v57, %v5491_v31  ;;  %v4305_v50 = vsel %vm12694_vm6, %v12693_v21, %v4286_v7  ;;  %v12696_v40 = vrot.slane %v10245_v51, %v12582_v33  ;;  %5352 = vst [vmem:[#allocation2 + $0xc0] sm:$0x88] %v5344_v42 }
 0x4bd   :  { %v5539_v24 = vmul.f32 %v12692_v4, %v5490_v36  ;;  %v6300_v28 = vrot.slane %v7491_v55, 7  ;;  %v4350_v30 = vmul.f32 %v12695_v9, %v4304_v39  ;;  %v12697_v0 = vrot.slane %v10259_v1, %v12587_v19  ;;  %4509 = vst [vmem:[#allocation2 + $0xf0] sm:$0x88] %v4501_v16  ;;  %v3830_v57 = vpop.permute.xlu0 %3829  ;;  %v12702_v9 = vld [vmem:[#allocation8_spill] sm:$0xff] }
 0x4be   :  { %v6177_v5 = vmul.f32 %v12696_v40, %v4304_v39  ;;  %v12699_v36 = vrot.slane %v10245_v51, %v12587_v19  ;;  %v4759_v39 = vsel %vm1237_vm11, %v10986_v12, %v10923_v62  ;;  %v12700_v40 = vld [vmem:[#allocation46_spill] sm:$0xff]  ;;  %v3843_v42 = vsel %vm309_vm5, %v9987_v47, %v3830_v57  ;;  %v12706_v47 = vld [vmem:[#allocation27_spill] sm:$0xff] }
 0x4bf   :  { %v11112_v31 = vmul.f32 %v12697_v0, %v4766_v43  ;;  %v7460_v55 = vpack.c.bf16 %v5539_v24, %v5538_v44  ;;  %v3710_v4 = vpop.permute.xlu1 %3709  ;;  %6308 = vst [vmem:[#allocation2 + $0x70] sm:$0x22] %v6300_v28  ;;  %v7416_v43 = vpack.c.bf16 %v4351_v23, %v4350_v30  ;;  %v3842_v44 = vsel %vm309_vm5, %v3830_v57, %v12700_v40  ;;  %v12710_v57 = vld [vmem:[#allocation37_spill] sm:$0xff] }
 0x4c0   :  { %v6176_v7 = vmul.f32 %v12699_v36, %v4305_v50  ;;  %v12701_v0 = vrot.slane %v10213_v35, %v12592_v32  ;;  %v3728_v62 = vsel %vm12703_vm8, %v3710_v4, %v12702_v9  ;;  %v12704_v30 = vrot.slane %v10215_v22, %v12583_v18 }
 0x4c1   :  { %12698 = vst [vmem:[#allocation30_spill] sm:$0xff] %v11112_v31  ;;  %v5573_v16 = vrot.slane %v7460_v55, 7  ;;  %v4385_v28 = vrot.slane %v7416_v43, 6  ;;  %v12705_v12 = vrot.slane %v10215_v22, %v12592_v32  ;;  %v12708_v55 = vld [vmem:[#allocation51_spill] sm:$0xff]  ;;  %v4881_v43 = vsel %vm12711_vm13, %v12710_v57, %v10988_v8 }
 0x4c2   :  { %v7487_v24 = vpack.c.bf16 %v6177_v5, %v6176_v7  ;;  %v3891_v36 = vmul.f32 %v12701_v0, %v3843_v42  ;;  %v5814_v23 = vmul.f32 %v12704_v30, %v3843_v42  ;;  %v3729_v5 = vsel %vm12707_vm10, %v12706_v47, %v3710_v4  ;;  %v4530_v30 = vpop.permute.xlu0 %4529 }
 0x4c3   :  { %v5815_v40 = vmul.f32 %v12705_v12, %v3842_v44  ;;  %v4880_v7 = vsel %vm12709_vm12, %v10988_v8, %v12708_v55  ;;  %5581 = vst [vmem:[#allocation2 + $0x188] sm:$0x22] %v5573_v16  ;;  %v12712_v12 = vrot.slane %v10371_v10, %v12587_v19  ;;  %v4058_v4 = vpop.permute.xlu1 %4057  ;;  %4393 = vst [vmem:[#allocation2 + $0xf0] sm:$0x44] %v4385_v28  ;;  %v12715_v16 = vld [vmem:[#allocation52_spill] sm:$0xff]  ;;  %vm12722_vm15 = vcmp.lt.s32.totalorder %v7874_v14, 64 }
 0x4c4   :  { %6216 = vst [vmem:[#allocation2 + $0x70] sm:$0x11] %v7487_v24  ;;  %v7400_v42 = vpack.c.bf16 %v3891_v36, %v10984_v17  ;;  %v12713_v55 = vrot.slane %v10371_v10, %v12582_v33  ;;  %v4531_v8 = vsel %vm1005_vm2, %v12714_v13, %v4530_v30  ;;  %v4538_v17 = vsel %vm1005_vm2, %v4530_v30, %v12715_v16  ;;  %v12721_v16 = vld [vmem:[#allocation36_spill] sm:$0xff]  ;;  %vm12724_vm1 = vmmov %vm12722_vm15 }
 0x4c5   :  { %v5720_v0 = vmul.f32 %v12712_v12, %v3729_v5  ;;  %v7472_v22 = vpack.c.bf16 %v5815_v40, %v5814_v23  ;;  %v12716_v24 = vrot.slane %v10259_v1, %v8758_v60  ;;  %v12718_v40 = vrot.slane %v10085_v46, %v12587_v19 }
 0x4c6   :  { %v5721_v31 = vmul.f32 %v12713_v55, %v3728_v62  ;;  %v3925_v12 = vrot.slane %v7400_v42, 6  ;;  %v12719_v23 = vrot.slane %v10097_v48, %v12401_v26  ;;  %v12720_v13 = vrot.slane %v10097_v48, %v8758_v60 }
 0x4c7   :  { %v11168_v36 = vmul.f32 %v12716_v24, %v4759_v39  ;;  %v4580_v28 = vmul.f32 %v12718_v40, %v4538_v17  ;;  %5853 = vst [vmem:[#allocation2 + $0xd8] sm:$0x11] %v7472_v22  ;;  %v4076_v39 = vsel %vm12722_vm15, %v4058_v4, %v12721_v16  ;;  %v12723_v24 = vld [vmem:[#allocation32_spill] sm:$0xff]  ;;  %v12725_v40 = vrot.slane %v10277_v63, %v12582_v33  ;;  %v5474_v48 = vpop.permute.xlu1 %5473 }
 0x4c8   :  { %v6362_v55 = vmul.f32 %v12719_v23, %v4531_v8  ;;  %v7467_v57 = vpack.c.bf16 %v5721_v31, %v5720_v0  ;;  %v6363_v30 = vmul.f32 %v12720_v13, %v4538_v17  ;;  %v4077_v42 = vsel %vm12724_vm1, %v12723_v24, %v4058_v4  ;;  %3933 = vst [vmem:[#allocation2 + $0x148] sm:$0x44] %v3925_v12  ;;  %v4978_v23 = vpop.permute.xlu0 %4977 }
 0x4c9   :  { %12717 = vst [vmem:[#allocation31_spill] sm:$0xff] %v11168_v36  ;;  %v11188_v36 = vmul.f32 %v12725_v40, %v4881_v43  ;;  %v12726_v22 = vrot.slane %v10277_v63, %v12583_v18  ;;  %v7423_v13 = vpack.c.bf16 %v10859_v20, %v4580_v28  ;;  %v12728_v0 = vrot.slane %v10395_v34, %v12587_v19 }
 0x4ca   :  { %v12729_v4 = vrot.slane %v10153_v29, %v12582_v33  ;;  %v5756_v40 = vrot.slane %v7467_v57, 5  ;;  %v7498_v24 = vpack.c.bf16 %v6363_v30, %v6362_v55  ;;  %v12732_v20 = vrot.slane %v10229_v2, %v12582_v33  ;;  %v12736_v57 = vld [vmem:[#allocation20_spill] sm:$0xff] }
 0x4cb   :  { %v11193_v31 = vmul.f32 %v12726_v22, %v4880_v7  ;;  %v5992_v17 = vmul.f32 %v12728_v0, %v4077_v42  ;;  %v12731_v7 = vrot.slane %v10395_v34, %v12582_v33  ;;  %v12733_v22 = vrot.slane %v10213_v35, %v8735_v27  ;;  %4620 = vst [vmem:[#allocation2 + $0x100] sm:$0x11] %v7423_v13  ;;  %v7592_v13 = vld [vmem:[#allocation2 + $0x70] ss:$304 sps:$4 sm:$0xff]  }
 0x4cc   :  { %v11203_v43 = vmul.f32 %v12729_v4, %v11046_v37  ;;  %v11211_v28 = vmul.f32 %v12732_v20, %v4305_v50  ;;  %vm12735_vm7 = vcmp.lt.s32.totalorder %v7874_v14, 119  ;;  %v12738_v30 = vrot.slane %v10357_v49, %v12582_v33  ;;  %5764 = vst [vmem:[#allocation2 + $0x60] sm:$0x88] %v5756_v40 }
 0x4cd   :  { %12727 = vst [vmem:[#allocation58_spill] sm:$0xff] %v11193_v31  ;;  %v5993_v12 = vmul.f32 %v12731_v7, %v4076_v39  ;;  %v11216_v0 = vmul.f32 %v12733_v22, %v3842_v44  ;;  %v5492_v37 = vsel %vm12735_vm7, %v5474_v48, %v12688_v45  ;;  %vm12737_vm6 = vmmov %vm12735_vm7  ;;  %v6395_v50 = vrot.slane %v7498_v24, 6  ;;  %v7594_v22 = vld [vmem:[#allocation2 + $0x74] ss:$304 sps:$4 sm:$0xff]  }
 0x4ce   :  { %12730 = vst [vmem:[#allocation8_spill] sm:$0xff] %v11203_v43  ;;  %v5493_v55 = vsel %vm12737_vm6, %v12736_v57, %v5474_v48  ;;  %v3773_v4 = vmul.f32 %v12738_v30, %v3729_v5  ;;  %v12739_v44 = vrot.slane %v10295_v25, %v12587_v19  ;;  %v12740_v45 = vrot.slane %v10357_v49, %v12583_v18  ;;  %v12742_v5 = vld [vmem:[#allocation60_spill] sm:$0xff]  ;;  %v12780_v43 = vld [vmem:[#allocation34_spill] sm:$0xff] }
 0x4cf   :  { %12734 = vst [vmem:[#allocation27_spill] sm:$0xff] %v11216_v0  ;;  %v7479_v7 = vpack.c.bf16 %v5993_v12, %v5992_v17  ;;  %v12741_v48 = vrot.slane %v10085_v46, %v8758_v60  ;;  %vm12743_vm8 = vcmp.lt.s32.totalorder %v7874_v14, 1  ;;  %v12744_v17 = vrot.slane %v10295_v25, %v12582_v33  ;;  %v5366_v12 = vpop.permute.xlu0 %5365  ;;  %6403 = vst [vmem:[#allocation2 + $0xa8] sm:$0x44] %v6395_v50  ;;  %v12752_v0 = vld [vmem:[#allocation42_spill] sm:$0xff]  ;;  %v12779_v25 = vld [vmem:[#allocation72_spill] sm:$0xff] }
 0x4d0   :  { %v5536_v20 = vmul.f32 %v12739_v44, %v5493_v55  ;;  %v11233_v31 = vmul.f32 %v12740_v45, %v3728_v62  ;;  %v4996_v24 = vsel %vm12743_vm8, %v4978_v23, %v12742_v5  ;;  %v5362_v55 = vpop.permute.xlu1 %5361  ;;  %v12745_v44 = vld [vmem:[#allocation9_spill] sm:$0xff]  ;;  %vm12746_vm10 = vcmp.lt.s32.totalorder %v7874_v14, 120  ;;  %v12747_v45 = vld [vmem:[#allocation18_spill] sm:$0xff]  ;;  %6615 = vmatprep.subr.bf16.mxu0 %v7594_v22  ;;  %vm12757_vm1 = vmmov %vm12743_vm8 }
 0x4d1   :  { %v11238_v57 = vmul.f32 %v12741_v48, %v4531_v8  ;;  %v5537_v40 = vmul.f32 %v12744_v17, %v5492_v37  ;;  %v6028_v30 = vrot.slane %v7479_v7, 6  ;;  %v5378_v62 = vsel %vm12746_vm10, %v5366_v12, %v12745_v44  ;;  %vm12748_vm12 = vmmov %vm12746_vm10  ;;  %6616 = vmatpush1.bf16.msra.mxu0 %v7592_v13 }
 0x4d2   :  { %v5379_v8 = vsel %vm12748_vm12, %v12747_v45, %v5366_v12  ;;  %vm12749_vm13 = vmmov %vm12746_vm10  ;;  %v12750_v37 = vrot.slane %v12654_v54, %v12583_v18  ;;  %v12751_v50 = vrot.slane %v12654_v54, %v12592_v32  ;;  %v12754_v22 = vrot.slane %v10389_v15, %v12582_v33 }
 0x4d3   :  { %v5380_v48 = vsel %vm12749_vm13, %v5362_v55, %v12747_v45  ;;  %v7459_v5 = vpack.c.bf16 %v5537_v40, %v5536_v20  ;;  %vm12753_vm15 = vmmov %vm12746_vm10  ;;  %6036 = vst [vmem:[#allocation2 + $0xc8] sm:$0x44] %v6028_v30  ;;  %v12756_v20 = vld [vmem:[#allocation62_spill] sm:$0xff]  ;;  %v12758_v45 = vrot.slane %v12654_v54, %v12587_v19  ;;  %v12760_v13 = vrot.slane %v10389_v15, %v12583_v18 }
 0x4d4   :  { %v5426_v17 = vmul.f32 %v12750_v37, %v5379_v8  ;;  %v5427_v7 = vmul.f32 %v12751_v50, %v5378_v62  ;;  %v5381_v44 = vsel %vm12753_vm15, %v12752_v0, %v5362_v55  ;;  %v11267_v12 = vmul.f32 %v12754_v22, %v4077_v42  ;;  %v3722_v22 = vpop.permute.xlu0 %3721  ;;  %v3602_v0 = vpop.permute.xlu1 %3601 }
 0x4d5   :  { %v4997_v40 = vsel %vm12757_vm1, %v12756_v20, %v4978_v23  ;;  %v5424_v8 = vmul.f32 %v12758_v45, %v5381_v44  ;;  %v12759_v62 = vrot.slane %v12654_v54, %v12582_v33  ;;  %v11281_v55 = vmul.f32 %v12760_v13, %v4076_v39  ;;  %v12763_v44 = vld [vmem:[#allocation71_spill] sm:$0xff]  ;;  %v12766_v39 = vld [vmem:[#allocation24_spill] sm:$0xff] }
 0x4d6   :  { %12755 = vst [vmem:[#allocation52_spill] sm:$0xff] %v11267_v12  ;;  %v12761_v42 = vrot.slane %v10397_v53, %v12583_v18  ;;  %v5572_v50 = vrot.slane %v7459_v5, 7  ;;  %v7456_v23 = vpack.c.bf16 %v5427_v7, %v5426_v17  ;;  %vm12764_vm7 = vcmp.lt.s32.totalorder %v7874_v14, 72 }
 0x4d7   :  { %v5425_v37 = vmul.f32 %v12759_v62, %v5380_v48  ;;  %v3723_v45 = vsel %vm12764_vm7, %v12763_v44, %v3722_v22  ;;  %vm12765_vm6 = vmmov %vm12764_vm7  ;;  %v3614_v62 = vsel %vm77_vm9, %v3602_v0, %v12766_v39  ;;  %v12768_v17 = vrot.slane %v10357_v49, %v12587_v19 }
 0x4d8   :  { %v11286_v30 = vmul.f32 %v12761_v42, %v4996_v24  ;;  %v3730_v48 = vsel %vm12765_vm6, %v3722_v22, %v12706_v47  ;;  %v12767_v24 = vrot.slane %v10397_v53, %v12582_v33  ;;  %5580 = vst [vmem:[#allocation2 + $0x60] sm:$0x22] %v5572_v50  ;;  %5465 = vst [vmem:[#allocation2 + $0x188] sm:$0x11] %v7456_v23  ;;  %v12773_v50 = vld [vmem:[#allocation17_spill] sm:$0xff]  ;;  %vm12795_vm12 = vcmp.lt.s32.totalorder %v7874_v14, 57 }
 0x4d9   :  { %v7455_v12 = vpack.c.bf16 %v5425_v37, %v5424_v8  ;;  %v3772_v7 = vmul.f32 %v12768_v17, %v3730_v48  ;;  %v12769_v8 = vrot.slane %v10371_v10, %v12401_v26  ;;  %v12770_v47 = vrot.slane %v10371_v10, %v8758_v60  ;;  %v12775_v17 = vld [vmem:[#allocation63_spill] sm:$0xff]  ;;  %vm12782_vm8 = vmmov %vm12765_vm6 }
 0x4da   :  { %12762 = vst [vmem:[#allocation36_spill] sm:$0xff] %v11286_v30  ;;  %v11300_v5 = vmul.f32 %v12767_v24, %v4997_v40  ;;  %v12771_v42 = vrot.slane %v10357_v49, %v8758_v60  ;;  %v3615_v23 = vsel %vm77_vm9, %v12773_v50, %v3602_v0  ;;  %v12774_v22 = vrot.slane %v10099_v52, %v8735_v27  ;;  %v3954_v0 = vpop.permute.xlu0 %3953  ;;  %v3714_v50 = vpop.permute.xlu1 %3713  ;;  %vm12783_vm10 = vmmov %vm12765_vm6 }
 0x4db   :  { %v5726_v37 = vmul.f32 %v12769_v8, %v3723_v45  ;;  %v5727_v13 = vmul.f32 %v12770_v47, %v3730_v48  ;;  %5464 = vst [vmem:[#allocation2 + $0x60] sm:$0x11] %v7455_v12  ;;  %v12776_v8 = vrot.slane %v12775_v17, %v12592_v32  ;;  %v7395_v48 = vpack.c.bf16 %v3773_v4, %v3772_v7  ;;  %v12781_v4 = vld [vmem:[#allocation33_spill] sm:$0xff]  ;;  %vm12796_vm13 = vmmov %vm12795_vm12 }
 0x4dc   :  { %v11314_v40 = vmul.f32 %v12771_v42, %v3723_v45  ;;  %v11322_v24 = vmul.f32 %v12774_v22, %v3614_v62  ;;  %v12777_v47 = vrot.slane %v10099_v52, %v12592_v32  ;;  %v12778_v42 = vrot.slane %v12775_v17, %v12583_v18 }
 0x4dd   :  { %v5631_v30 = vmul.f32 %v12776_v8, %v3614_v62  ;;  %v7470_v12 = vpack.c.bf16 %v5727_v13, %v5726_v37  ;;  %v3955_v22 = vsel %vm423_vm3, %v12779_v25, %v3954_v0  ;;  %v3962_v62 = vsel %vm423_vm3, %v3954_v0, %v12780_v43 }
 0x4de   :  { %12772 = vst [vmem:[#allocation18_spill] sm:$0xff] %v11314_v40  ;;  %v3663_v45 = vmul.f32 %v12777_v47, %v3615_v23  ;;  %v5630_v54 = vmul.f32 %v12778_v42, %v3615_v23  ;;  %v3726_v7 = vsel %vm12782_vm8, %v3714_v50, %v12781_v4  ;;  %v3727_v37 = vsel %vm12783_vm10, %v12702_v9, %v3714_v50 }
 0x4df   :  { %v3808_v13 = vrot.slane %v7395_v48, 7  ;;  %v5759_v23 = vrot.slane %v7470_v12, 5  ;;  %v12784_v42 = vrot.slane %v10119_v41, %v12587_v19  ;;  %v12785_v43 = vrot.slane %v10119_v41, %v8758_v60 }
 0x4e0   :  { %v7392_v8 = vpack.c.bf16 %v3663_v45, %v10871_v6  ;;  %v7464_v47 = vpack.c.bf16 %v5631_v30, %v5630_v54  ;;  %v12787_v35 = vrot.slane %v10121_v59, %v12401_v26  ;;  %v12788_v9 = vrot.slane %v10121_v59, %v8758_v60 }
 0x4e1   :  { %v4004_v25 = vmul.f32 %v12784_v42, %v3962_v62  ;;  %v11352_v0 = vmul.f32 %v12785_v43, %v3955_v22  ;;  %3816 = vst [vmem:[#allocation2 + $0x30] sm:$0x22] %v3808_v13  ;;  %5767 = vst [vmem:[#allocation2 + $0x8] sm:$0x88] %v5759_v23  ;;  %v12789_v54 = vrot.slane %v10357_v49, %v12592_v32  ;;  %v3946_v42 = vpop.permute.xlu1 %3945  ;;  %vm12808_vm15 = vcmp.lt.s32.totalorder %v7874_v14, 127 }
 0x4e2   :  { %v5906_v40 = vmul.f32 %v12787_v35, %v3955_v22  ;;  %v5907_v48 = vmul.f32 %v12788_v9, %v3962_v62  ;;  %3701 = vst [vmem:[#allocation2 + $0x148] sm:$0x11] %v7392_v8  ;;  %v5665_v6 = vrot.slane %v7464_v47, 6  ;;  %v12790_v12 = vrot.slane %v10357_v49, %v8735_v27  ;;  %v4298_v22 = vpop.permute.xlu0 %4297  ;;  %v12794_v47 = vld [vmem:[#allocation68_spill] sm:$0xff]  ;;  %vm12810_vm1 = vmmov %vm12808_vm15 }
 0x4e3   :  { %12786 = vst [vmem:[#allocation62_spill] sm:$0xff] %v11352_v0  ;;  %v3775_v30 = vmul.f32 %v12789_v54, %v3727_v37  ;;  %v12792_v35 = vrot.slane %v10371_v10, %v12583_v18  ;;  %v7403_v62 = vpack.c.bf16 %v10879_v11, %v4004_v25  ;;  %v12793_v23 = vrot.slane %v10371_v10, %v12592_v32 }
 0x4e4   :  { %v11366_v45 = vmul.f32 %v12790_v12, %v3726_v7  ;;  %v7478_v13 = vpack.c.bf16 %v5907_v48, %v5906_v40  ;;  %v4299_v43 = vsel %vm12795_vm12, %v12794_v47, %v4298_v22  ;;  %5673 = vst [vmem:[#allocation2 + $0x188] sm:$0x44] %v5665_v6  ;;  %v12797_v54 = vrot.slane %v10229_v2, %v8758_v60  ;;  %v7597_v48 = vld [vmem:[#allocation2 + $0x64] ss:$104 sps:$4 sm:$0xff]  }
 0x4e5   :  { %v5722_v50 = vmul.f32 %v12792_v35, %v3727_v37  ;;  %v5723_v8 = vmul.f32 %v12793_v23, %v3726_v7  ;;  %v7396_v9 = vpack.c.bf16 %v3775_v30, %v11233_v31  ;;  %v4306_v37 = vsel %vm12796_vm13, %v4298_v22, %v12693_v21  ;;  %v7595_v7 = vld [vmem:[#allocation2 + $0x60] ss:$104 sps:$4 sm:$0xff]   ;;  %6617 = vmatprep.subr.bf16.mxu0 %v7597_v48 }
 0x4e6   :  { %12791 = vst [vmem:[#allocation71_spill] sm:$0xff] %v11366_v45  ;;  %v11385_v25 = vmul.f32 %v12797_v54, %v4299_v43  ;;  %v12798_v11 = vrot.slane %v10245_v51, %v12401_v26  ;;  %v4040_v12 = vrot.slane %v7403_v62, 5  ;;  %v5939_v35 = vrot.slane %v7478_v13, 7  ;;  %v12801_v54 = vld [vmem:[#allocation19_spill] sm:$0xff]  ;;  %v12802_v45 = vld [vmem:[#allocation10_spill] sm:$0xff]  ;;  %v5134_v62 = vpop.permute.xlu0 %5133  ;;  %6618 = vmatpush1.bf16.msra.mxu0 %v7595_v7 }
 0x4e7   :  { %v7468_v6 = vpack.c.bf16 %v5723_v8, %v5722_v50  ;;  %v12799_v31 = vrot.slane %v10229_v2, %v12587_v19  ;;  %v3809_v23 = vrot.slane %v7396_v9, 7  ;;  %v12800_v21 = vrot.slane %v10245_v51, %v8758_v60  ;;  %v4062_v50 = vpop.permute.xlu1 %4061 }
 0x4e8   :  { %v6182_v40 = vmul.f32 %v12798_v11, %v4299_v43  ;;  %v3958_v0 = vsel %vm423_vm3, %v3946_v42, %v12801_v54  ;;  %v3959_v43 = vsel %vm423_vm3, %v12802_v45, %v3946_v42  ;;  %4048 = vst [vmem:[#allocation2 + $0x30] sm:$0x88] %v4040_v12  ;;  %5947 = vst [vmem:[#allocation2 + $0x98] sm:$0x22] %v5939_v35  ;;  %v12807_v35 = vld [vmem:[#allocation40_spill] sm:$0xff]  ;;  %vm12814_vm7 = vcmp.lt.s32.totalorder %v7874_v14, 64 }
 0x4e9   :  { %v4348_v30 = vmul.f32 %v12799_v31, %v4306_v37  ;;  %v6183_v22 = vmul.f32 %v12800_v21, %v4306_v37  ;;  %v5757_v13 = vrot.slane %v7468_v6, 5  ;;  %v12803_v9 = vrot.slane %v10119_v41, %v12592_v32  ;;  %3817 = vst [vmem:[#allocation2 + $0x148] sm:$0x22] %v3809_v23  ;;  %vm12815_vm6 = vmmov %vm12814_vm7 }
 0x4ea   :  { %v12804_v11 = vrot.slane %v10119_v41, %v8735_v27  ;;  %v12805_v42 = vrot.slane %v10121_v59, %v12583_v18  ;;  %v12806_v12 = vrot.slane %v10121_v59, %v12592_v32  ;;  %v5146_v6 = vsel %vm12808_vm15, %v5134_v62, %v12807_v35  ;;  %vm12880_vm15 = vmmov %vm12796_vm13 }
 0x4eb   :  { %v7415_v8 = vpack.c.bf16 %v11211_v28, %v4348_v30  ;;  %v4007_v37 = vmul.f32 %v12803_v9, %v3959_v43  ;;  %v7490_v45 = vpack.c.bf16 %v6183_v22, %v6182_v40  ;;  %5765 = vst [vmem:[#allocation2 + $0x188] sm:$0x88] %v5757_v13  ;;  %v12809_v9 = vld [vmem:[#allocation50_spill] sm:$0xff]  ;;  %v12811_v7 = vrot.slane %v10497_v38, %v12592_v32 }
 0x4ec   :  { %v11409_v31 = vmul.f32 %v12804_v11, %v3958_v0  ;;  %v5902_v48 = vmul.f32 %v12805_v42, %v3959_v43  ;;  %v5903_v28 = vmul.f32 %v12806_v12, %v3958_v0  ;;  %v5147_v40 = vsel %vm12810_vm1, %v12809_v9, %v5134_v62  ;;  %v12813_v11 = vld [vmem:[#allocation14_spill] sm:$0xff]  ;;  %v4174_v62 = vpop.permute.xlu1 %4173 }
 0x4ed   :  { %v4384_v30 = vrot.slane %v7415_v8, 6  ;;  %v7404_v21 = vpack.c.bf16 %v4007_v37, %v10891_v58  ;;  %v5195_v23 = vmul.f32 %v12811_v7, %v5146_v6  ;;  %6219 = vst [vmem:[#allocation2 + $0xa8] sm:$0x11] %v7490_v45  ;;  %v12812_v0 = vrot.slane %v10497_v38, %v12583_v18  ;;  %v5250_v8 = vpop.permute.xlu0 %5249 }
 0x4ee   :  { %v7476_v22 = vpack.c.bf16 %v5903_v28, %v5902_v48  ;;  %v4074_v13 = vsel %vm12814_vm7, %v4062_v50, %v12813_v11  ;;  %v4075_v58 = vsel %vm12815_vm6, %v12721_v16, %v4062_v50  ;;  %v12816_v45 = vrot.slane %v10389_v15, %v12592_v32  ;;  %vm12886_vm7 = vmmov %vm12810_vm1 }
 0x4ef   :  { %v5194_v43 = vmul.f32 %v12812_v0, %v5147_v40  ;;  %4392 = vst [vmem:[#allocation2 + $0x160] sm:$0x44] %v4384_v30  ;;  %v4041_v37 = vrot.slane %v7404_v21, 5  ;;  %v12817_v48 = vrot.slane %v10389_v15, %v8735_v27  ;;  %v12819_v28 = vrot.slane %v10395_v34, %v12583_v18  ;;  %v12821_v30 = vld [vmem:[#allocation55_spill] sm:$0xff] }
 0x4f0   :  { %v4123_v42 = vmul.f32 %v12816_v45, %v4075_v58  ;;  %v5937_v40 = vrot.slane %v7476_v22, 7  ;;  %v12820_v16 = vrot.slane %v10395_v34, %v12592_v32  ;;  %vm12822_vm8 = vcmp.lt.s32.totalorder %v7874_v14, 121 }
 0x4f1   :  { %v11442_v12 = vmul.f32 %v12817_v48, %v4074_v13  ;;  %v5994_v6 = vmul.f32 %v12819_v28, %v4075_v58  ;;  %v7448_v7 = vpack.c.bf16 %v5195_v23, %v5194_v43  ;;  %v5262_v21 = vsel %vm12822_vm8, %v5250_v8, %v12821_v30  ;;  %4049 = vst [vmem:[#allocation2 + $0x148] sm:$0x88] %v4041_v37  ;;  %vm12823_vm10 = vmmov %vm12822_vm8  ;;  %v12825_v23 = vld [vmem:[#allocation13_spill] sm:$0xff]  ;;  %v12836_v30 = vld [vmem:[#allocation82_spill] sm:$0xff] }
 0x4f2   :  { %v5995_v50 = vmul.f32 %v12820_v16, %v4074_v13  ;;  %v7408_v0 = vpack.c.bf16 %v4123_v42, %v11281_v55  ;;  %v5263_v45 = vsel %vm12823_vm10, %v12670_v61, %v5250_v8  ;;  %v12824_v58 = vrot.slane %v12660_v56, %v12592_v32  ;;  %5945 = vst [vmem:[#allocation2 + $0xd8] sm:$0x22] %v5937_v40  ;;  %v12827_v55 = vld [vmem:[#allocation28_spill] sm:$0xff]  ;;  %v3610_v61 = vpop.permute.xlu0 %3609  ;;  %v4642_v8 = vpop.permute.xlu1 %4641 }
 0x4f3   :  { %12818 = vst [vmem:[#allocation24_spill] sm:$0xff] %v11442_v12  ;;  %v4186_v43 = vsel %vm655_vm4, %v4174_v62, %v12825_v23  ;;  %v5229_v13 = vrot.slane %v7448_v7, 6  ;;  %v12826_v37 = vrot.slane %v12660_v56, %v12583_v18  ;;  %v4187_v42 = vsel %vm655_vm4, %v12827_v55, %v4174_v62  ;;  %v12834_v55 = vld [vmem:[#allocation70_spill] sm:$0xff]  ;;  %v12835_v56 = vld [vmem:[#allocation56_spill] sm:$0xff]  ;;  %v12848_v12 = vld [vmem:[#allocation5_spill] sm:$0xff] }
 0x4f4   :  { %v5311_v22 = vmul.f32 %v12824_v58, %v5262_v21  ;;  %v7480_v48 = vpack.c.bf16 %v5995_v50, %v5994_v6  ;;  %4161 = vst [vmem:[#allocation2 + $0xf0] sm:$0x11] %v7408_v0  ;;  %v12828_v16 = vrot.slane %v10133_v3, %v12592_v32  ;;  %v12829_v40 = vrot.slane %v10133_v3, %v8735_v27  ;;  %v12831_v6 = vld [vmem:[#allocation38_spill] sm:$0xff] }
 0x4f5   :  { %v5310_v28 = vmul.f32 %v12826_v37, %v5263_v45  ;;  %v12832_v50 = vrot.slane %v12831_v6, %v12583_v18  ;;  %v12833_v58 = vrot.slane %v12831_v6, %v12592_v32  ;;  %5237 = vst [vmem:[#allocation2 + $0x168] sm:$0x44] %v5229_v13  ;;  %vm12895_vm6 = vcmp.lt.s32.totalorder %v7874_v14, 72 }
 0x4f6   :  { %v4235_v21 = vmul.f32 %v12828_v16, %v4187_v42  ;;  %v11475_v7 = vmul.f32 %v12829_v40, %v4186_v43  ;;  %v6029_v37 = vrot.slane %v7480_v48, 6  ;;  %v3611_v16 = vsel %vm77_vm9, %v12834_v55, %v3610_v61  ;;  %vm12896_vm8 = vmmov %vm12895_vm6 }
 0x4f7   :  { %v6086_v45 = vmul.f32 %v12832_v50, %v4187_v42  ;;  %v6087_v62 = vmul.f32 %v12833_v58, %v4186_v43  ;;  %v7452_v0 = vpack.c.bf16 %v5311_v22, %v5310_v28  ;;  %v3618_v40 = vsel %vm77_vm9, %v3610_v61, %v12835_v56  ;;  %v12841_v61 = vld [vmem:[#allocation67_spill] sm:$0xff]  ;;  %v4746_v58 = vpop.permute.xlu1 %4745 }
 0x4f8   :  { %12830 = vst [vmem:[#allocation17_spill] sm:$0xff] %v11475_v7  ;;  %v7412_v35 = vpack.c.bf16 %v4235_v21, %v12836_v30  ;;  %v12837_v42 = vrot.slane %v10099_v52, %v12587_v19  ;;  %v12838_v43 = vrot.slane %v10099_v52, %v8758_v60  ;;  %6037 = vst [vmem:[#allocation2 + $0xd8] sm:$0x44] %v6029_v37  ;;  %v12843_v37 = vld [vmem:[#allocation41_spill] sm:$0xff] }
 0x4f9   :  { %v7484_v7 = vpack.c.bf16 %v6087_v62, %v6086_v45  ;;  %v5345_v22 = vrot.slane %v7452_v0, 5  ;;  %v12839_v48 = vrot.slane %v12775_v17, %v12401_v26  ;;  %v12840_v56 = vrot.slane %v12775_v17, %v8758_v60  ;;  %v4410_v45 = vpop.permute.xlu0 %4409 }
 0x4fa   :  { %v3660_v50 = vmul.f32 %v12837_v42, %v3618_v40  ;;  %v11496_v13 = vmul.f32 %v12838_v43, %v3611_v16  ;;  %v4643_v21 = vsel %vm1119_vm14, %v12841_v61, %v4642_v8  ;;  %v4269_v62 = vrot.slane %v7412_v35, 7  ;;  %v12842_v43 = vld [vmem:[#allocation79_spill] sm:$0xff] }
 0x4fb   :  { %v5634_v28 = vmul.f32 %v12839_v48, %v3611_v16  ;;  %v5635_v30 = vmul.f32 %v12840_v56, %v3618_v40  ;;  %v6121_v42 = vrot.slane %v7484_v7, 5  ;;  %v4650_v0 = vsel %vm1119_vm14, %v4642_v8, %v12843_v37  ;;  %5353 = vst [vmem:[#allocation2 + $0x168] sm:$0x88] %v5345_v22  ;;  %v12844_v48 = vld [vmem:[#allocation54_spill] sm:$0xff]  ;;  %v12849_v7 = vld [vmem:[#allocation16_spill] sm:$0xff] }
 0x4fc   :  { %v7391_v32 = vpack.c.bf16 %v12842_v43, %v3660_v50  ;;  %v12845_v23 = vrot.slane %v12844_v48, %v12587_v19  ;;  %v12846_v56 = vrot.slane %v12844_v48, %v8758_v60  ;;  %v4416_v35 = vsel %vm887_vm0, %v4410_v45, %v12848_v12  ;;  %4277 = vst [vmem:[#allocation2 + $0xf0] sm:$0x22] %v4269_v62  ;;  %v12852_v22 = vld [vmem:[#allocation22_spill] sm:$0xff]  ;;  %v12855_v43 = vld [vmem:[#allocation29_spill] sm:$0xff]  ;;  %v12859_v48 = vld [vmem:[#allocation43_spill] sm:$0xff] }
 0x4fd   :  { %v7466_v16 = vpack.c.bf16 %v5635_v30, %v5634_v28  ;;  %6129 = vst [vmem:[#allocation2 + $0xd8] sm:$0x88] %v6121_v42  ;;  %v4417_v8 = vsel %vm887_vm0, %v12849_v7, %v4410_v45  ;;  %v12850_v50 = vrot.slane %v10153_v29, %v12401_v26  ;;  %v12853_v28 = vld [vmem:[#allocation57_spill] sm:$0xff]  ;;  %v4764_v37 = vsel %vm1237_vm11, %v4746_v58, %v12855_v43  ;;  %v12856_v42 = vld [vmem:[#allocation44_spill] sm:$0xff] }
 0x4fe   :  { %v4692_v40 = vmul.f32 %v12845_v23, %v4650_v0  ;;  %v11517_v61 = vmul.f32 %v12846_v56, %v4643_v21  ;;  %3700 = vst [vmem:[#allocation2 + $0x30] sm:$0x11] %v7391_v32  ;;  %v12854_v30 = vrot.slane %v12852_v22, %v12853_v28  ;;  %v12857_v0 = vrot.slane %v10153_v29, %v12853_v28 }
 0x4ff   :  { %v11528_v23 = vmul.f32 %v12850_v50, %v4416_v35  ;;  %v5667_v62 = vrot.slane %v7466_v16, 6  ;;  %v12858_v56 = vrot.slane %v12852_v22, %v8735_v27  ;;  %v4526_v50 = vpop.permute.xlu0 %4525 }
 0x500   :  { %12847 = vst [vmem:[#allocation63_spill] sm:$0xff] %v11517_v61  ;;  %v6269_v21 = vmul.f32 %v12854_v30, %v4416_v35  ;;  %v7427_v32 = vpack.c.bf16 %v12856_v42, %v4692_v40  ;;  %v4469_v45 = vmul.f32 %v12857_v0, %v4417_v8  ;;  %v4874_v61 = vpop.permute.xlu1 %4873  ;;  %v4765_v35 = vsel %vm1237_vm11, %v12859_v48, %v4746_v58  ;;  %v12862_v40 = vld [vmem:[#allocation65_spill] sm:$0xff] }
 0x501   :  { %12851 = vst [vmem:[#allocation34_spill] sm:$0xff] %v11528_v23  ;;  %v6268_v7 = vmul.f32 %v12858_v56, %v4417_v8  ;;  %v12860_v30 = vrot.slane %v10259_v1, %v12583_v18  ;;  %v4532_v42 = vsel %vm1005_vm2, %v4526_v50, %v12862_v40  ;;  %v12863_v0 = vld [vmem:[#allocation21_spill] sm:$0xff]  ;;  %5675 = vst [vmem:[#allocation2 + $0x8] sm:$0x44] %v5667_v62  ;;  %v12864_v56 = vld [vmem:[#allocation84_spill] sm:$0xff] }
 0x502   :  { %v4533_v43 = vsel %vm1005_vm2, %v12863_v0, %v4526_v50  ;;  %v4728_v8 = vrot.slane %v7427_v32, 7  ;;  %v7421_v23 = vpack.c.bf16 %v4469_v45, %v12864_v56  ;;  %v12865_v58 = vrot.slane %v10259_v1, %v12582_v33  ;;  %v12872_v56 = vld [vmem:[#allocation69_spill] sm:$0xff] }
 0x503   :  { %v11549_v16 = vmul.f32 %v12860_v30, %v4764_v37  ;;  %v7493_v22 = vpack.c.bf16 %v6269_v21, %v6268_v7  ;;  %v12866_v18 = vrot.slane %v10085_v46, %v12853_v28  ;;  %v12867_v30 = vrot.slane %v10085_v46, %v12401_v26 }
 0x504   :  { %v4809_v48 = vmul.f32 %v12865_v58, %v4765_v35  ;;  %4736 = vst [vmem:[#allocation2 + $0x100] sm:$0x22] %v4728_v8  ;;  %v4502_v45 = vrot.slane %v7421_v23, 5  ;;  %v12871_v35 = vld [vmem:[#allocation30_spill] sm:$0xff]  ;;  %vm12873_vm2 = vcmp.lt.s32.totalorder %v7874_v14, 7  ;;  %v5130_v46 = vpop.permute.xlu1 %5129  ;;  %v12878_v8 = vrot.slane %v10277_v63, %v8758_v60 }
 0x505   :  { %12861 = vst [vmem:[#allocation33_spill] sm:$0xff] %v11549_v16  ;;  %v4585_v37 = vmul.f32 %v12866_v18, %v4533_v43  ;;  %v4586_v40 = vmul.f32 %v12867_v30, %v4532_v42  ;;  %v12868_v16 = vld [vmem:[#allocation47_spill] sm:$0xff]  ;;  %v6302_v7 = vrot.slane %v7493_v22, 7  ;;  %v4875_v58 = vsel %vm12873_vm2, %v12872_v56, %v4874_v61  ;;  %v4294_v18 = vpop.permute.xlu0 %4293  ;;  %v12874_v30 = vld [vmem:[#allocation85_spill] sm:$0xff]  ;;  %vm12876_vm12 = vmmov %vm12873_vm2 }
 0x506   :  { %v12869_v50 = vrot.slane %v12868_v16, %v8735_v27  ;;  %v12870_v32 = vrot.slane %v12868_v16, %v12853_v28  ;;  %v7431_v0 = vpack.c.bf16 %v4809_v48, %v12871_v35  ;;  %4510 = vst [vmem:[#allocation2 + $0xf8] sm:$0x88] %v4502_v45  ;;  %v12877_v22 = vrot.slane %v10277_v63, %v12587_v19 }
 0x507   :  { %v7425_v1 = vpack.c.bf16 %v4585_v37, %v12874_v30  ;;  %v7426_v29 = vpack.c.bf16 %v11238_v57, %v4586_v40  ;;  %6310 = vst [vmem:[#allocation2 + $0x158] sm:$0x22] %v6302_v7  ;;  %v11588_v48 = vmul.f32 %v12878_v8, %v4875_v58  ;;  %v4300_v57 = vsel %vm12796_vm13, %v4294_v18, %v12794_v47  ;;  %v7598_v37 = vld [vmem:[#allocation2 + $0x188] ss:$-176 sps:$4 sm:$0xff]   ;;  %v7600_v40 = vld [vmem:[#allocation2 + $0x18c] ss:$-176 sps:$4 sm:$0xff]  }
 0x508   :  { %v6360_v62 = vmul.f32 %v12869_v50, %v4533_v43  ;;  %v6361_v21 = vmul.f32 %v12870_v32, %v4532_v42  ;;  %v12875_v50 = vld [vmem:[#allocation37_spill] sm:$0xff]  ;;  %v4844_v23 = vrot.slane %v7431_v0, 6  ;;  %v12882_v7 = vrot.slane %v10245_v51, %v12853_v28  ;;  %6658 = vmatprep.subr.bf16.mxu1 %v7600_v40 }
 0x509   :  { %v4882_v16 = vsel %vm12876_vm12, %v4874_v61, %v12875_v50  ;;  %4622 = vst [vmem:[#allocation2 + $0xe8] sm:$0x11] %v7425_v1  ;;  %4623 = vst [vmem:[#allocation2 + $0x40] sm:$0x11] %v7426_v29  ;;  %v12883_v1 = vrot.slane %v10229_v2, %v12853_v28  ;;  %v12884_v0 = vrot.slane %v10245_v51, %v8735_v27  ;;  %v3606_v30 = vpop.permute.xlu0 %3605  ;;  %6659 = vmatpush1.bf16.msra.mxu1 %v7598_v37 }
 0x50a   :  { %v7497_v43 = vpack.c.bf16 %v6361_v21, %v6360_v62  ;;  %v4924_v42 = vmul.f32 %v12877_v22, %v4882_v16  ;;  %v12879_v62 = vld [vmem:[#allocation35_spill] sm:$0xff]  ;;  %v12881_v21 = vrot.slane %v10229_v2, %v12401_v26  ;;  %v6181_v35 = vmul.f32 %v12882_v7, %v4300_v57  ;;  %4852 = vst [vmem:[#allocation2 + $0x100] sm:$0x44] %v4844_v23  ;;  %v12888_v22 = vld [vmem:[#allocation88_spill] sm:$0xff] }
 0x50b   :  { %v4301_v32 = vsel %vm12880_vm15, %v12879_v62, %v4294_v18  ;;  %v5148_v18 = vsel %vm12810_vm1, %v5130_v46, %v12809_v9  ;;  %v12887_v16 = vrot.slane %v10497_v38, %v12582_v33  ;;  %v3612_v9 = vsel %vm77_vm9, %v3606_v30, %v12834_v55 }
 0x50c   :  { %v6394_v61 = vrot.slane %v7497_v43, 6  ;;  %v4354_v45 = vmul.f32 %v12881_v21, %v4300_v57  ;;  %v7435_v47 = vpack.c.bf16 %v11188_v36, %v4924_v42  ;;  %v4353_v29 = vmul.f32 %v12883_v1, %v4301_v32  ;;  %v11612_v43 = vpop.permute.xlu1 %4989  ;;  %v12885_v36 = vld [vmem:[#allocation23_spill] sm:$0xff] }
 0x50d   :  { %v6180_v58 = vmul.f32 %v12884_v0, %v4301_v32  ;;  %v5149_v2 = vsel %vm12886_vm7, %v12885_v36, %v5130_v46  ;;  %v5193_v51 = vmul.f32 %v12887_v16, %v5148_v18  ;;  %v3613_v46 = vsel %vm77_vm9, %v12766_v39, %v3606_v30 }
 0x50e   :  { %6402 = vst [vmem:[#allocation2 + $0x158] sm:$0x44] %v6394_v61  ;;  %v7418_v50 = vpack.c.bf16 %v11385_v25, %v4354_v45  ;;  %v4960_v23 = vrot.slane %v7435_v47, 5  ;;  %v7417_v42 = vpack.c.bf16 %v4353_v29, %v12888_v22  ;;  %v12889_v25 = vrot.slane %v10497_v38, %v12587_v19  ;;  %v12902_v22 = vld [vmem:[#allocation76_spill] sm:$0xff] }
 0x50f   :  { %v7489_v8 = vpack.c.bf16 %v6181_v35, %v6180_v58  ;;  %v12890_v33 = vrot.slane %v10099_v52, %v12401_v26  ;;  %v12891_v55 = vrot.slane %v12775_v17, %v12853_v28  ;;  %v12892_v21 = vrot.slane %v10099_v52, %v12853_v28  ;;  %v3718_v35 = vpop.permute.xlu0 %3717 }
 0x510   :  { %v5192_v57 = vmul.f32 %v12889_v25, %v5149_v2  ;;  %v4387_v40 = vrot.slane %v7418_v50, 6  ;;  %4968 = vst [vmem:[#allocation2 + $0x100] sm:$0x88] %v4960_v23  ;;  %v4386_v62 = vrot.slane %v7417_v42, 6  ;;  %v12893_v7 = vrot.slane %v12775_v17, %v8735_v27  ;;  %v3838_v47 = vpop.permute.xlu1 %3837 }
 0x511   :  { %v3666_v37 = vmul.f32 %v12890_v33, %v3612_v9  ;;  %v5633_v61 = vmul.f32 %v12891_v55, %v3612_v9  ;;  %6218 = vst [vmem:[#allocation2 + $0x158] sm:$0x11] %v7489_v8  ;;  %v3665_v45 = vmul.f32 %v12892_v21, %v3613_v46  ;;  %vm12894_vm9 = vcmp.lt.s32.totalorder %v7874_v14, 1  ;;  %v12903_v8 = vld [vmem:[#allocation26_spill] sm:$0xff]  ;;  %v12906_v55 = vld [vmem:[#allocation7_spill] sm:$0xff]  ;;  %v12909_v21 = vld [vmem:[#allocation49_spill] sm:$0xff] }
 0x512   :  { %v7447_v32 = vpack.c.bf16 %v5193_v51, %v5192_v57  ;;  %v5632_v39 = vmul.f32 %v12893_v7, %v3613_v46  ;;  %4395 = vst [vmem:[#allocation2 + $0x78] sm:$0x44] %v4387_v40  ;;  %v4998_v29 = vsel %vm12894_vm9, %v11612_v43, %v12756_v20  ;;  %v3724_v0 = vsel %vm12895_vm6, %v3718_v35, %v12763_v44  ;;  %v12904_v40 = vld [vmem:[#allocation71_spill] sm:$0xff]  ;;  %v12905_v33 = vld [vmem:[#allocation18_spill] sm:$0xff]  ;;  %vm12993_vm9 = vmmov %vm12886_vm7 }
 0x513   :  { %v7394_v1 = vpack.c.bf16 %v11496_v13, %v3666_v37  ;;  %v3725_v52 = vsel %vm12896_vm8, %v12781_v4, %v3718_v35  ;;  %4394 = vst [vmem:[#allocation2 + $0xf8] sm:$0x44] %v4386_v62  ;;  %v7393_v58 = vpack.c.bf16 %v3665_v45, %v11322_v24  ;;  %v12897_v13 = vrot.slane %v10397_v53, %v12587_v19  ;;  %v3950_v25 = vpop.permute.xlu0 %3949 }
 0x514   :  { %v5228_v17 = vrot.slane %v7447_v32, 6  ;;  %v7465_v18 = vpack.c.bf16 %v5633_v61, %v5632_v39  ;;  %v12898_v20 = vrot.slane %v10357_v49, %v12853_v28  ;;  %v12899_v44 = vrot.slane %v10357_v49, %v12401_v26  ;;  %v4182_v57 = vpop.permute.xlu1 %4181 }
 0x515   :  { %v5040_v30 = vmul.f32 %v12897_v13, %v4998_v29  ;;  %3703 = vst [vmem:[#allocation2 + $0x28] sm:$0x11] %v7394_v1  ;;  %v12900_v4 = vrot.slane %v10371_v10, %v8735_v27  ;;  %v12901_v24 = vrot.slane %v10371_v10, %v12853_v28  ;;  %3702 = vst [vmem:[#allocation2 + $0x110] sm:$0x11] %v7393_v58  ;;  %vm12981_vm12 = vcmp.lt.s32.totalorder %v7874_v14, 120 }
 0x516   :  { %v3777_v50 = vmul.f32 %v12898_v20, %v3725_v52  ;;  %v3778_v2 = vmul.f32 %v12899_v44, %v3724_v0  ;;  %5236 = vst [vmem:[#allocation2 + $0xc0] sm:$0x44] %v5228_v17  ;;  %v5666_v9 = vrot.slane %v7465_v18, 6  ;;  %v3839_v42 = vsel %vm309_vm5, %v12902_v22, %v3838_v47  ;;  %v12913_v17 = vld [vmem:[#allocation86_spill] sm:$0xff]  ;;  %vm12983_vm13 = vmmov %vm12981_vm12 }
 0x517   :  { %v5724_v16 = vmul.f32 %v12900_v4, %v3725_v52  ;;  %v5725_v51 = vmul.f32 %v12901_v24, %v3724_v0  ;;  %v7439_v23 = vpack.c.bf16 %v11300_v5, %v5040_v30  ;;  %v3846_v49 = vsel %vm309_vm5, %v3838_v47, %v12903_v8  ;;  %v12912_v47 = vld [vmem:[#allocation72_spill] sm:$0xff]  ;;  %v12919_v8 = vld [vmem:[#allocation62_spill] sm:$0xff] }
 0x518   :  { %v7397_v46 = vpack.c.bf16 %v3777_v50, %v12904_v40  ;;  %v7398_v10 = vpack.c.bf16 %v12905_v33, %v3778_v2  ;;  %v12907_v61 = vrot.slane %v12906_v55, %v12587_v19  ;;  %5674 = vst [vmem:[#allocation2 + $0x198] sm:$0x44] %v5666_v9  ;;  %v12908_v5 = vrot.slane %v12906_v55, %v8758_v60  ;;  %v4066_v2 = vpop.permute.xlu0 %4065  ;;  %v12918_v9 = vld [vmem:[#allocation74_spill] sm:$0xff] }
 0x519   :  { %v7469_v37 = vpack.c.bf16 %v5725_v51, %v5724_v16  ;;  %5080 = vst [vmem:[#allocation2 + $0xc0] sm:$0x11] %v7439_v23  ;;  %v12910_v45 = vrot.slane %v12909_v21, %v12401_v26  ;;  %v12911_v39 = vrot.slane %v12909_v21, %v8758_v60  ;;  %v3956_v1 = vsel %vm423_vm3, %v3950_v25, %v12912_v47 }
 0x51a   :  { %v3888_v62 = vmul.f32 %v12907_v61, %v3846_v49  ;;  %v11685_v32 = vmul.f32 %v12908_v5, %v3839_v42  ;;  %v3810_v29 = vrot.slane %v7397_v46, 7  ;;  %v3811_v0 = vrot.slane %v7398_v10, 7 }
 0x51b   :  { %v5818_v7 = vmul.f32 %v12910_v45, %v3839_v42  ;;  %v5819_v35 = vmul.f32 %v12911_v39, %v3846_v49  ;;  %v5758_v52 = vrot.slane %v7469_v37, 5  ;;  %v3957_v13 = vsel %vm423_vm3, %v12801_v54, %v3950_v25  ;;  %v4414_v42 = vpop.permute.xlu1 %4413  ;;  %v12920_v25 = vld [vmem:[#allocation15_spill] sm:$0xff] }
 0x51c   :  { %v7399_v58 = vpack.c.bf16 %v12913_v17, %v3888_v62  ;;  %v12914_v30 = vrot.slane %v10119_v41, %v12401_v26  ;;  %v12915_v50 = vrot.slane %v10121_v59, %v12853_v28  ;;  %3818 = vst [vmem:[#allocation2 + $0x110] sm:$0x22] %v3810_v29  ;;  %3819 = vst [vmem:[#allocation2 + $0x28] sm:$0x22] %v3811_v0  ;;  %vm12926_vm3 = vcmp.lt.s32.totalorder %v7874_v14, 64  ;;  %v4178_v47 = vpop.permute.xlu0 %4177  ;;  %v12928_v0 = vld [vmem:[#allocation81_spill] sm:$0xff] }
 0x51d   :  { %v7474_v18 = vpack.c.bf16 %v5819_v35, %v5818_v7  ;;  %5766 = vst [vmem:[#allocation2 + $0x198] sm:$0x88] %v5758_v52  ;;  %v12916_v16 = vrot.slane %v10119_v41, %v12853_v28  ;;  %v12917_v54 = vrot.slane %v10121_v59, %v8735_v27  ;;  %v4183_v23 = vsel %vm655_vm4, %v12918_v9, %v4182_v57  ;;  %v12925_v7 = vld [vmem:[#allocation73_spill] sm:$0xff]  ;;  %vm12927_vm10 = vmmov %vm12926_vm3 }
 0x51e   :  { %v4010_v20 = vmul.f32 %v12914_v30, %v3956_v1  ;;  %v5905_v44 = vmul.f32 %v12915_v50, %v3956_v1  ;;  %v3924_v4 = vrot.slane %v7399_v58, 6  ;;  %v4190_v40 = vsel %vm655_vm4, %v4182_v57, %v12920_v25  ;;  %vm12988_vm15 = vmmov %vm12926_vm3 }
 0x51f   :  { %v4009_v24 = vmul.f32 %v12916_v16, %v3957_v13  ;;  %v5904_v51 = vmul.f32 %v12917_v54, %v3957_v13  ;;  %5855 = vst [vmem:[#allocation2 + $0x98] sm:$0x11] %v7474_v18  ;;  %v12921_v41 = vrot.slane %v10133_v3, %v8758_v60  ;;  %v12922_v59 = vrot.slane %v12831_v6, %v12401_v26  ;;  %v4634_v58 = vpop.permute.xlu1 %4633  ;;  %v12933_v16 = vld [vmem:[#allocation25_spill] sm:$0xff]  ;;  %vm12990_vm1 = vmmov %vm12926_vm3 }
 0x520   :  { %v7406_v49 = vpack.c.bf16 %v12919_v8, %v4010_v20  ;;  %3932 = vst [vmem:[#allocation2 + $0x30] sm:$0x44] %v3924_v4  ;;  %v12923_v61 = vrot.slane %v10133_v3, %v12587_v19  ;;  %v12924_v57 = vrot.slane %v12831_v6, %v8758_v60  ;;  %v4072_v39 = vsel %vm12926_vm3, %v4066_v2, %v12925_v7  ;;  %v12934_v54 = vld [vmem:[#allocation53_spill] sm:$0xff]  ;;  %v12936_v8 = vld [vmem:[#allocation24_spill] sm:$0xff] }
 0x521   :  { %v11722_v46 = vmul.f32 %v12921_v41, %v4183_v23  ;;  %v6090_v33 = vmul.f32 %v12922_v59, %v4183_v23  ;;  %v7405_v10 = vpack.c.bf16 %v4009_v24, %v11409_v31  ;;  %v7477_v37 = vpack.c.bf16 %v5905_v44, %v5904_v51  ;;  %v12938_v59 = vld [vmem:[#allocation22_spill] sm:$0xff] }
 0x522   :  { %v4232_v62 = vmul.f32 %v12923_v61, %v4190_v40  ;;  %v6091_v5 = vmul.f32 %v12924_v57, %v4190_v40  ;;  %v4043_v45 = vrot.slane %v7406_v49, 5  ;;  %v4073_v35 = vsel %vm12927_vm10, %v12813_v11, %v4066_v2  ;;  %v12940_v61 = vld [vmem:[#allocation34_spill] sm:$0xff] }
 0x523   :  { %v4415_v31 = vsel %vm887_vm0, %v12848_v12, %v4414_v42  ;;  %v4042_v1 = vrot.slane %v7405_v10, 5  ;;  %v5938_v29 = vrot.slane %v7477_v37, 7  ;;  %v12929_v18 = vrot.slane %v10389_v15, %v12853_v28  ;;  %v5482_v37 = vpop.permute.xlu0 %5481 }
 0x524   :  { %v7411_v52 = vpack.c.bf16 %v12928_v0, %v4232_v62  ;;  %v7486_v17 = vpack.c.bf16 %v6091_v5, %v6090_v33  ;;  %4051 = vst [vmem:[#allocation2 + $0x28] sm:$0x88] %v4043_v45  ;;  %v12930_v30 = vrot.slane %v10389_v15, %v12401_v26  ;;  %v12931_v12 = vrot.slane %v10395_v34, %v8735_v27  ;;  %v12942_v45 = vld [vmem:[#allocation13_spill] sm:$0xff] }
 0x525   :  { %v4125_v13 = vmul.f32 %v12929_v18, %v4073_v35  ;;  %v12932_v50 = vrot.slane %v10395_v34, %v12853_v28  ;;  %4050 = vst [vmem:[#allocation2 + $0x110] sm:$0x88] %v4042_v1  ;;  %5946 = vst [vmem:[#allocation2 + $0x170] sm:$0x22] %v5938_v29  ;;  %v4422_v24 = vsel %vm887_vm0, %v4414_v42, %v12933_v16  ;;  %v12943_v1 = vld [vmem:[#allocation8_spill] sm:$0xff]  ;;  %vm12956_vm0 = vcmp.lt.s32.totalorder %v7874_v14, 119 }
 0x526   :  { %v11750_v11 = vmul.f32 %v12930_v30, %v4072_v39  ;;  %v5996_v20 = vmul.f32 %v12931_v12, %v4073_v35  ;;  %v4268_v2 = vrot.slane %v7411_v52, 7  ;;  %v6123_v4 = vrot.slane %v7486_v17, 5  ;;  %v4750_v35 = vpop.permute.xlu1 %4749 }
 0x527   :  { %v5997_v44 = vmul.f32 %v12932_v50, %v4072_v39  ;;  %v12935_v51 = vrot.slane %v12934_v54, %v8758_v60  ;;  %v7409_v49 = vpack.c.bf16 %v4125_v13, %v12936_v8  ;;  %v12937_v40 = vrot.slane %v12934_v54, %v12587_v19  ;;  %v6417_v50 = vld [vmem:[#allocation2 + $0xc0] sm:$0xff]  ;;  %v3834_v54 = vpop.permute.xlu0 %3833  ;;  %v12950_v8 = vld [vmem:[#allocation59_spill] sm:$0xff] }
 0x528   :  { %v12939_v33 = vrot.slane %v12938_v59, %v12401_v26  ;;  %4276 = vst [vmem:[#allocation2 + $0x160] sm:$0x22] %v4268_v2  ;;  %6131 = vst [vmem:[#allocation2 + $0x98] sm:$0x88] %v6123_v4  ;;  %v12941_v62 = vrot.slane %v12938_v59, %v8758_v60  ;;  %v4184_v5 = vsel %vm655_vm4, %v4178_v47, %v12918_v9  ;;  %v12948_v2 = vld [vmem:[#allocation17_spill] sm:$0xff]  ;;  %vm13002_vm6 = vcmp.lt.s32.totalorder %v7874_v14, 1 }
 0x529   :  { %v4471_v23 = vmul.f32 %v12935_v51, %v4415_v31  ;;  %v7481_v25 = vpack.c.bf16 %v5997_v44, %v5996_v20  ;;  %v4464_v41 = vmul.f32 %v12937_v40, %v4422_v24  ;;  %v4185_v39 = vsel %vm655_vm4, %v12942_v45, %v4178_v47  ;;  %4162 = vst [vmem:[#allocation2 + $0xf8] sm:$0x11] %v7409_v49  ;;  %v12951_v49 = vld [vmem:[#allocation54_spill] sm:$0xff]  ;;  %v12955_v45 = vld [vmem:[#allocation75_spill] sm:$0xff]  ;;  %vm12958_vm4 = vmmov %vm12956_vm0 }
 0x52a   :  { %v6270_v10 = vmul.f32 %v12939_v33, %v4415_v31  ;;  %v6271_v57 = vmul.f32 %v12941_v62, %v4422_v24  ;;  %v12944_v0 = vrot.slane %v10133_v3, %v12853_v28  ;;  %v12945_v17 = vrot.slane %v10133_v3, %v12401_v26  ;;  %v12949_v24 = vld [vmem:[#allocation61_spill] sm:$0xff]  ;;  %v4866_v59 = vpop.permute.xlu1 %4865  ;;  %vm13004_vm8 = vmmov %vm13002_vm6 }
 0x52b   :  { %v7422_v42 = vpack.c.bf16 %v4471_v23, %v12940_v61  ;;  %v6030_v31 = vrot.slane %v7481_v25, 6  ;;  %v7419_v29 = vpack.c.bf16 %v12943_v1, %v4464_v41  ;;  %v12946_v9 = vrot.slane %v12831_v6, %v8735_v27  ;;  %v6413_v41 = vld [vmem:[#allocation2 + $0x100] sm:$0xff]  ;;  %v12959_v1 = vld [vmem:[#allocation89_spill] sm:$0xff] }
 0x52c   :  { %v4237_v52 = vmul.f32 %v12944_v0, %v4185_v39  ;;  %v4238_v18 = vmul.f32 %v12945_v17, %v4184_v5  ;;  %v7494_v30 = vpack.c.bf16 %v6271_v57, %v6270_v10  ;;  %v12947_v47 = vrot.slane %v12831_v6, %v12853_v28  ;;  %v12953_v10 = vld [vmem:[#allocation12_spill] sm:$0xff]  ;;  %v12960_v0 = vld [vmem:[#allocation6_spill] sm:$0xff] }
 0x52d   :  { %v4503_v13 = vrot.slane %v7422_v42, 5  ;;  %v6088_v12 = vmul.f32 %v12946_v9, %v4185_v39  ;;  %6038 = vst [vmem:[#allocation2 + $0x170] sm:$0x44] %v6030_v31  ;;  %v4500_v44 = vrot.slane %v7419_v29, 5  ;;  %v4646_v3 = vsel %vm1119_vm14, %v4634_v58, %v12949_v24  ;;  %v12957_v39 = vld [vmem:[#allocation39_spill] sm:$0xff] }
 0x52e   :  { %v6089_v20 = vmul.f32 %v12947_v47, %v4184_v5  ;;  %v7413_v4 = vpack.c.bf16 %v4237_v52, %v12948_v2  ;;  %v7414_v16 = vpack.c.bf16 %v11722_v46, %v4238_v18  ;;  %v6303_v51 = vrot.slane %v7494_v30, 7  ;;  %v12963_v30 = vld [vmem:[#allocation11_spill] sm:$0xff] }
 0x52f   :  { %4511 = vst [vmem:[#allocation2 + $0x78] sm:$0x88] %v4503_v13  ;;  %v4647_v6 = vsel %vm1119_vm14, %v12950_v8, %v4634_v58  ;;  %v12952_v25 = vrot.slane %v12951_v49, %v8735_v27  ;;  %4508 = vst [vmem:[#allocation2 + $0x160] sm:$0x88] %v4500_v44  ;;  %v12954_v61 = vrot.slane %v12951_v49, %v12953_v10  ;;  %vm13008_vm3 = vcmp.lt.s32.totalorder %v7874_v14, 121 }
 0x530   :  { %v7485_v23 = vpack.c.bf16 %v6089_v20, %v6088_v12  ;;  %v4270_v46 = vrot.slane %v7413_v4, 7  ;;  %v4271_v33 = vrot.slane %v7414_v16, 7  ;;  %v7255_v62 = vcombine.low %v6413_v41, %v6417_v50  ;;  %6311 = vst [vmem:[#allocation2 + $0xa8] sm:$0x22] %v6303_v51  ;;  %v5370_v12 = vpop.permute.xlu0 %5369  ;;  %v12965_v20 = vld [vmem:[#allocation48_spill] sm:$0xff]  ;;  %v12967_v4 = vld [vmem:[#allocation46_spill] sm:$0xff]  ;;  %vm13010_vm10 = vmmov %vm13008_vm3 }
 0x531   :  { %v11805_v40 = vmul.f32 %v12952_v25, %v4646_v3  ;;  %v4695_v42 = vmul.f32 %v12954_v61, %v4647_v6  ;;  %v7256_v5 = vcombine.high %v6413_v41, %v6417_v50  ;;  %v5488_v58 = vsel %vm12956_vm0, %v5482_v37, %v12955_v45  ;;  %v4070_v3 = vpop.permute.xlu1 %4069 }
 0x532   :  { %v6122_v57 = vrot.slane %v7485_v23, 5  ;;  %v5489_v31 = vsel %vm12958_vm4, %v12957_v39, %v5482_v37  ;;  %4278 = vst [vmem:[#allocation2 + $0xf8] sm:$0x22] %v4270_v46  ;;  %4279 = vst [vmem:[#allocation2 + $0x78] sm:$0x22] %v4271_v33  ;;  %v12961_v52 = vrot.slane %v12960_v0, %v8735_v27  ;;  %v12962_v18 = vrot.slane %v12960_v0, %v12853_v28  ;;  %v12964_v37 = vld [vmem:[#allocation29_spill] sm:$0xff] }
 0x533   :  { %v7428_v29 = vpack.c.bf16 %v4695_v42, %v12959_v1  ;;  %v4762_v9 = vsel %vm1237_vm11, %v4750_v35, %v12963_v30  ;;  %6619 = vmatprep.subr.bf16.mxu0 %v7256_v5  ;;  %v4763_v47 = vsel %vm1237_vm11, %v12964_v37, %v4750_v35  ;;  %v12966_v50 = vrot.slane %v12965_v20, %v8735_v27  ;;  %v12973_v42 = vld [vmem:[#allocation64_spill] sm:$0xff]  ;;  %v12975_v5 = vld [vmem:[#allocation33_spill] sm:$0xff]  ;;  %v12976_v39 = vld [vmem:[#allocation27_spill] sm:$0xff] }
 0x534   :  { %v5540_v17 = vmul.f32 %v12961_v52, %v5489_v31  ;;  %v5541_v13 = vmul.f32 %v12962_v18, %v5488_v58  ;;  %6130 = vst [vmem:[#allocation2 + $0x170] sm:$0x88] %v6122_v57  ;;  %v3840_v2 = vsel %vm309_vm5, %v3834_v54, %v12902_v22  ;;  %v3841_v16 = vsel %vm309_vm5, %v12967_v4, %v3834_v54  ;;  %vm12974_vm5 = vmmov %vm12873_vm2  ;;  %v12982_v4 = vld [vmem:[#allocation9_spill] sm:$0xff] }
 0x535   :  { %v11832_v44 = vmul.f32 %v12966_v50, %v4762_v9  ;;  %v4729_v51 = vrot.slane %v7428_v29, 7  ;;  %6620 = vmatpush1.bf16.msra.mxu0 %v7255_v62  ;;  %v12968_v35 = vrot.slane %v12965_v20, %v12953_v10  ;;  %v12969_v6 = vrot.slane %v12906_v55, %v12853_v28  ;;  %v5138_v29 = vpop.permute.xlu0 %5137  ;;  %v4982_v37 = vpop.permute.xlu1 %4981 }
 0x536   :  { %v7461_v23 = vpack.c.bf16 %v5541_v13, %v5540_v17  ;;  %v12970_v41 = vrot.slane %v12906_v55, %v12401_v26  ;;  %v12971_v46 = vrot.slane %v12909_v21, %v8735_v27  ;;  %v12972_v33 = vrot.slane %v12909_v21, %v12853_v28  ;;  %v12977_v55 = vld [vmem:[#allocation51_spill] sm:$0xff] }
 0x537   :  { %v4811_v8 = vmul.f32 %v12968_v35, %v4763_v47  ;;  %v3893_v25 = vmul.f32 %v12969_v6, %v3841_v16  ;;  %v4878_v62 = vsel %vm12974_vm5, %v4866_v59, %v12973_v42  ;;  %4737 = vst [vmem:[#allocation2 + $0x130] sm:$0x22] %v4729_v51  ;;  %v4879_v1 = vsel %vm12873_vm2, %v12977_v55, %v4866_v59  ;;  %v12984_v51 = vld [vmem:[#allocation58_spill] sm:$0xff]  ;;  %vm13027_vm5 = vmmov %vm12873_vm2 }
 0x538   :  { %v3894_v22 = vmul.f32 %v12970_v41, %v3840_v2  ;;  %v5816_v54 = vmul.f32 %v12971_v46, %v3841_v16  ;;  %v5817_v61 = vmul.f32 %v12972_v33, %v3840_v2  ;;  %v5574_v57 = vrot.slane %v7461_v23, 7  ;;  %v12980_v2 = vld [vmem:[#allocation77_spill] sm:$0xff]  ;;  %v12985_v35 = vld [vmem:[#allocation66_spill] sm:$0xff]  ;;  %v12989_v46 = vld [vmem:[#allocation32_spill] sm:$0xff] }
 0x539   :  { %v7432_v58 = vpack.c.bf16 %v4811_v8, %v12975_v5  ;;  %v7401_v31 = vpack.c.bf16 %v3893_v25, %v12976_v39  ;;  %v12978_v21 = vrot.slane %v10277_v63, %v12953_v10  ;;  %v12979_v13 = vrot.slane %v10277_v63, %v8735_v27  ;;  %v4638_v55 = vpop.permute.xlu1 %4637 }
 0x53a   :  { %v7402_v52 = vpack.c.bf16 %v11685_v32, %v3894_v22  ;;  %v7473_v17 = vpack.c.bf16 %v5817_v61, %v5816_v54  ;;  %5582 = vst [vmem:[#allocation2 + $0x198] sm:$0x22] %v5574_v57  ;;  %v5376_v59 = vsel %vm12981_vm12, %v5370_v12, %v12980_v2  ;;  %v5377_v32 = vsel %vm12983_vm13, %v12982_v4, %v5370_v12  ;;  %v12991_v54 = vld [vmem:[#allocation78_spill] sm:$0xff]  ;;  %v12992_v61 = vld [vmem:[#allocation40_spill] sm:$0xff]  ;;  %v5254_v57 = vpop.permute.xlu0 %5253  ;;  %vm13032_vm12 = vmmov %vm13008_vm3 }
 0x53b   :  { %v4927_v18 = vmul.f32 %v12978_v21, %v4879_v1  ;;  %v11870_v9 = vmul.f32 %v12979_v13, %v4878_v62  ;;  %v4845_v47 = vrot.slane %v7432_v58, 6  ;;  %v3926_v50 = vrot.slane %v7401_v31, 6  ;;  %vm13034_vm13 = vmmov %vm13008_vm3 }
 0x53c   :  { %v3927_v16 = vrot.slane %v7402_v52, 6  ;;  %5854 = vst [vmem:[#allocation2 + $0x170] sm:$0x11] %v7473_v17  ;;  %v12986_v8 = vrot.slane %v12985_v35, %v8735_v27  ;;  %v12987_v25 = vrot.slane %v12985_v35, %v12853_v28  ;;  %v4071_v22 = vsel %vm12988_vm15, %v12925_v7, %v4070_v3 }
 0x53d   :  { %v7436_v23 = vpack.c.bf16 %v4927_v18, %v12984_v51  ;;  %4853 = vst [vmem:[#allocation2 + $0x130] sm:$0x44] %v4845_v47  ;;  %3934 = vst [vmem:[#allocation2 + $0x110] sm:$0x44] %v3926_v50  ;;  %v4078_v12 = vsel %vm12990_vm1, %v4070_v3, %v12989_v46  ;;  %v5144_v33 = vsel %vm12886_vm7, %v5138_v29, %v12991_v54  ;;  %v13009_v46 = vld [vmem:[#allocation55_spill] sm:$0xff]  ;;  %vm13037_vm15 = vcmp.lt.s32.totalorder %v7874_v14, 120 }
 0x53e   :  { %v5428_v6 = vmul.f32 %v12986_v8, %v5377_v32  ;;  %v5429_v41 = vmul.f32 %v12987_v25, %v5376_v59  ;;  %v5145_v62 = vsel %vm12993_vm9, %v12992_v61, %v5138_v29  ;;  %3935 = vst [vmem:[#allocation2 + $0x28] sm:$0x44] %v3927_v16  ;;  %v12994_v39 = vrot.slane %v10389_v15, %v12587_v19  ;;  %v13001_v59 = vld [vmem:[#allocation83_spill] sm:$0xff]  ;;  %v4754_v61 = vpop.permute.xlu1 %4753  ;;  %vm13039_vm1 = vmmov %vm13037_vm15 }
 0x53f   :  { %v4961_v5 = vrot.slane %v7436_v23, 5  ;;  %v12995_v31 = vrot.slane %v10389_v15, %v8758_v60  ;;  %v12996_v1 = vrot.slane %v10395_v34, %v12401_v26  ;;  %v12997_v29 = vrot.slane %v10395_v34, %v8758_v60  ;;  %v13000_v15 = vld [vmem:[#allocation52_spill] sm:$0xff]  ;;  %vm13042_vm9 = vmmov %vm12886_vm7 }
 0x540   :  { %v7457_v58 = vpack.c.bf16 %v5429_v41, %v5428_v6  ;;  %v4120_v7 = vmul.f32 %v12994_v39, %v4078_v12  ;;  %v12998_v21 = vrot.slane %v10497_v38, %v8735_v27  ;;  %v12999_v19 = vrot.slane %v10497_v38, %v12853_v28  ;;  %v13003_v34 = vld [vmem:[#allocation60_spill] sm:$0xff] }
 0x541   :  { %v4127_v3 = vmul.f32 %v12995_v31, %v4071_v22  ;;  %v5998_v52 = vmul.f32 %v12996_v1, %v4071_v22  ;;  %v5999_v17 = vmul.f32 %v12997_v29, %v4078_v12  ;;  %4969 = vst [vmem:[#allocation2 + $0x130] sm:$0x88] %v4961_v5  ;;  %v4994_v4 = vsel %vm13002_vm6, %v4982_v37, %v13001_v59  ;;  %v13007_v41 = vld [vmem:[#allocation80_spill] sm:$0xff]  ;;  %v13011_v12 = vld [vmem:[#allocation67_spill] sm:$0xff] }
 0x542   :  { %v5196_v18 = vmul.f32 %v12998_v21, %v5145_v62  ;;  %v5197_v13 = vmul.f32 %v12999_v19, %v5144_v33  ;;  %5466 = vst [vmem:[#allocation2 + $0x198] sm:$0x11] %v7457_v58  ;;  %v7407_v47 = vpack.c.bf16 %v13000_v15, %v4120_v7  ;;  %v4995_v32 = vsel %vm13004_vm8, %v13003_v34, %v4982_v37  ;;  %v13012_v58 = vld [vmem:[#allocation36_spill] sm:$0xff]  ;;  %vm13046_vm8 = vmmov %vm13002_vm6 }
 0x543   :  { %v7410_v50 = vpack.c.bf16 %v4127_v3, %v11750_v11  ;;  %v7482_v16 = vpack.c.bf16 %v5999_v17, %v5998_v52  ;;  %v13005_v23 = vrot.slane %v10397_v53, %v12953_v10  ;;  %v13006_v6 = vrot.slane %v10397_v53, %v8735_v27  ;;  %v5486_v11 = vpop.permute.xlu0 %5485  ;;  %v13013_v7 = vld [vmem:[#allocation4_spill] sm:$0xff] }
 0x544   :  { %v7449_v51 = vpack.c.bf16 %v5197_v13, %v5196_v18  ;;  %4160 = vst [vmem:[#allocation2 + $0x160] sm:$0x11] %v7407_v47  ;;  %v5260_v22 = vsel %vm13008_vm3, %v5254_v57, %v13007_v41  ;;  %v5261_v37 = vsel %vm13010_vm10, %v13009_v46, %v5254_v57  ;;  %v4644_v10 = vsel %vm1119_vm14, %v4638_v55, %v13011_v12  ;;  %v13021_v13 = vld [vmem:[#allocation87_spill] sm:$0xff] }
 0x545   :  { %v5043_v8 = vmul.f32 %v13005_v23, %v4995_v32  ;;  %v11929_v25 = vmul.f32 %v13006_v6, %v4994_v4  ;;  %4163 = vst [vmem:[#allocation2 + $0x78] sm:$0x11] %v7410_v50  ;;  %v4645_v33 = vsel %vm1119_vm14, %v12949_v24, %v4638_v55  ;;  %v6031_v62 = vrot.slane %v7482_v16, 6  ;;  %vm13018_vm14 = vmmov %vm12956_vm0  ;;  %v13022_v4 = vld [vmem:[#allocation63_spill] sm:$0xff] }
 0x546   :  { %v5230_v5 = vrot.slane %v7449_v51, 6  ;;  %v13014_v31 = vrot.slane %v13013_v7, %v8735_v27  ;;  %v13015_v57 = vrot.slane %v13013_v7, %v12853_v28  ;;  %v13016_v52 = vrot.slane %v12951_v49, %v12853_v28  ;;  %v13019_v27 = vld [vmem:[#allocation20_spill] sm:$0xff]  ;;  %v4870_v51 = vpop.permute.xlu1 %4869  ;;  %v7621_v14 = vld [vmem:[#allocation2 + $0x114] ss:$-24 sps:$4 sm:$0xff]  }
 0x547   :  { %v7440_v39 = vpack.c.bf16 %v5043_v8, %v13012_v58  ;;  %v13017_v24 = vrot.slane %v12951_v49, %v12401_v26  ;;  %v5487_v17 = vsel %vm13018_vm14, %v12955_v45, %v5486_v11  ;;  %vm6603_vm0 = vcmask 523264   ;;  %6039 = vst [vmem:[#allocation2 + $0x98] sm:$0x44] %v6031_v62  ;;  %v11971_v15 = vpop.permute.xlu0 %4985 }
 0x548   :  { %v5312_v3 = vmul.f32 %v13014_v31, %v5261_v37  ;;  %v5313_v1 = vmul.f32 %v13015_v57, %v5260_v22  ;;  %v4697_v29 = vmul.f32 %v13016_v52, %v4645_v33  ;;  %5238 = vst [vmem:[#allocation2 + $0x118] sm:$0x44] %v5230_v5  ;;  %v5494_v21 = vsel %vm12958_vm4, %v5486_v11, %v13019_v27 }
 0x549   :  { %v4698_v55 = vmul.f32 %v13017_v24, %v4644_v10  ;;  %5081 = vst [vmem:[#allocation2 + $0x168] sm:$0x11] %v7440_v39  ;;  %v13020_v18 = vrot.slane %v12960_v0, %v12401_v26  ;;  %v4760_v49 = vsel %vm1237_vm11, %v4754_v61, %v13021_v13  ;;  %v4761_v45 = vsel %vm1237_vm11, %v12963_v30, %v4754_v61  ;;  %vm13026_vm11 = vmmov %vm13002_vm6  ;;  %v13028_v10 = vld [vmem:[#allocation31_spill] sm:$0xff] }
 0x54a   :  { %v7453_v47 = vpack.c.bf16 %v5313_v1, %v5312_v3  ;;  %v7429_v50 = vpack.c.bf16 %v4697_v29, %v11805_v40  ;;  %v13023_v32 = vrot.slane %v12960_v0, %v8758_v60  ;;  %v13024_v23 = vrot.slane %v12965_v20, %v12853_v28  ;;  %v7606_v24 = vld [vmem:[#allocation2 + $0x15c] ss:$-48 sps:$4 sm:$0xff]  }
 0x54b   :  { %v5542_v19 = vmul.f32 %v13020_v18, %v5487_v17  ;;  %v7430_v34 = vpack.c.bf16 %v13022_v4, %v4698_v55  ;;  %v13025_v6 = vrot.slane %v12965_v20, %v12401_v26  ;;  %v4993_v40 = vsel %vm13026_vm11, %v13001_v59, %v11971_v15  ;;  %v7601_v62 = vld [vmem:[#allocation2 + $0x30] ss:$304 sps:$4 sm:$0xff]   ;;  %v7603_v5 = vld [vmem:[#allocation2 + $0x34] ss:$304 sps:$4 sm:$0xff]   ;;  %v5258_v58 = vpop.permute.xlu0 %5257  ;;  %v13033_v55 = vld [vmem:[#allocation45_spill] sm:$0xff] }
 0x54c   :  { %v5543_v16 = vmul.f32 %v13023_v32, %v5494_v21  ;;  %v4813_v8 = vmul.f32 %v13024_v23, %v4761_v45  ;;  %v4876_v11 = vsel %vm13027_vm5, %v4870_v51, %v12872_v56  ;;  %v5346_v0 = vrot.slane %v7453_v47, 5  ;;  %6621 = vmatprep.subr.bf16.mxu0 %v7603_v5 }
 0x54d   :  { %v4814_v30 = vmul.f32 %v13025_v6, %v4760_v49  ;;  %v4730_v22 = vrot.slane %v7429_v50, 7  ;;  %v4731_v46 = vrot.slane %v7430_v34, 7  ;;  %v13029_v20 = vrot.slane %v10397_v53, %v12853_v28  ;;  %6622 = vmatpush1.bf16.msra.mxu0 %v7601_v62  ;;  %v7604_v50 = vld [vmem:[#allocation2 + $0x158] ss:$-48 sps:$4 sm:$0xff]  }
 0x54e   :  { %v7462_v37 = vpack.c.bf16 %v5543_v16, %v5542_v19  ;;  %v7433_v12 = vpack.c.bf16 %v4813_v8, %v11832_v44  ;;  %v4877_v59 = vsel %vm12873_vm2, %v12973_v42, %v4870_v51  ;;  %5354 = vst [vmem:[#allocation2 + $0x118] sm:$0x88] %v5346_v0  ;;  %v13030_v44 = vrot.slane %v10277_v63, %v12853_v28  ;;  %v5374_v42 = vpop.permute.xlu1 %5373  ;;  %v7612_v16 = vld [vmem:[#allocation2 + $0x14c] ss:$-88 sps:$4 sm:$0xff]  }
 0x54f   :  { %v7434_v33 = vpack.c.bf16 %v13028_v10, %v4814_v30  ;;  %v5045_v61 = vmul.f32 %v13029_v20, %v4993_v40  ;;  %4738 = vst [vmem:[#allocation2 + $0xe8] sm:$0x22] %v4730_v22  ;;  %4739 = vst [vmem:[#allocation2 + $0x40] sm:$0x22] %v4731_v46  ;;  %v13031_v31 = vrot.slane %v10277_v63, %v12401_v26  ;;  %v12015_v63 = vld [vmem:[%s12120_s6] sm:$0xf]  ;;  %6697 = vmatprep.subr.bf16.mxu0 %v7606_v24 }
 0x550   :  { %v5575_v56 = vrot.slane %v7462_v37, 7  ;;  %v4929_v39 = vmul.f32 %v13030_v44, %v4877_v59  ;;  %v5259_v57 = vsel %vm13032_vm12, %v13007_v41, %v5258_v58  ;;  %v4846_v1 = vrot.slane %v7433_v12, 6  ;;  %v7607_v19 = vld [vmem:[#allocation2 + $0x130] ss:$56 sps:$4 sm:$0xff]   ;;  %v7609_v13 = vld [vmem:[#allocation2 + $0x134] ss:$56 sps:$4 sm:$0xff]   ;;  %7279 = vmatmul.mubr.msk.bf16.vlgmr.msra.gmra.mxu0 %vm6603_vm0, %v12015_v63 }
 0x551   :  { %v4930_v3 = vmul.f32 %v13031_v31, %v4876_v11  ;;  %v4847_v52 = vrot.slane %v7434_v33, 6  ;;  %v7441_v29 = vpack.c.bf16 %v5045_v61, %v11929_v25  ;;  %v5266_v28 = vsel %vm13034_vm13, %v5258_v58, %v13033_v55  ;;  %6660 = vmatprep.subr.bf16.mxu1 %v7609_v13  ;;  %v7615_v8 = vld [vmem:[#allocation2 + $0x19c] ss:$-40 sps:$4 sm:$0xff]   ;;  %v6432_v40 = vld [vmem:[#allocation2 + $0xa8] sm:$0xff]  ;;  %6698 = vmatpush1.bf16.msra.mxu0 %v7604_v50  ;;  %v7613_v33 = vld [vmem:[#allocation2 + $0x198] ss:$-40 sps:$4 sm:$0xff]  }
 0x552   :  { %5583 = vst [vmem:[#allocation2 + $0x8] sm:$0x22] %v5575_v56  ;;  %v7437_v17 = vpack.c.bf16 %v4929_v39, %v11870_v9  ;;  %v13035_v25 = vrot.slane %v13013_v7, %v12401_v26  ;;  %v13036_v21 = vrot.slane %v13013_v7, %v8758_v60  ;;  %4854 = vst [vmem:[#allocation2 + $0xe8] sm:$0x44] %v4846_v1  ;;  %v5142_v51 = vpop.permute.xlu1 %5141  ;;  %6661 = vmatpush1.bf16.msra.mxu1 %v7607_v19  ;;  %v7610_v12 = vld [vmem:[#allocation2 + $0x148] ss:$-88 sps:$4 sm:$0xff]  }
 0x553   :  { %v7438_v41 = vpack.c.bf16 %v11588_v48, %v4930_v3  ;;  %4855 = vst [vmem:[#allocation2 + $0x40] sm:$0x44] %v4847_v52  ;;  %5082 = vst [vmem:[#allocation2 + $0x118] sm:$0x11] %v7441_v29  ;;  %v5375_v9 = vsel %vm13037_vm15, %v12980_v2, %v5374_v42  ;;  %v13038_v48 = vld [vmem:[#allocation42_spill] sm:$0xff]  ;;  %v5027_v45 = vrot.slane %v10397_v53, %v12401_v26  ;;  %6662 = vmatprep.subr.bf16.mxu1 %v7612_v16  ;;  %v13045_v10 = vmov 0  }
 0x554   :  { %v5314_v27 = vmul.f32 %v13035_v25, %v5259_v57  ;;  %v5315_v18 = vmul.f32 %v13036_v21, %v5266_v28  ;;  %v5382_v49 = vsel %vm13039_vm1, %v5374_v42, %v13038_v48  ;;  %v4962_v47 = vrot.slane %v7437_v17, 5  ;;  %6699 = vmatprep.subr.bf16.mxu0 %v7615_v8  ;;  %6721 = vmatprep.mubr.bf16.mxu0 %v13045_v10  ;;  %v7619_v39 = vld [vmem:[#allocation2 + $0x110] ss:$-24 sps:$4 sm:$0xff]   ;;  %v7627_v1 = vld [vmem:[#allocation2 + $0x2c] ss:$80 sps:$4 sm:$0xff]  }
 0x555   :  { %v4963_v7 = vrot.slane %v7438_v41, 5  ;;  %v13040_v34 = vrot.slane %v12985_v35, %v12401_v26  ;;  %v13041_v2 = vrot.slane %v12985_v35, %v8758_v60  ;;  %v5143_v6 = vsel %vm12886_vm7, %v12991_v54, %v5142_v51  ;;  %6700 = vmatpush1.bf16.msra.mxu0 %v7613_v33  ;;  %v7625_v52 = vld [vmem:[#allocation2 + $0x28] ss:$80 sps:$4 sm:$0xff]   ;;  %v6441_v41 = vpop.permute.xlu0 %6440 }
 0x556   :  { %v7454_v4 = vpack.c.bf16 %v5315_v18, %v5314_v27  ;;  %v5150_v30 = vsel %vm13042_vm9, %v5142_v51, %v12885_v36  ;;  %4970 = vst [vmem:[#allocation2 + $0xe8] sm:$0x88] %v4962_v47  ;;  %v13043_v35 = vrot.slane %v10497_v38, %v12401_v26  ;;  %v13044_v22 = vrot.slane %v10497_v38, %v8758_v60  ;;  %v6436_v36 = vld [vmem:[#allocation2 + $0x1a8] sm:$0xff]  ;;  %v4988_v59 = vpop.permute.xlu1 %4987 }
 0x557   :  { %v5430_v32 = vmul.f32 %v13040_v34, %v5375_v9  ;;  %v5431_v23 = vmul.f32 %v13041_v2, %v5382_v49  ;;  %4971 = vst [vmem:[#allocation2 + $0x40] sm:$0x88] %v4963_v7  ;;  %v5031_v54 = vrot.slane %v10397_v53, %v8758_v60  ;;  %v7278_v61 = vcombine.high %v6432_v40, %v6436_v36 }
 0x558   :  { %v5347_v11 = vrot.slane %v7454_v4, 5  ;;  %v5198_v0 = vmul.f32 %v13043_v35, %v5143_v6  ;;  %v5199_v46 = vmul.f32 %v13044_v22, %v5150_v30  ;;  %6663 = vmatpush1.bf16.msra.mxu1 %v7610_v12  ;;  %v4991_v26 = vsel %vm13002_vm6, %v4988_v59, %v11612_v43 }
 0x559   :  { %v7458_v37 = vpack.c.bf16 %v5431_v23, %v5430_v32  ;;  %v4992_v60 = vsel %vm13046_vm8, %v11971_v15, %v4988_v59  ;;  %6738 = vmatprep.subr.bf16.mxu1 %v7278_v61  ;;  %v5047_v62 = vmul.f32 %v5031_v54, %v4991_v26  ;;  %v7277_v5 = vcombine.low %v6432_v40, %v6436_v36 }
 0x55a   :  { %5355 = vst [vmem:[#allocation2 + $0x120] sm:$0x88] %v5347_v11  ;;  %v7450_v20 = vpack.c.bf16 %v5199_v46, %v5198_v0  ;;  %v5046_v38 = vmul.f32 %v5027_v45, %v4992_v60 }
 0x55b   :  { %5467 = vst [vmem:[#allocation2 + $0x8] sm:$0x11] %v7458_v37  ;;  %7280 = vmatmul.mubr.msk.bf16.vlgmr.msra.gmra.mxu1 %vm6603_vm0, %v12015_v63 }
 0x55c   :  { %v5231_v53 = vrot.slane %v7450_v20, 6  ;;  %v7442_v58 = vpack.c.bf16 %v5047_v62, %v5046_v38  ;;  %6739 = vmatpush1.bf16.msra.mxu1 %v7277_v5  ;;  %6762 = vmatprep.mubr.bf16.mxu1 %v13045_v10 }
 0x55d   :  { %v7616_v56 = vld [vmem:[#allocation2 + $0xe8] ss:$48 sps:$4 sm:$0xff]   ;;  %v7618_v44 = vld [vmem:[#allocation2 + $0xec] ss:$48 sps:$4 sm:$0xff]  }
 0x55e   :  { %5239 = vst [vmem:[#allocation2 + $0x120] sm:$0x44] %v5231_v53  ;;  %5083 = vst [vmem:[#allocation2 + $0x120] sm:$0x11] %v7442_v58  ;;  %6701 = vmatprep.subr.bf16.mxu0 %v7618_v44  ;;  %v6416_v31 = vld [vmem:[#allocation2 + $0x40] sm:$0xff] }
 0x55f   :  { %6702 = vmatpush1.bf16.msra.mxu0 %v7616_v56 }
 0x560   :  { %6703 = vmatprep.subr.bf16.mxu0 %v7621_v14 }
 0x562   :  { %v7622_v43 = vld [vmem:[#allocation2 + $0x8] ss:$144 sps:$4 sm:$0xff]   ;;  %v7624_v15 = vld [vmem:[#allocation2 + $0xc] ss:$144 sps:$4 sm:$0xff]  }
 0x563   :  { %6740 = vmatprep.subr.bf16.mxu1 %v7624_v15  ;;  %6704 = vmatpush1.bf16.msra.mxu0 %v7619_v39 }
 0x564   :  { %6741 = vmatpush1.bf16.msra.mxu1 %v7622_v43  ;;  %v6804_v43 = vld [vmem:[%s12121_s8] sm:$0xff] }
 0x565   :  { %v6420_v3 = vld [vmem:[#allocation2 + $0x120] sm:$0xff] }
 0x566   :  { %v7261_v57 = vcombine.low %v6416_v31, %v6420_v3  ;;  %v7262_v42 = vcombine.high %v6416_v31, %v6420_v3  ;;  %7281 = vmatmul.mubr.msk.bf16.vlgmr.msra.gmra.mxu0 %vm6603_vm0, %v12015_v63  ;;  %v6806_v31 = vld [vmem:[%s12122_s9] sm:$0xff] }
 0x568   :  { %6742 = vmatprep.subr.bf16.mxu1 %v7262_v42 }
 0x569   :  { %6743 = vmatpush1.bf16.msra.mxu1 %v7261_v57 }
 0x56a   :  { %6744 = vmatprep.subr.bf16.mxu1 %v7627_v1 }
 0x56d   :  { %6745 = vmatpush1.bf16.msra.mxu1 %v7625_v52 }
 0x570   :  { %7282 = vmatmul.mubr.msk.bf16.vlgmr.msra.gmra.mxu1 %vm6603_vm0, %v12015_v63 }
 0x610   :  { %v6641_v29 = vpop.f32.mrf.mxu0 }
 0x611   :  { %v6642_v18 = vadd.f32 %v6641_v29, %v6441_v41 }
 0x612   :  { %v6643_v24 = vpop.f32.mrf.mxu0 }
 0x613   :  { %v12069_v27 = vadd.f32 %v6643_v24, %v6441_v41  ;;  %v6781_v48 = vmul.f32 %v6642_v18, %v6642_v18 }
 0x614   :  { %v6645_v55 = vpop.f32.mrf.mxu0 }
 0x615   :  { %v6782_v9 = vmul.f32 %v12069_v27, %v12069_v27  ;;  %v6771_v49 = vadd.f32 %v12069_v27, %v6642_v18 }
 0x616   :  { %v6646_v28 = vpop.f32.mrf.mxu0 }
 0x617   :  { %v6789_v47 = vadd.f32 %v6782_v9, %v6781_v48 }
 0x61b   :  { %v6682_v17 = vpop.f32.mrf.mxu1 }
 0x61c   :  { %v6683_v19 = vadd.f32 %v6682_v17, %v6441_v41 }
 0x61d   :  { %v6684_v25 = vpop.f32.mrf.mxu1 }
 0x61e   :  { %v6783_v63 = vmul.f32 %v6683_v19, %v6683_v19  ;;  %v6685_v45 = vadd.f32 %v6684_v25, %v6441_v41  ;;  %v6772_v7 = vadd.f32 %v6771_v49, %v6683_v19 }
 0x61f   :  { %v6686_v21 = vpop.f32.mrf.mxu1 }
 0x620   :  { %v6790_v34 = vadd.f32 %v6789_v47, %v6783_v63  ;;  %v6784_v32 = vmul.f32 %v6685_v45, %v6685_v45  ;;  %v6773_v51 = vadd.f32 %v6772_v7, %v6685_v45 }
 0x621   :  { %v6687_v13 = vpop.f32.mrf.mxu1 }
 0x622   :  { %v6791_v6 = vadd.f32 %v6790_v34, %v6784_v32 }
 0x626   :  { %v6723_v50 = vpop.f32.mrf.mxu0 }
 0x627   :  { %v6724_v4 = vadd.f32 %v6723_v50, %v6441_v41 }
 0x628   :  { %v6725_v16 = vpop.f32.mrf.mxu0 }
 0x629   :  { %v6785_v2 = vmul.f32 %v6724_v4, %v6724_v4  ;;  %v6726_v23 = vadd.f32 %v6725_v16, %v6441_v41  ;;  %v6774_v30 = vadd.f32 %v6773_v51, %v6724_v4 }
 0x62a   :  { %v6727_v8 = vpop.f32.mrf.mxu0 }
 0x62b   :  { %v6792_v11 = vadd.f32 %v6791_v6, %v6785_v2  ;;  %v6786_v35 = vmul.f32 %v6726_v23, %v6726_v23  ;;  %v6775_v22 = vadd.f32 %v6774_v30, %v6726_v23 }
 0x62c   :  { %v6728_v40 = vpop.f32.mrf.mxu0 }
 0x62d   :  { %v6793_v37 = vadd.f32 %v6792_v11, %v6786_v35 }
 0x630   :  { %v6764_v0 = vpop.f32.mrf.mxu1 }
 0x631   :  { %v6765_v46 = vadd.f32 %v6764_v0, %v6441_v41 }
 0x632   :  { %v6766_v54 = vpop.f32.mrf.mxu1 }
 0x633   :  { %v6776_v12 = vadd.f32 %v6775_v22, %v6765_v46  ;;  %v6787_v36 = vmul.f32 %v6765_v46, %v6765_v46  ;;  %v6767_v10 = vadd.f32 %v6766_v54, %v6441_v41 }
 0x634   :  { %v6768_v33 = vpop.f32.mrf.mxu1 }
 0x635   :  { %v6788_v20 = vmul.f32 %v6767_v10, %v6767_v10  ;;  %v6777_v61 = vadd.f32 %v6776_v12, %v6767_v10  ;;  %v6794_v59 = vadd.f32 %v6793_v37, %v6787_v36 }
 0x636   :  { %v6769_v26 = vpop.f32.mrf.mxu1 }
 0x637   :  { %6778 = vadd.xlane.f32.xlu1 %v6777_v61  ;;  %v6795_v60 = vadd.f32 %v6794_v59, %v6788_v20 }
 0x639   :  { %6796 = vadd.xlane.f32.xlu0 %v6795_v60 }
 0x6c0   :  { %v6779_v53 = vpop.xlane.xlu1 %6778 }
 0x6c1   :  { %v6780_v38 = vmul.f32 0.0009765625, %v6779_v53 }
 0x6c2   :  { %v6797_v62 = vpop.xlane.xlu0 %6796 }
 0x6c3   :  { %v6799_v5 = vmul.f32 %v6780_v38, %v6780_v38  ;;  %v6798_v58 = vmul.f32 0.0009765625, %v6797_v62 }
 0x6c5   :  { %v6800_v56 = vsub.f32 %v6798_v58, %v6799_v5 }
 0x6c7   :  { %v6801_v44 = vmax.f32 %v6800_v56, 0.0 }
 0x6c9   :  { %v6802_v14 = vadd.f32 1e-05, %v6801_v44 }
 0x6cb   :  { %7630 = vrsqrt.f32 %v6802_v14 }
 0x6d8   :  { %v7631_v15 = vpop.eup %7630 }
 0x6d9   :  { %v6805_v39 = vmul.f32 %v7631_v15, %v6804_v43 }
 0x6db   :  { %6811 = vperm.xlu0 %7520, %v6805_v39   ;;  %v6807_v3 = vmul.f32 %v6805_v39, %v6780_v38 }
 0x6dd   :  { %v6808_v57 = vsub.f32 %v6806_v31, %v6807_v3 }
 0x6df   :  { %6824 = vperm.xlu1 %7521, %v6808_v57  }
 0x756   :  { %v6812_v42 = vpop.permute.xlu0 %6811 }
 0x757   :  { %v6814_v1 = vmul.f32 %v6812_v42, %v6642_v18  ;;  %v6815_v52 = vmul.f32 %v6812_v42, %v12069_v27  ;;  %v6816_v29 = vmul.f32 %v6812_v42, %v6683_v19  ;;  %v6817_v24 = vmul.f32 %v6812_v42, %v6685_v45 }
 0x758   :  { %v6818_v55 = vmul.f32 %v6812_v42, %v6724_v4  ;;  %v6819_v28 = vmul.f32 %v6812_v42, %v6726_v23  ;;  %v6820_v17 = vmul.f32 %v6812_v42, %v6765_v46  ;;  %v6821_v41 = vmul.f32 %v6812_v42, %v6767_v10 }
 0x75a   :  { %v6825_v25 = vpop.permute.xlu1 %6824 }
 0x75b   :  { %v6827_v21 = vadd.f32 %v6825_v25, %v6814_v1  ;;  %v6828_v13 = vadd.f32 %v6825_v25, %v6815_v52  ;;  %v6829_v9 = vadd.f32 %v6825_v25, %v6816_v29  ;;  %v6830_v48 = vadd.f32 %v6825_v25, %v6817_v24 }
 0x75c   :  { %v6831_v49 = vadd.f32 %v6825_v25, %v6818_v55  ;;  %v6832_v63 = vadd.f32 %v6825_v25, %v6819_v28  ;;  %v6833_v47 = vadd.f32 %v6825_v25, %v6820_v17  ;;  %v6834_v7 = vadd.f32 %v6825_v25, %v6821_v41 }
 0x75d   :  { %vm6835_vm3 = vcmp.gt.f32.partialorder %v6827_v21, 0.0  ;;  %vm6836_vm10 = vcmp.gt.f32.partialorder %v6828_v13, 0.0  ;;  %vm6837_vm14 = vcmp.gt.f32.partialorder %v6829_v9, 0.0  ;;  %vm6838_vm0 = vcmp.gt.f32.partialorder %v6830_v48, 0.0 }
 0x75e   :  { %vm6839_vm4 = vcmp.gt.f32.partialorder %v6831_v49, 0.0  ;;  %vm6840_vm11 = vcmp.gt.f32.partialorder %v6832_v63, 0.0  ;;  %vm6841_vm5 = vcmp.gt.f32.partialorder %v6833_v47, 0.0  ;;  %vm6842_vm2 = vcmp.gt.f32.partialorder %v6834_v7, 0.0 }
 0x75f   :  { %v6843_v27 = vmul.f32 0.01, %v6827_v21  ;;  %v6844_v18 = vmul.f32 0.01, %v6828_v13  ;;  %v6845_v19 = vmul.f32 0.01, %v6829_v9 }
 0x760   :  { %v6846_v45 = vmul.f32 0.01, %v6830_v48  ;;  %v6847_v50 = vmul.f32 0.01, %v6831_v49  ;;  %v6848_v4 = vmul.f32 0.01, %v6832_v63 }
 0x761   :  { %v6849_v34 = vmul.f32 0.01, %v6833_v47  ;;  %v6850_v32 = vmul.f32 0.01, %v6834_v7  ;;  %v6851_v16 = vsel %vm6835_vm3, %v6827_v21, %v6843_v27  ;;  %v6852_v51 = vsel %vm6836_vm10, %v6828_v13, %v6844_v18 }
 0x762   :  { %v6853_v2 = vsel %vm6837_vm14, %v6829_v9, %v6845_v19  ;;  %v6854_v23 = vsel %vm6838_vm0, %v6830_v48, %v6846_v45  ;;  %v6855_v8 = vsel %vm6839_vm4, %v6831_v49, %v6847_v50  ;;  %v6856_v6 = vsel %vm6840_vm11, %v6832_v63, %v6848_v4  ;;  %6859 = vst [vmem:[%s12123_s10] sm:$0xff] %v6851_v16 }
 0x763   :  { %6860 = vst [vmem:[%s12123_s10 + $0x8] sm:$0xff] %v6852_v51  ;;  %v6857_v30 = vsel %vm6841_vm5, %v6833_v47, %v6849_v34  ;;  %v6858_v40 = vsel %vm6842_vm2, %v6834_v7, %v6850_v32  ;;  %6861 = vst [vmem:[%s12123_s10 + $0x10] sm:$0xff] %v6853_v2 }
 0x764   :  { %6862 = vst [vmem:[%s12123_s10 + $0x18] sm:$0xff] %v6854_v23  ;;  %6863 = vst [vmem:[%s12123_s10 + $0x20] sm:$0xff] %v6855_v8 }
 0x765   :  { %6864 = vst [vmem:[%s12123_s10 + $0x28] sm:$0xff] %v6856_v6  ;;  %6865 = vst [vmem:[%s12123_s10 + $0x30] sm:$0xff] %v6857_v30 }
 0x766   :  { %6866 = vst [vmem:[%s12123_s10 + $0x38] sm:$0xff] %v6858_v40 }

</bundles_post_ra>
